<compile_context>
chip_gen: v6e
topology: v6e:2x2x1
jax: 0.10.0
libtpu: 0.0.40
codegen_flags: <defaults>
</compile_context>

<pallas_src>
import numpy as np
import jax
import jax.numpy as jnp
from jax.experimental import pallas as pl
from jax.experimental.pallas import tpu as pltpu


# ----------------------------------------------------------------------------
# Edge-validity masks for the 9 taps of a 3x3 / pad=1 convolution
# ----------------------------------------------------------------------------

def _tap_masks(H, W):
    """(9, 1, H*W) f32 masks; tap t=(dy+1)*3+(dx+1) is valid where the source
    pixel (h+dy, w+dx) lies inside the image (zero padding elsewhere)."""
    hh, ww = np.meshgrid(np.arange(H), np.arange(W), indexing="ij")
    masks = []
    for dy in (-1, 0, 1):
        for dx in (-1, 0, 1):
            m = ((hh + dy >= 0) & (hh + dy < H)
                 & (ww + dx >= 0) & (ww + dx < W))
            masks.append(m.reshape(1, H * W))
    return np.stack(masks, axis=0).astype(np.float32)


# ----------------------------------------------------------------------------
# Single fused kernel: conv stack + BN + ReLU + GAP + fc1 + fc2
# ----------------------------------------------------------------------------

def _make_fused_kernel(B, H, W, channels, eps):
    HW = H * W
    n_layers = len(channels) - 1
    n_inv = 1.0 / float(B * HW)      # BatchNorm denominator (biased variance)
    hw_inv = 1.0 / float(HW)         # global average pool denominator

    def kernel(*refs):
        x_ref, masks_ref = refs[0], refs[1]
        conv_refs = refs[2:2 + 4 * n_layers]
        fc1w_ref, fc1b_ref, fc2w_ref, fc2b_ref = (
            refs[2 + 4 * n_layers:6 + 4 * n_layers])
        o_ref = refs[-1]

        masks = masks_ref[...]                           # (9, 1, HW)
        x = x_ref[...]                                   # (B, C0, HW) f32
        # Lane-dense per-channel activations, each (B, HW).
        chans = [x[:, c, :] for c in range(channels[0])]

        for l in range(n_layers):
            cin, cout = channels[l], channels[l + 1]
            w_ref, b_ref, g_ref, bt_ref = conv_refs[4 * l:4 * l + 4]

            # In-VMEM "im2col": 9 shifted views of each input channel via XLU
            # lane rolls + zero-padding edge masks (no padded scratch).
            taps = []
            for t in range(9):
                dy, dx = t // 3 - 1, t % 3 - 1
                d = dy * W + dx
                if d == 0:
                    taps.append(chans)
                else:
                    m = masks[t]                          # (1, HW)
                    shift = (-d) % HW                     # shifted[i] = x[i+d]
                    taps.append([pltpu.roll(c, shift, axis=1) * m
                                 for c in chans])

            new_chans = []
            for co in range(cout):
                # Conv contraction as unrolled VPU multiply-adds with SMEM
                # scalar weights (MXU would be ~99% idle at K<=36, N=2).
                acc = None
                for t in range(9):
                    for ci in range(cin):
                        wscal = w_ref[(t * cin + ci) * cout + co]
                        term = wscal * taps[t][ci]
                        acc = term if acc is None else acc + term
                acc = acc + b_ref[co]                     # (B, HW) raw conv out

                # BatchNorm2d (train mode: batch stats, biased variance),
                # centered two-pass statistics in f32, then ReLU.
                mu = jnp.sum(jnp.sum(acc, axis=1, keepdims=True),
                             axis=0, keepdims=True) * n_inv          # (1, 1)
                cen = acc - mu
                var = jnp.sum(jnp.sum(cen * cen, axis=1, keepdims=True),
                              axis=0, keepdims=True) * n_inv         # (1, 1)
                scale = g_ref[co] * jax.lax.rsqrt(var + eps)
                new_chans.append(jnp.maximum(cen * scale + bt_ref[co], 0.0))
            chans = new_chans

        # Global average pool -> (B, C_last)
        pooled = jnp.concatenate(
            [jnp.sum(c, axis=1, keepdims=True) * hw_inv for c in chans],
            axis=1)
        # fc1 -> fc2 (no activation between them, matching the module).
        h = jnp.dot(pooled, fc1w_ref[...],
                    preferred_element_type=jnp.float32) + fc1b_ref[...]
        o_ref[...] = (jnp.dot(h, fc2w_ref[...],
                              preferred_element_type=jnp.float32)
                      + fc2b_ref[...])

    return kernel


_call_cache = {}


def _get_fused_call(B, H, W, channels, hidden_dim, pa, eps):
    key = (B, H, W, tuple(channels), hidden_dim, pa, float(eps))
    if key in _call_cache:
        return _call_cache[key]

    vmem = pl.BlockSpec(memory_space=pltpu.MemorySpace.VMEM)
    smem = pl.BlockSpec(memory_space=pltpu.MemorySpace.SMEM)

    in_specs = [vmem, vmem]                        # x, tap masks
    for _ in range(len(channels) - 1):
        in_specs += [smem, smem, smem, smem]       # w_flat, bias, gamma, beta
    in_specs += [vmem, vmem, vmem, vmem]           # fc1_w, fc1_b, fc2_w, fc2_b

    call = pl.pallas_call(
        _make_fused_kernel(B, H, W, channels, eps),
        in_specs=in_specs,
        out_specs=vmem,
        out_shape=jax.ShapeDtypeStruct((B, pa), jnp.float32),
    )
    _call_cache[key] = call
    return call


# ----------------------------------------------------------------------------
# Forward pass (training-mode BatchNorm statistics, as in the PyTorch module)
# ----------------------------------------------------------------------------

def path_finder_forward(x_nchw, params, *, eps=1e-5):
    B, C0, H, W = x_nchw.shape
    convs = params["convs"]
    channels = [C0] + [c[1].shape[0] for c in convs]
    hidden_dim = params["fc1_w"].shape[1]
    pa = params["fc2_w"].shape[1]

    # NCHW -> (B, C, H*W): lane-dense, no transpose needed.
    x = x_nchw.reshape(B, C0, H * W).astype(jnp.float32)
    masks = jnp.asarray(_tap_masks(H, W))

    args = [x, masks]
    for (w_flat, b, g, bt) in convs:
        args += [w_flat, b, g, bt]
    args += [params["fc1_w"], params["fc1_b"].reshape(1, hidden_dim),
             params["fc2_w"], params["fc2_b"].reshape(1, pa)]

    call = _get_fused_call(B, H, W, channels, hidden_dim, pa, eps)
    return call(*args)


# ----------------------------------------------------------------------------
# Pure-JAX/XLA reference of the same forward pass (sanity check)
# ----------------------------------------------------------------------------

def _reference_forward(x_nchw, params, eps=1e-5):
    x = jnp.transpose(x_nchw, (0, 2, 3, 1)).astype(jnp.float32)   # NHWC
    for (w_flat, b, gamma, beta) in params["convs"]:
        cout = b.shape[0]
        cin = w_flat.shape[0] // (9 * cout)
        w_hwio = w_flat.reshape(3, 3, cin, cout)
        y = jax.lax.conv_general_dilated(
            x, w_hwio, window_strides=(1, 1), padding="SAME",
            dimension_numbers=("NHWC", "HWIO", "NHWC")) + b
        mean = jnp.mean(y, axis=(0, 1, 2))
        var = jnp.mean(jnp.square(y - mean), axis=(0, 1, 2))
        x = jnp.maximum((y - mean) * jax.lax.rsqrt(var + eps) * gamma + beta,
                        0.0)
    pooled = jnp.mean(x, axis=(1, 2))
    h = pooled @ params["fc1_w"] + params["fc1_b"]
    return h @ params["fc2_w"] + params["fc2_b"]


# ----------------------------------------------------------------------------
# Deterministic synthetic parameters
# ----------------------------------------------------------------------------

def init_params(key, in_channels, path_action_num, pathfinder_conv_num,
                hidden_dim):
    keys = iter(jax.random.split(key, 4 * pathfinder_conv_num + 8))
    channels = [in_channels] + [path_action_num] * pathfinder_conv_num
    convs = []
    for i in range(pathfinder_conv_num):
        cin, cout = channels[i], channels[i + 1]
        w = jax.random.normal(next(keys), (3, 3, cin, cout), jnp.float32)
        w = w * (1.0 / (9 * cin) ** 0.5)
        # Flattened (tap, cin, cout) order; kernel index = (t*cin + ci)*cout + co
        w_flat = w.reshape(9 * cin * cout)
        bias = jax.random.normal(next(keys), (cout,), jnp.float32) * 0.01
        gamma = jnp.ones((cout,), jnp.float32)    # nn.BatchNorm2d init
        beta = jnp.zeros((cout,), jnp.float32)
        convs.append((w_flat, bias, gamma, beta))

    def linear(din, dout):
        w = jax.random.normal(next(keys), (din, dout), jnp.float32) / din ** 0.5
        b = jax.random.normal(next(keys), (dout,), jnp.float32) * 0.01
        return w, b

    fc1_w, fc1_b = linear(path_action_num, hidden_dim)
    fc2_w, fc2_b = linear(hidden_dim, path_action_num)
    return {"convs": convs, "fc1_w": fc1_w, "fc1_b": fc1_b,
            "fc2_w": fc2_w, "fc2_b": fc2_b}


# ----------------------------------------------------------------------------

if __name__ == "__main__":
    B, Cin, H, W = 2, 4, 16, 16
    path_action_num = 2
    pathfinder_conv_num = 4
    hidden_dim = 64

    x = jax.random.normal(jax.random.PRNGKey(0), (B, Cin, H, W), jnp.float32)
    params = init_params(jax.random.PRNGKey(1), Cin, path_action_num,
                         pathfinder_conv_num, hidden_dim)

    fwd = jax.jit(path_finder_forward)
    out = jax.block_until_ready(fwd(x, params))

    assert out.shape == (B, path_action_num), out.shape
    assert bool(jnp.all(jnp.isfinite(out)))

    ref = jax.block_until_ready(_reference_forward(x, params))
    max_err = float(jnp.max(jnp.abs(out - ref)))
    assert max_err < 1e-2, f"max abs err vs reference: {max_err}"

    print("KERNEL_OK")
</pallas_src>

<mosaic_0001>
module attributes {stable_mosaic.version = 11 : i64} {
  func.func @kernel(%arg0: memref<2x4x256xf32, #tpu.memory_space<vmem>>, %arg1: memref<9x1x256xf32, #tpu.memory_space<vmem>>, %arg2: memref<72xf32, #tpu.memory_space<smem>>, %arg3: memref<2xf32, #tpu.memory_space<smem>>, %arg4: memref<2xf32, #tpu.memory_space<smem>>, %arg5: memref<2xf32, #tpu.memory_space<smem>>, %arg6: memref<36xf32, #tpu.memory_space<smem>>, %arg7: memref<2xf32, #tpu.memory_space<smem>>, %arg8: memref<2xf32, #tpu.memory_space<smem>>, %arg9: memref<2xf32, #tpu.memory_space<smem>>, %arg10: memref<36xf32, #tpu.memory_space<smem>>, %arg11: memref<2xf32, #tpu.memory_space<smem>>, %arg12: memref<2xf32, #tpu.memory_space<smem>>, %arg13: memref<2xf32, #tpu.memory_space<smem>>, %arg14: memref<36xf32, #tpu.memory_space<smem>>, %arg15: memref<2xf32, #tpu.memory_space<smem>>, %arg16: memref<2xf32, #tpu.memory_space<smem>>, %arg17: memref<2xf32, #tpu.memory_space<smem>>, %arg18: memref<2x64xf32, #tpu.memory_space<vmem>>, %arg19: memref<1x64xf32, #tpu.memory_space<vmem>>, %arg20: memref<64x2xf32, #tpu.memory_space<vmem>>, %arg21: memref<1x2xf32, #tpu.memory_space<vmem>>, %arg22: memref<2x2xf32, #tpu.memory_space<vmem>>) attributes {dimension_semantics = [], scalar_prefetch = 0 : i64, scratch_operands = 0 : i64, tpu.core_type = #tpu.core_type<tc>} {
    %c0 = arith.constant 0 : index
    %c0_0 = arith.constant 0 : index
    %c0_1 = arith.constant 0 : index
    %0 = vector.load %arg1[%c0, %c0_0, %c0_1] : memref<9x1x256xf32, #tpu.memory_space<vmem>>, vector<9x1x256xf32>
    %c0_2 = arith.constant 0 : index
    %c0_3 = arith.constant 0 : index
    %c0_4 = arith.constant 0 : index
    %1 = vector.load %arg0[%c0_2, %c0_3, %c0_4] : memref<2x4x256xf32, #tpu.memory_space<vmem>>, vector<2x4x256xf32>
    %2 = vector.extract_strided_slice %1 {offsets = [0, 0, 0], sizes = [2, 1, 256], strides = [1, 1, 1]} : vector<2x4x256xf32> to vector<2x1x256xf32>
    %3 = vector.shape_cast %2 : vector<2x1x256xf32> to vector<2x256xf32>
    %4 = vector.extract_strided_slice %1 {offsets = [0, 1, 0], sizes = [2, 1, 256], strides = [1, 1, 1]} : vector<2x4x256xf32> to vector<2x1x256xf32>
    %5 = vector.shape_cast %4 : vector<2x1x256xf32> to vector<2x256xf32>
    %6 = vector.extract_strided_slice %1 {offsets = [0, 2, 0], sizes = [2, 1, 256], strides = [1, 1, 1]} : vector<2x4x256xf32> to vector<2x1x256xf32>
    %7 = vector.shape_cast %6 : vector<2x1x256xf32> to vector<2x256xf32>
    %8 = vector.extract_strided_slice %1 {offsets = [0, 3, 0], sizes = [2, 1, 256], strides = [1, 1, 1]} : vector<2x4x256xf32> to vector<2x1x256xf32>
    %9 = vector.shape_cast %8 : vector<2x1x256xf32> to vector<2x256xf32>
    %10 = vector.extract_strided_slice %0 {offsets = [0, 0, 0], sizes = [1, 1, 256], strides = [1, 1, 1]} : vector<9x1x256xf32> to vector<1x1x256xf32>
    %11 = vector.shape_cast %10 : vector<1x1x256xf32> to vector<1x256xf32>
    %c17_i32 = arith.constant 17 : i32
    %12 = tpu.dynamic_rotate %3 by %c17_i32 dim 1 : vector<2x256xf32>, i32 -> vector<2x256xf32>
    %13 = vector.broadcast %11 : vector<1x256xf32> to vector<2x256xf32>
    %14 = arith.mulf %12, %13 : vector<2x256xf32>
    %c17_i32_5 = arith.constant 17 : i32
    %15 = tpu.dynamic_rotate %5 by %c17_i32_5 dim 1 : vector<2x256xf32>, i32 -> vector<2x256xf32>
    %16 = vector.broadcast %11 : vector<1x256xf32> to vector<2x256xf32>
    %17 = arith.mulf %15, %16 : vector<2x256xf32>
    %c17_i32_6 = arith.constant 17 : i32
    %18 = tpu.dynamic_rotate %7 by %c17_i32_6 dim 1 : vector<2x256xf32>, i32 -> vector<2x256xf32>
    %19 = vector.broadcast %11 : vector<1x256xf32> to vector<2x256xf32>
    %20 = arith.mulf %18, %19 : vector<2x256xf32>
    %c17_i32_7 = arith.constant 17 : i32
    %21 = tpu.dynamic_rotate %9 by %c17_i32_7 dim 1 : vector<2x256xf32>, i32 -> vector<2x256xf32>
    %22 = vector.broadcast %11 : vector<1x256xf32> to vector<2x256xf32>
    %23 = arith.mulf %21, %22 : vector<2x256xf32>
    %24 = vector.extract_strided_slice %0 {offsets = [1, 0, 0], sizes = [1, 1, 256], strides = [1, 1, 1]} : vector<9x1x256xf32> to vector<1x1x256xf32>
    %25 = vector.shape_cast %24 : vector<1x1x256xf32> to vector<1x256xf32>
    %c16_i32 = arith.constant 16 : i32
    %26 = tpu.dynamic_rotate %3 by %c16_i32 dim 1 : vector<2x256xf32>, i32 -> vector<2x256xf32>
    %27 = vector.broadcast %25 : vector<1x256xf32> to vector<2x256xf32>
    %28 = arith.mulf %26, %27 : vector<2x256xf32>
    %c16_i32_8 = arith.constant 16 : i32
    %29 = tpu.dynamic_rotate %5 by %c16_i32_8 dim 1 : vector<2x256xf32>, i32 -> vector<2x256xf32>
    %30 = vector.broadcast %25 : vector<1x256xf32> to vector<2x256xf32>
    %31 = arith.mulf %29, %30 : vector<2x256xf32>
    %c16_i32_9 = arith.constant 16 : i32
    %32 = tpu.dynamic_rotate %7 by %c16_i32_9 dim 1 : vector<2x256xf32>, i32 -> vector<2x256xf32>
    %33 = vector.broadcast %25 : vector<1x256xf32> to vector<2x256xf32>
    %34 = arith.mulf %32, %33 : vector<2x256xf32>
    %c16_i32_10 = arith.constant 16 : i32
    %35 = tpu.dynamic_rotate %9 by %c16_i32_10 dim 1 : vector<2x256xf32>, i32 -> vector<2x256xf32>
    %36 = vector.broadcast %25 : vector<1x256xf32> to vector<2x256xf32>
    %37 = arith.mulf %35, %36 : vector<2x256xf32>
    %38 = vector.extract_strided_slice %0 {offsets = [2, 0, 0], sizes = [1, 1, 256], strides = [1, 1, 1]} : vector<9x1x256xf32> to vector<1x1x256xf32>
    %39 = vector.shape_cast %38 : vector<1x1x256xf32> to vector<1x256xf32>
    %c15_i32 = arith.constant 15 : i32
    %40 = tpu.dynamic_rotate %3 by %c15_i32 dim 1 : vector<2x256xf32>, i32 -> vector<2x256xf32>
    %41 = vector.broadcast %39 : vector<1x256xf32> to vector<2x256xf32>
    %42 = arith.mulf %40, %41 : vector<2x256xf32>
    %c15_i32_11 = arith.constant 15 : i32
    %43 = tpu.dynamic_rotate %5 by %c15_i32_11 dim 1 : vector<2x256xf32>, i32 -> vector<2x256xf32>
    %44 = vector.broadcast %39 : vector<1x256xf32> to vector<2x256xf32>
    %45 = arith.mulf %43, %44 : vector<2x256xf32>
    %c15_i32_12 = arith.constant 15 : i32
    %46 = tpu.dynamic_rotate %7 by %c15_i32_12 dim 1 : vector<2x256xf32>, i32 -> vector<2x256xf32>
    %47 = vector.broadcast %39 : vector<1x256xf32> to vector<2x256xf32>
    %48 = arith.mulf %46, %47 : vector<2x256xf32>
    %c15_i32_13 = arith.constant 15 : i32
    %49 = tpu.dynamic_rotate %9 by %c15_i32_13 dim 1 : vector<2x256xf32>, i32 -> vector<2x256xf32>
    %50 = vector.broadcast %39 : vector<1x256xf32> to vector<2x256xf32>
    %51 = arith.mulf %49, %50 : vector<2x256xf32>
    %52 = vector.extract_strided_slice %0 {offsets = [3, 0, 0], sizes = [1, 1, 256], strides = [1, 1, 1]} : vector<9x1x256xf32> to vector<1x1x256xf32>
    %53 = vector.shape_cast %52 : vector<1x1x256xf32> to vector<1x256xf32>
    %c1_i32 = arith.constant 1 : i32
    %54 = tpu.dynamic_rotate %3 by %c1_i32 dim 1 : vector<2x256xf32>, i32 -> vector<2x256xf32>
    %55 = vector.broadcast %53 : vector<1x256xf32> to vector<2x256xf32>
    %56 = arith.mulf %54, %55 : vector<2x256xf32>
    %c1_i32_14 = arith.constant 1 : i32
    %57 = tpu.dynamic_rotate %5 by %c1_i32_14 dim 1 : vector<2x256xf32>, i32 -> vector<2x256xf32>
    %58 = vector.broadcast %53 : vector<1x256xf32> to vector<2x256xf32>
    %59 = arith.mulf %57, %58 : vector<2x256xf32>
    %c1_i32_15 = arith.constant 1 : i32
    %60 = tpu.dynamic_rotate %7 by %c1_i32_15 dim 1 : vector<2x256xf32>, i32 -> vector<2x256xf32>
    %61 = vector.broadcast %53 : vector<1x256xf32> to vector<2x256xf32>
    %62 = arith.mulf %60, %61 : vector<2x256xf32>
    %c1_i32_16 = arith.constant 1 : i32
    %63 = tpu.dynamic_rotate %9 by %c1_i32_16 dim 1 : vector<2x256xf32>, i32 -> vector<2x256xf32>
    %64 = vector.broadcast %53 : vector<1x256xf32> to vector<2x256xf32>
    %65 = arith.mulf %63, %64 : vector<2x256xf32>
    %66 = vector.extract_strided_slice %0 {offsets = [5, 0, 0], sizes = [1, 1, 256], strides = [1, 1, 1]} : vector<9x1x256xf32> to vector<1x1x256xf32>
    %67 = vector.shape_cast %66 : vector<1x1x256xf32> to vector<1x256xf32>
    %c255_i32 = arith.constant 255 : i32
    %68 = tpu.dynamic_rotate %3 by %c255_i32 dim 1 : vector<2x256xf32>, i32 -> vector<2x256xf32>
    %69 = vector.broadcast %67 : vector<1x256xf32> to vector<2x256xf32>
    %70 = arith.mulf %68, %69 : vector<2x256xf32>
    %c255_i32_17 = arith.constant 255 : i32
    %71 = tpu.dynamic_rotate %5 by %c255_i32_17 dim 1 : vector<2x256xf32>, i32 -> vector<2x256xf32>
    %72 = vector.broadcast %67 : vector<1x256xf32> to vector<2x256xf32>
    %73 = arith.mulf %71, %72 : vector<2x256xf32>
    %c255_i32_18 = arith.constant 255 : i32
    %74 = tpu.dynamic_rotate %7 by %c255_i32_18 dim 1 : vector<2x256xf32>, i32 -> vector<2x256xf32>
    %75 = vector.broadcast %67 : vector<1x256xf32> to vector<2x256xf32>
    %76 = arith.mulf %74, %75 : vector<2x256xf32>
    %c255_i32_19 = arith.constant 255 : i32
    %77 = tpu.dynamic_rotate %9 by %c255_i32_19 dim 1 : vector<2x256xf32>, i32 -> vector<2x256xf32>
    %78 = vector.broadcast %67 : vector<1x256xf32> to vector<2x256xf32>
    %79 = arith.mulf %77, %78 : vector<2x256xf32>
    %80 = vector.extract_strided_slice %0 {offsets = [6, 0, 0], sizes = [1, 1, 256], strides = [1, 1, 1]} : vector<9x1x256xf32> to vector<1x1x256xf32>
    %81 = vector.shape_cast %80 : vector<1x1x256xf32> to vector<1x256xf32>
    %c241_i32 = arith.constant 241 : i32
    %82 = tpu.dynamic_rotate %3 by %c241_i32 dim 1 : vector<2x256xf32>, i32 -> vector<2x256xf32>
    %83 = vector.broadcast %81 : vector<1x256xf32> to vector<2x256xf32>
    %84 = arith.mulf %82, %83 : vector<2x256xf32>
    %c241_i32_20 = arith.constant 241 : i32
    %85 = tpu.dynamic_rotate %5 by %c241_i32_20 dim 1 : vector<2x256xf32>, i32 -> vector<2x256xf32>
    %86 = vector.broadcast %81 : vector<1x256xf32> to vector<2x256xf32>
    %87 = arith.mulf %85, %86 : vector<2x256xf32>
    %c241_i32_21 = arith.constant 241 : i32
    %88 = tpu.dynamic_rotate %7 by %c241_i32_21 dim 1 : vector<2x256xf32>, i32 -> vector<2x256xf32>
    %89 = vector.broadcast %81 : vector<1x256xf32> to vector<2x256xf32>
    %90 = arith.mulf %88, %89 : vector<2x256xf32>
    %c241_i32_22 = arith.constant 241 : i32
    %91 = tpu.dynamic_rotate %9 by %c241_i32_22 dim 1 : vector<2x256xf32>, i32 -> vector<2x256xf32>
    %92 = vector.broadcast %81 : vector<1x256xf32> to vector<2x256xf32>
    %93 = arith.mulf %91, %92 : vector<2x256xf32>
    %94 = vector.extract_strided_slice %0 {offsets = [7, 0, 0], sizes = [1, 1, 256], strides = [1, 1, 1]} : vector<9x1x256xf32> to vector<1x1x256xf32>
    %95 = vector.shape_cast %94 : vector<1x1x256xf32> to vector<1x256xf32>
    %c240_i32 = arith.constant 240 : i32
    %96 = tpu.dynamic_rotate %3 by %c240_i32 dim 1 : vector<2x256xf32>, i32 -> vector<2x256xf32>
    %97 = vector.broadcast %95 : vector<1x256xf32> to vector<2x256xf32>
    %98 = arith.mulf %96, %97 : vector<2x256xf32>
    %c240_i32_23 = arith.constant 240 : i32
    %99 = tpu.dynamic_rotate %5 by %c240_i32_23 dim 1 : vector<2x256xf32>, i32 -> vector<2x256xf32>
    %100 = vector.broadcast %95 : vector<1x256xf32> to vector<2x256xf32>
    %101 = arith.mulf %99, %100 : vector<2x256xf32>
    %c240_i32_24 = arith.constant 240 : i32
    %102 = tpu.dynamic_rotate %7 by %c240_i32_24 dim 1 : vector<2x256xf32>, i32 -> vector<2x256xf32>
    %103 = vector.broadcast %95 : vector<1x256xf32> to vector<2x256xf32>
    %104 = arith.mulf %102, %103 : vector<2x256xf32>
    %c240_i32_25 = arith.constant 240 : i32
    %105 = tpu.dynamic_rotate %9 by %c240_i32_25 dim 1 : vector<2x256xf32>, i32 -> vector<2x256xf32>
    %106 = vector.broadcast %95 : vector<1x256xf32> to vector<2x256xf32>
    %107 = arith.mulf %105, %106 : vector<2x256xf32>
    %108 = vector.extract_strided_slice %0 {offsets = [8, 0, 0], sizes = [1, 1, 256], strides = [1, 1, 1]} : vector<9x1x256xf32> to vector<1x1x256xf32>
    %109 = vector.shape_cast %108 : vector<1x1x256xf32> to vector<1x256xf32>
    %c239_i32 = arith.constant 239 : i32
    %110 = tpu.dynamic_rotate %3 by %c239_i32 dim 1 : vector<2x256xf32>, i32 -> vector<2x256xf32>
    %111 = vector.broadcast %109 : vector<1x256xf32> to vector<2x256xf32>
    %112 = arith.mulf %110, %111 : vector<2x256xf32>
    %c239_i32_26 = arith.constant 239 : i32
    %113 = tpu.dynamic_rotate %5 by %c239_i32_26 dim 1 : vector<2x256xf32>, i32 -> vector<2x256xf32>
    %114 = vector.broadcast %109 : vector<1x256xf32> to vector<2x256xf32>
    %115 = arith.mulf %113, %114 : vector<2x256xf32>
    %c239_i32_27 = arith.constant 239 : i32
    %116 = tpu.dynamic_rotate %7 by %c239_i32_27 dim 1 : vector<2x256xf32>, i32 -> vector<2x256xf32>
    %117 = vector.broadcast %109 : vector<1x256xf32> to vector<2x256xf32>
    %118 = arith.mulf %116, %117 : vector<2x256xf32>
    %c239_i32_28 = arith.constant 239 : i32
    %119 = tpu.dynamic_rotate %9 by %c239_i32_28 dim 1 : vector<2x256xf32>, i32 -> vector<2x256xf32>
    %120 = vector.broadcast %109 : vector<1x256xf32> to vector<2x256xf32>
    %121 = arith.mulf %119, %120 : vector<2x256xf32>
    %c0_29 = arith.constant 0 : index
    %122 = memref.load %arg2[%c0_29] : memref<72xf32, #tpu.memory_space<smem>>
    %123 = vector.broadcast %122 : f32 to vector<2x256xf32>
    %124 = arith.mulf %123, %14 : vector<2x256xf32>
    %c2 = arith.constant 2 : index
    %125 = memref.load %arg2[%c2] : memref<72xf32, #tpu.memory_space<smem>>
    %126 = vector.broadcast %125 : f32 to vector<2x256xf32>
    %127 = arith.mulf %126, %17 : vector<2x256xf32>
    %128 = arith.addf %124, %127 : vector<2x256xf32>
    %c4 = arith.constant 4 : index
    %129 = memref.load %arg2[%c4] : memref<72xf32, #tpu.memory_space<smem>>
    %130 = vector.broadcast %129 : f32 to vector<2x256xf32>
    %131 = arith.mulf %130, %20 : vector<2x256xf32>
    %132 = arith.addf %128, %131 : vector<2x256xf32>
    %c6 = arith.constant 6 : index
    %133 = memref.load %arg2[%c6] : memref<72xf32, #tpu.memory_space<smem>>
    %134 = vector.broadcast %133 : f32 to vector<2x256xf32>
    %135 = arith.mulf %134, %23 : vector<2x256xf32>
    %136 = arith.addf %132, %135 : vector<2x256xf32>
    %c8 = arith.constant 8 : index
    %137 = memref.load %arg2[%c8] : memref<72xf32, #tpu.memory_space<smem>>
    %138 = vector.broadcast %137 : f32 to vector<2x256xf32>
    %139 = arith.mulf %138, %28 : vector<2x256xf32>
    %140 = arith.addf %136, %139 : vector<2x256xf32>
    %c10 = arith.constant 10 : index
    %141 = memref.load %arg2[%c10] : memref<72xf32, #tpu.memory_space<smem>>
    %142 = vector.broadcast %141 : f32 to vector<2x256xf32>
    %143 = arith.mulf %142, %31 : vector<2x256xf32>
    %144 = arith.addf %140, %143 : vector<2x256xf32>
    %c12 = arith.constant 12 : index
    %145 = memref.load %arg2[%c12] : memref<72xf32, #tpu.memory_space<smem>>
    %146 = vector.broadcast %145 : f32 to vector<2x256xf32>
    %147 = arith.mulf %146, %34 : vector<2x256xf32>
    %148 = arith.addf %144, %147 : vector<2x256xf32>
    %c14 = arith.constant 14 : index
    %149 = memref.load %arg2[%c14] : memref<72xf32, #tpu.memory_space<smem>>
    %150 = vector.broadcast %149 : f32 to vector<2x256xf32>
    %151 = arith.mulf %150, %37 : vector<2x256xf32>
    %152 = arith.addf %148, %151 : vector<2x256xf32>
    %c16 = arith.constant 16 : index
    %153 = memref.load %arg2[%c16] : memref<72xf32, #tpu.memory_space<smem>>
    %154 = vector.broadcast %153 : f32 to vector<2x256xf32>
    %155 = arith.mulf %154, %42 : vector<2x256xf32>
    %156 = arith.addf %152, %155 : vector<2x256xf32>
    %c18 = arith.constant 18 : index
    %157 = memref.load %arg2[%c18] : memref<72xf32, #tpu.memory_space<smem>>
    %158 = vector.broadcast %157 : f32 to vector<2x256xf32>
    %159 = arith.mulf %158, %45 : vector<2x256xf32>
    %160 = arith.addf %156, %159 : vector<2x256xf32>
    %c20 = arith.constant 20 : index
    %161 = memref.load %arg2[%c20] : memref<72xf32, #tpu.memory_space<smem>>
    %162 = vector.broadcast %161 : f32 to vector<2x256xf32>
    %163 = arith.mulf %162, %48 : vector<2x256xf32>
    %164 = arith.addf %160, %163 : vector<2x256xf32>
    %c22 = arith.constant 22 : index
    %165 = memref.load %arg2[%c22] : memref<72xf32, #tpu.memory_space<smem>>
    %166 = vector.broadcast %165 : f32 to vector<2x256xf32>
    %167 = arith.mulf %166, %51 : vector<2x256xf32>
    %168 = arith.addf %164, %167 : vector<2x256xf32>
    %c24 = arith.constant 24 : index
    %169 = memref.load %arg2[%c24] : memref<72xf32, #tpu.memory_space<smem>>
    %170 = vector.broadcast %169 : f32 to vector<2x256xf32>
    %171 = arith.mulf %170, %56 : vector<2x256xf32>
    %172 = arith.addf %168, %171 : vector<2x256xf32>
    %c26 = arith.constant 26 : index
    %173 = memref.load %arg2[%c26] : memref<72xf32, #tpu.memory_space<smem>>
    %174 = vector.broadcast %173 : f32 to vector<2x256xf32>
    %175 = arith.mulf %174, %59 : vector<2x256xf32>
    %176 = arith.addf %172, %175 : vector<2x256xf32>
    %c28 = arith.constant 28 : index
    %177 = memref.load %arg2[%c28] : memref<72xf32, #tpu.memory_space<smem>>
    %178 = vector.broadcast %177 : f32 to vector<2x256xf32>
    %179 = arith.mulf %178, %62 : vector<2x256xf32>
    %180 = arith.addf %176, %179 : vector<2x256xf32>
    %c30 = arith.constant 30 : index
    %181 = memref.load %arg2[%c30] : memref<72xf32, #tpu.memory_space<smem>>
    %182 = vector.broadcast %181 : f32 to vector<2x256xf32>
    %183 = arith.mulf %182, %65 : vector<2x256xf32>
    %184 = arith.addf %180, %183 : vector<2x256xf32>
    %c32 = arith.constant 32 : index
    %185 = memref.load %arg2[%c32] : memref<72xf32, #tpu.memory_space<smem>>
    %186 = vector.broadcast %185 : f32 to vector<2x256xf32>
    %187 = arith.mulf %186, %3 : vector<2x256xf32>
    %188 = arith.addf %184, %187 : vector<2x256xf32>
    %c34 = arith.constant 34 : index
    %189 = memref.load %arg2[%c34] : memref<72xf32, #tpu.memory_space<smem>>
    %190 = vector.broadcast %189 : f32 to vector<2x256xf32>
    %191 = arith.mulf %190, %5 : vector<2x256xf32>
    %192 = arith.addf %188, %191 : vector<2x256xf32>
    %c36 = arith.constant 36 : index
    %193 = memref.load %arg2[%c36] : memref<72xf32, #tpu.memory_space<smem>>
    %194 = vector.broadcast %193 : f32 to vector<2x256xf32>
    %195 = arith.mulf %194, %7 : vector<2x256xf32>
    %196 = arith.addf %192, %195 : vector<2x256xf32>
    %c38 = arith.constant 38 : index
    %197 = memref.load %arg2[%c38] : memref<72xf32, #tpu.memory_space<smem>>
    %198 = vector.broadcast %197 : f32 to vector<2x256xf32>
    %199 = arith.mulf %198, %9 : vector<2x256xf32>
    %200 = arith.addf %196, %199 : vector<2x256xf32>
    %c40 = arith.constant 40 : index
    %201 = memref.load %arg2[%c40] : memref<72xf32, #tpu.memory_space<smem>>
    %202 = vector.broadcast %201 : f32 to vector<2x256xf32>
    %203 = arith.mulf %202, %70 : vector<2x256xf32>
    %204 = arith.addf %200, %203 : vector<2x256xf32>
    %c42 = arith.constant 42 : index
    %205 = memref.load %arg2[%c42] : memref<72xf32, #tpu.memory_space<smem>>
    %206 = vector.broadcast %205 : f32 to vector<2x256xf32>
    %207 = arith.mulf %206, %73 : vector<2x256xf32>
    %208 = arith.addf %204, %207 : vector<2x256xf32>
    %c44 = arith.constant 44 : index
    %209 = memref.load %arg2[%c44] : memref<72xf32, #tpu.memory_space<smem>>
    %210 = vector.broadcast %209 : f32 to vector<2x256xf32>
    %211 = arith.mulf %210, %76 : vector<2x256xf32>
    %212 = arith.addf %208, %211 : vector<2x256xf32>
    %c46 = arith.constant 46 : index
    %213 = memref.load %arg2[%c46] : memref<72xf32, #tpu.memory_space<smem>>
    %214 = vector.broadcast %213 : f32 to vector<2x256xf32>
    %215 = arith.mulf %214, %79 : vector<2x256xf32>
    %216 = arith.addf %212, %215 : vector<2x256xf32>
    %c48 = arith.constant 48 : index
    %217 = memref.load %arg2[%c48] : memref<72xf32, #tpu.memory_space<smem>>
    %218 = vector.broadcast %217 : f32 to vector<2x256xf32>
    %219 = arith.mulf %218, %84 : vector<2x256xf32>
    %220 = arith.addf %216, %219 : vector<2x256xf32>
    %c50 = arith.constant 50 : index
    %221 = memref.load %arg2[%c50] : memref<72xf32, #tpu.memory_space<smem>>
    %222 = vector.broadcast %221 : f32 to vector<2x256xf32>
    %223 = arith.mulf %222, %87 : vector<2x256xf32>
    %224 = arith.addf %220, %223 : vector<2x256xf32>
    %c52 = arith.constant 52 : index
    %225 = memref.load %arg2[%c52] : memref<72xf32, #tpu.memory_space<smem>>
    %226 = vector.broadcast %225 : f32 to vector<2x256xf32>
    %227 = arith.mulf %226, %90 : vector<2x256xf32>
    %228 = arith.addf %224, %227 : vector<2x256xf32>
    %c54 = arith.constant 54 : index
    %229 = memref.load %arg2[%c54] : memref<72xf32, #tpu.memory_space<smem>>
    %230 = vector.broadcast %229 : f32 to vector<2x256xf32>
    %231 = arith.mulf %230, %93 : vector<2x256xf32>
    %232 = arith.addf %228, %231 : vector<2x256xf32>
    %c56 = arith.constant 56 : index
    %233 = memref.load %arg2[%c56] : memref<72xf32, #tpu.memory_space<smem>>
    %234 = vector.broadcast %233 : f32 to vector<2x256xf32>
    %235 = arith.mulf %234, %98 : vector<2x256xf32>
    %236 = arith.addf %232, %235 : vector<2x256xf32>
    %c58 = arith.constant 58 : index
    %237 = memref.load %arg2[%c58] : memref<72xf32, #tpu.memory_space<smem>>
    %238 = vector.broadcast %237 : f32 to vector<2x256xf32>
    %239 = arith.mulf %238, %101 : vector<2x256xf32>
    %240 = arith.addf %236, %239 : vector<2x256xf32>
    %c60 = arith.constant 60 : index
    %241 = memref.load %arg2[%c60] : memref<72xf32, #tpu.memory_space<smem>>
    %242 = vector.broadcast %241 : f32 to vector<2x256xf32>
    %243 = arith.mulf %242, %104 : vector<2x256xf32>
    %244 = arith.addf %240, %243 : vector<2x256xf32>
    %c62 = arith.constant 62 : index
    %245 = memref.load %arg2[%c62] : memref<72xf32, #tpu.memory_space<smem>>
    %246 = vector.broadcast %245 : f32 to vector<2x256xf32>
    %247 = arith.mulf %246, %107 : vector<2x256xf32>
    %248 = arith.addf %244, %247 : vector<2x256xf32>
    %c64 = arith.constant 64 : index
    %249 = memref.load %arg2[%c64] : memref<72xf32, #tpu.memory_space<smem>>
    %250 = vector.broadcast %249 : f32 to vector<2x256xf32>
    %251 = arith.mulf %250, %112 : vector<2x256xf32>
    %252 = arith.addf %248, %251 : vector<2x256xf32>
    %c66 = arith.constant 66 : index
    %253 = memref.load %arg2[%c66] : memref<72xf32, #tpu.memory_space<smem>>
    %254 = vector.broadcast %253 : f32 to vector<2x256xf32>
    %255 = arith.mulf %254, %115 : vector<2x256xf32>
    %256 = arith.addf %252, %255 : vector<2x256xf32>
    %c68 = arith.constant 68 : index
    %257 = memref.load %arg2[%c68] : memref<72xf32, #tpu.memory_space<smem>>
    %258 = vector.broadcast %257 : f32 to vector<2x256xf32>
    %259 = arith.mulf %258, %118 : vector<2x256xf32>
    %260 = arith.addf %256, %259 : vector<2x256xf32>
    %c70 = arith.constant 70 : index
    %261 = memref.load %arg2[%c70] : memref<72xf32, #tpu.memory_space<smem>>
    %262 = vector.broadcast %261 : f32 to vector<2x256xf32>
    %263 = arith.mulf %262, %121 : vector<2x256xf32>
    %264 = arith.addf %260, %263 : vector<2x256xf32>
    %c0_30 = arith.constant 0 : index
    %265 = memref.load %arg3[%c0_30] : memref<2xf32, #tpu.memory_space<smem>>
    %266 = vector.broadcast %265 : f32 to vector<2x256xf32>
    %267 = arith.addf %264, %266 : vector<2x256xf32>
    %cst = arith.constant dense<0.000000e+00> : vector<2xf32>
    %268 = vector.multi_reduction <add>, %267, %cst [1] : vector<2x256xf32> to vector<2xf32>
    %269 = vector.shape_cast %268 : vector<2xf32> to vector<2x1xf32>
    %cst_31 = arith.constant dense<0.000000e+00> : vector<1xf32>
    %270 = vector.multi_reduction <add>, %269, %cst_31 [0] : vector<2x1xf32> to vector<1xf32>
    %271 = vector.shape_cast %270 : vector<1xf32> to vector<1x1xf32>
    %cst_32 = arith.constant 0.001953125 : f32
    %272 = vector.broadcast %cst_32 : f32 to vector<1x1xf32>
    %273 = arith.mulf %271, %272 : vector<1x1xf32>
    %274 = vector.broadcast %273 : vector<1x1xf32> to vector<2x256xf32>
    %275 = arith.subf %267, %274 : vector<2x256xf32>
    %276 = arith.mulf %275, %275 : vector<2x256xf32>
    %cst_33 = arith.constant dense<0.000000e+00> : vector<2xf32>
    %277 = vector.multi_reduction <add>, %276, %cst_33 [1] : vector<2x256xf32> to vector<2xf32>
    %278 = vector.shape_cast %277 : vector<2xf32> to vector<2x1xf32>
    %cst_34 = arith.constant dense<0.000000e+00> : vector<1xf32>
    %279 = vector.multi_reduction <add>, %278, %cst_34 [0] : vector<2x1xf32> to vector<1xf32>
    %280 = vector.shape_cast %279 : vector<1xf32> to vector<1x1xf32>
    %cst_35 = arith.constant 0.001953125 : f32
    %281 = vector.broadcast %cst_35 : f32 to vector<1x1xf32>
    %282 = arith.mulf %280, %281 : vector<1x1xf32>
    %c0_36 = arith.constant 0 : index
    %283 = memref.load %arg4[%c0_36] : memref<2xf32, #tpu.memory_space<smem>>
    %cst_37 = arith.constant 9.99999974E-6 : f32
    %284 = vector.broadcast %cst_37 : f32 to vector<1x1xf32>
    %285 = arith.addf %282, %284 : vector<1x1xf32>
    %286 = math.rsqrt %285 : vector<1x1xf32>
    %287 = vector.broadcast %283 : f32 to vector<1x1xf32>
    %288 = arith.mulf %287, %286 : vector<1x1xf32>
    %289 = vector.broadcast %288 : vector<1x1xf32> to vector<2x256xf32>
    %290 = arith.mulf %275, %289 : vector<2x256xf32>
    %c0_38 = arith.constant 0 : index
    %291 = memref.load %arg5[%c0_38] : memref<2xf32, #tpu.memory_space<smem>>
    %292 = vector.broadcast %291 : f32 to vector<2x256xf32>
    %293 = arith.addf %290, %292 : vector<2x256xf32>
    %cst_39 = arith.constant 0.000000e+00 : f32
    %294 = vector.broadcast %cst_39 : f32 to vector<2x256xf32>
    %295 = arith.maximumf %293, %294 : vector<2x256xf32>
    %c1 = arith.constant 1 : index
    %296 = memref.load %arg2[%c1] : memref<72xf32, #tpu.memory_space<smem>>
    %297 = vector.broadcast %296 : f32 to vector<2x256xf32>
    %298 = arith.mulf %297, %14 : vector<2x256xf32>
    %c3 = arith.constant 3 : index
    %299 = memref.load %arg2[%c3] : memref<72xf32, #tpu.memory_space<smem>>
    %300 = vector.broadcast %299 : f32 to vector<2x256xf32>
    %301 = arith.mulf %300, %17 : vector<2x256xf32>
    %302 = arith.addf %298, %301 : vector<2x256xf32>
    %c5 = arith.constant 5 : index
    %303 = memref.load %arg2[%c5] : memref<72xf32, #tpu.memory_space<smem>>
    %304 = vector.broadcast %303 : f32 to vector<2x256xf32>
    %305 = arith.mulf %304, %20 : vector<2x256xf32>
    %306 = arith.addf %302, %305 : vector<2x256xf32>
    %c7 = arith.constant 7 : index
    %307 = memref.load %arg2[%c7] : memref<72xf32, #tpu.memory_space<smem>>
    %308 = vector.broadcast %307 : f32 to vector<2x256xf32>
    %309 = arith.mulf %308, %23 : vector<2x256xf32>
    %310 = arith.addf %306, %309 : vector<2x256xf32>
    %c9 = arith.constant 9 : index
    %311 = memref.load %arg2[%c9] : memref<72xf32, #tpu.memory_space<smem>>
    %312 = vector.broadcast %311 : f32 to vector<2x256xf32>
    %313 = arith.mulf %312, %28 : vector<2x256xf32>
    %314 = arith.addf %310, %313 : vector<2x256xf32>
    %c11 = arith.constant 11 : index
    %315 = memref.load %arg2[%c11] : memref<72xf32, #tpu.memory_space<smem>>
    %316 = vector.broadcast %315 : f32 to vector<2x256xf32>
    %317 = arith.mulf %316, %31 : vector<2x256xf32>
    %318 = arith.addf %314, %317 : vector<2x256xf32>
    %c13 = arith.constant 13 : index
    %319 = memref.load %arg2[%c13] : memref<72xf32, #tpu.memory_space<smem>>
    %320 = vector.broadcast %319 : f32 to vector<2x256xf32>
    %321 = arith.mulf %320, %34 : vector<2x256xf32>
    %322 = arith.addf %318, %321 : vector<2x256xf32>
    %c15 = arith.constant 15 : index
    %323 = memref.load %arg2[%c15] : memref<72xf32, #tpu.memory_space<smem>>
    %324 = vector.broadcast %323 : f32 to vector<2x256xf32>
    %325 = arith.mulf %324, %37 : vector<2x256xf32>
    %326 = arith.addf %322, %325 : vector<2x256xf32>
    %c17 = arith.constant 17 : index
    %327 = memref.load %arg2[%c17] : memref<72xf32, #tpu.memory_space<smem>>
    %328 = vector.broadcast %327 : f32 to vector<2x256xf32>
    %329 = arith.mulf %328, %42 : vector<2x256xf32>
    %330 = arith.addf %326, %329 : vector<2x256xf32>
    %c19 = arith.constant 19 : index
    %331 = memref.load %arg2[%c19] : memref<72xf32, #tpu.memory_space<smem>>
    %332 = vector.broadcast %331 : f32 to vector<2x256xf32>
    %333 = arith.mulf %332, %45 : vector<2x256xf32>
    %334 = arith.addf %330, %333 : vector<2x256xf32>
    %c21 = arith.constant 21 : index
    %335 = memref.load %arg2[%c21] : memref<72xf32, #tpu.memory_space<smem>>
    %336 = vector.broadcast %335 : f32 to vector<2x256xf32>
    %337 = arith.mulf %336, %48 : vector<2x256xf32>
    %338 = arith.addf %334, %337 : vector<2x256xf32>
    %c23 = arith.constant 23 : index
    %339 = memref.load %arg2[%c23] : memref<72xf32, #tpu.memory_space<smem>>
    %340 = vector.broadcast %339 : f32 to vector<2x256xf32>
    %341 = arith.mulf %340, %51 : vector<2x256xf32>
    %342 = arith.addf %338, %341 : vector<2x256xf32>
    %c25 = arith.constant 25 : index
    %343 = memref.load %arg2[%c25] : memref<72xf32, #tpu.memory_space<smem>>
    %344 = vector.broadcast %343 : f32 to vector<2x256xf32>
    %345 = arith.mulf %344, %56 : vector<2x256xf32>
    %346 = arith.addf %342, %345 : vector<2x256xf32>
    %c27 = arith.constant 27 : index
    %347 = memref.load %arg2[%c27] : memref<72xf32, #tpu.memory_space<smem>>
    %348 = vector.broadcast %347 : f32 to vector<2x256xf32>
    %349 = arith.mulf %348, %59 : vector<2x256xf32>
    %350 = arith.addf %346, %349 : vector<2x256xf32>
    %c29 = arith.constant 29 : index
    %351 = memref.load %arg2[%c29] : memref<72xf32, #tpu.memory_space<smem>>
    %352 = vector.broadcast %351 : f32 to vector<2x256xf32>
    %353 = arith.mulf %352, %62 : vector<2x256xf32>
    %354 = arith.addf %350, %353 : vector<2x256xf32>
    %c31 = arith.constant 31 : index
    %355 = memref.load %arg2[%c31] : memref<72xf32, #tpu.memory_space<smem>>
    %356 = vector.broadcast %355 : f32 to vector<2x256xf32>
    %357 = arith.mulf %356, %65 : vector<2x256xf32>
    %358 = arith.addf %354, %357 : vector<2x256xf32>
    %c33 = arith.constant 33 : index
    %359 = memref.load %arg2[%c33] : memref<72xf32, #tpu.memory_space<smem>>
    %360 = vector.broadcast %359 : f32 to vector<2x256xf32>
    %361 = arith.mulf %360, %3 : vector<2x256xf32>
    %362 = arith.addf %358, %361 : vector<2x256xf32>
    %c35 = arith.constant 35 : index
    %363 = memref.load %arg2[%c35] : memref<72xf32, #tpu.memory_space<smem>>
    %364 = vector.broadcast %363 : f32 to vector<2x256xf32>
    %365 = arith.mulf %364, %5 : vector<2x256xf32>
    %366 = arith.addf %362, %365 : vector<2x256xf32>
    %c37 = arith.constant 37 : index
    %367 = memref.load %arg2[%c37] : memref<72xf32, #tpu.memory_space<smem>>
    %368 = vector.broadcast %367 : f32 to vector<2x256xf32>
    %369 = arith.mulf %368, %7 : vector<2x256xf32>
    %370 = arith.addf %366, %369 : vector<2x256xf32>
    %c39 = arith.constant 39 : index
    %371 = memref.load %arg2[%c39] : memref<72xf32, #tpu.memory_space<smem>>
    %372 = vector.broadcast %371 : f32 to vector<2x256xf32>
    %373 = arith.mulf %372, %9 : vector<2x256xf32>
    %374 = arith.addf %370, %373 : vector<2x256xf32>
    %c41 = arith.constant 41 : index
    %375 = memref.load %arg2[%c41] : memref<72xf32, #tpu.memory_space<smem>>
    %376 = vector.broadcast %375 : f32 to vector<2x256xf32>
    %377 = arith.mulf %376, %70 : vector<2x256xf32>
    %378 = arith.addf %374, %377 : vector<2x256xf32>
    %c43 = arith.constant 43 : index
    %379 = memref.load %arg2[%c43] : memref<72xf32, #tpu.memory_space<smem>>
    %380 = vector.broadcast %379 : f32 to vector<2x256xf32>
    %381 = arith.mulf %380, %73 : vector<2x256xf32>
    %382 = arith.addf %378, %381 : vector<2x256xf32>
    %c45 = arith.constant 45 : index
    %383 = memref.load %arg2[%c45] : memref<72xf32, #tpu.memory_space<smem>>
    %384 = vector.broadcast %383 : f32 to vector<2x256xf32>
    %385 = arith.mulf %384, %76 : vector<2x256xf32>
    %386 = arith.addf %382, %385 : vector<2x256xf32>
    %c47 = arith.constant 47 : index
    %387 = memref.load %arg2[%c47] : memref<72xf32, #tpu.memory_space<smem>>
    %388 = vector.broadcast %387 : f32 to vector<2x256xf32>
    %389 = arith.mulf %388, %79 : vector<2x256xf32>
    %390 = arith.addf %386, %389 : vector<2x256xf32>
    %c49 = arith.constant 49 : index
    %391 = memref.load %arg2[%c49] : memref<72xf32, #tpu.memory_space<smem>>
    %392 = vector.broadcast %391 : f32 to vector<2x256xf32>
    %393 = arith.mulf %392, %84 : vector<2x256xf32>
    %394 = arith.addf %390, %393 : vector<2x256xf32>
    %c51 = arith.constant 51 : index
    %395 = memref.load %arg2[%c51] : memref<72xf32, #tpu.memory_space<smem>>
    %396 = vector.broadcast %395 : f32 to vector<2x256xf32>
    %397 = arith.mulf %396, %87 : vector<2x256xf32>
    %398 = arith.addf %394, %397 : vector<2x256xf32>
    %c53 = arith.constant 53 : index
    %399 = memref.load %arg2[%c53] : memref<72xf32, #tpu.memory_space<smem>>
    %400 = vector.broadcast %399 : f32 to vector<2x256xf32>
    %401 = arith.mulf %400, %90 : vector<2x256xf32>
    %402 = arith.addf %398, %401 : vector<2x256xf32>
    %c55 = arith.constant 55 : index
    %403 = memref.load %arg2[%c55] : memref<72xf32, #tpu.memory_space<smem>>
    %404 = vector.broadcast %403 : f32 to vector<2x256xf32>
    %405 = arith.mulf %404, %93 : vector<2x256xf32>
    %406 = arith.addf %402, %405 : vector<2x256xf32>
    %c57 = arith.constant 57 : index
    %407 = memref.load %arg2[%c57] : memref<72xf32, #tpu.memory_space<smem>>
    %408 = vector.broadcast %407 : f32 to vector<2x256xf32>
    %409 = arith.mulf %408, %98 : vector<2x256xf32>
    %410 = arith.addf %406, %409 : vector<2x256xf32>
    %c59 = arith.constant 59 : index
    %411 = memref.load %arg2[%c59] : memref<72xf32, #tpu.memory_space<smem>>
    %412 = vector.broadcast %411 : f32 to vector<2x256xf32>
    %413 = arith.mulf %412, %101 : vector<2x256xf32>
    %414 = arith.addf %410, %413 : vector<2x256xf32>
    %c61 = arith.constant 61 : index
    %415 = memref.load %arg2[%c61] : memref<72xf32, #tpu.memory_space<smem>>
    %416 = vector.broadcast %415 : f32 to vector<2x256xf32>
    %417 = arith.mulf %416, %104 : vector<2x256xf32>
    %418 = arith.addf %414, %417 : vector<2x256xf32>
    %c63 = arith.constant 63 : index
    %419 = memref.load %arg2[%c63] : memref<72xf32, #tpu.memory_space<smem>>
    %420 = vector.broadcast %419 : f32 to vector<2x256xf32>
    %421 = arith.mulf %420, %107 : vector<2x256xf32>
    %422 = arith.addf %418, %421 : vector<2x256xf32>
    %c65 = arith.constant 65 : index
    %423 = memref.load %arg2[%c65] : memref<72xf32, #tpu.memory_space<smem>>
    %424 = vector.broadcast %423 : f32 to vector<2x256xf32>
    %425 = arith.mulf %424, %112 : vector<2x256xf32>
    %426 = arith.addf %422, %425 : vector<2x256xf32>
    %c67 = arith.constant 67 : index
    %427 = memref.load %arg2[%c67] : memref<72xf32, #tpu.memory_space<smem>>
    %428 = vector.broadcast %427 : f32 to vector<2x256xf32>
    %429 = arith.mulf %428, %115 : vector<2x256xf32>
    %430 = arith.addf %426, %429 : vector<2x256xf32>
    %c69 = arith.constant 69 : index
    %431 = memref.load %arg2[%c69] : memref<72xf32, #tpu.memory_space<smem>>
    %432 = vector.broadcast %431 : f32 to vector<2x256xf32>
    %433 = arith.mulf %432, %118 : vector<2x256xf32>
    %434 = arith.addf %430, %433 : vector<2x256xf32>
    %c71 = arith.constant 71 : index
    %435 = memref.load %arg2[%c71] : memref<72xf32, #tpu.memory_space<smem>>
    %436 = vector.broadcast %435 : f32 to vector<2x256xf32>
    %437 = arith.mulf %436, %121 : vector<2x256xf32>
    %438 = arith.addf %434, %437 : vector<2x256xf32>
    %c1_40 = arith.constant 1 : index
    %439 = memref.load %arg3[%c1_40] : memref<2xf32, #tpu.memory_space<smem>>
    %440 = vector.broadcast %439 : f32 to vector<2x256xf32>
    %441 = arith.addf %438, %440 : vector<2x256xf32>
    %cst_41 = arith.constant dense<0.000000e+00> : vector<2xf32>
    %442 = vector.multi_reduction <add>, %441, %cst_41 [1] : vector<2x256xf32> to vector<2xf32>
    %443 = vector.shape_cast %442 : vector<2xf32> to vector<2x1xf32>
    %cst_42 = arith.constant dense<0.000000e+00> : vector<1xf32>
    %444 = vector.multi_reduction <add>, %443, %cst_42 [0] : vector<2x1xf32> to vector<1xf32>
    %445 = vector.shape_cast %444 : vector<1xf32> to vector<1x1xf32>
    %cst_43 = arith.constant 0.001953125 : f32
    %446 = vector.broadcast %cst_43 : f32 to vector<1x1xf32>
    %447 = arith.mulf %445, %446 : vector<1x1xf32>
    %448 = vector.broadcast %447 : vector<1x1xf32> to vector<2x256xf32>
    %449 = arith.subf %441, %448 : vector<2x256xf32>
    %450 = arith.mulf %449, %449 : vector<2x256xf32>
    %cst_44 = arith.constant dense<0.000000e+00> : vector<2xf32>
    %451 = vector.multi_reduction <add>, %450, %cst_44 [1] : vector<2x256xf32> to vector<2xf32>
    %452 = vector.shape_cast %451 : vector<2xf32> to vector<2x1xf32>
    %cst_45 = arith.constant dense<0.000000e+00> : vector<1xf32>
    %453 = vector.multi_reduction <add>, %452, %cst_45 [0] : vector<2x1xf32> to vector<1xf32>
    %454 = vector.shape_cast %453 : vector<1xf32> to vector<1x1xf32>
    %cst_46 = arith.constant 0.001953125 : f32
    %455 = vector.broadcast %cst_46 : f32 to vector<1x1xf32>
    %456 = arith.mulf %454, %455 : vector<1x1xf32>
    %c1_47 = arith.constant 1 : index
    %457 = memref.load %arg4[%c1_47] : memref<2xf32, #tpu.memory_space<smem>>
    %cst_48 = arith.constant 9.99999974E-6 : f32
    %458 = vector.broadcast %cst_48 : f32 to vector<1x1xf32>
    %459 = arith.addf %456, %458 : vector<1x1xf32>
    %460 = math.rsqrt %459 : vector<1x1xf32>
    %461 = vector.broadcast %457 : f32 to vector<1x1xf32>
    %462 = arith.mulf %461, %460 : vector<1x1xf32>
    %463 = vector.broadcast %462 : vector<1x1xf32> to vector<2x256xf32>
    %464 = arith.mulf %449, %463 : vector<2x256xf32>
    %c1_49 = arith.constant 1 : index
    %465 = memref.load %arg5[%c1_49] : memref<2xf32, #tpu.memory_space<smem>>
    %466 = vector.broadcast %465 : f32 to vector<2x256xf32>
    %467 = arith.addf %464, %466 : vector<2x256xf32>
    %cst_50 = arith.constant 0.000000e+00 : f32
    %468 = vector.broadcast %cst_50 : f32 to vector<2x256xf32>
    %469 = arith.maximumf %467, %468 : vector<2x256xf32>
    %470 = vector.extract_strided_slice %0 {offsets = [0, 0, 0], sizes = [1, 1, 256], strides = [1, 1, 1]} : vector<9x1x256xf32> to vector<1x1x256xf32>
    %471 = vector.shape_cast %470 : vector<1x1x256xf32> to vector<1x256xf32>
    %c17_i32_51 = arith.constant 17 : i32
    %472 = tpu.dynamic_rotate %295 by %c17_i32_51 dim 1 : vector<2x256xf32>, i32 -> vector<2x256xf32>
    %473 = vector.broadcast %471 : vector<1x256xf32> to vector<2x256xf32>
    %474 = arith.mulf %472, %473 : vector<2x256xf32>
    %c17_i32_52 = arith.constant 17 : i32
    %475 = tpu.dynamic_rotate %469 by %c17_i32_52 dim 1 : vector<2x256xf32>, i32 -> vector<2x256xf32>
    %476 = vector.broadcast %471 : vector<1x256xf32> to vector<2x256xf32>
    %477 = arith.mulf %475, %476 : vector<2x256xf32>
    %478 = vector.extract_strided_slice %0 {offsets = [1, 0, 0], sizes = [1, 1, 256], strides = [1, 1, 1]} : vector<9x1x256xf32> to vector<1x1x256xf32>
    %479 = vector.shape_cast %478 : vector<1x1x256xf32> to vector<1x256xf32>
    %c16_i32_53 = arith.constant 16 : i32
    %480 = tpu.dynamic_rotate %295 by %c16_i32_53 dim 1 : vector<2x256xf32>, i32 -> vector<2x256xf32>
    %481 = vector.broadcast %479 : vector<1x256xf32> to vector<2x256xf32>
    %482 = arith.mulf %480, %481 : vector<2x256xf32>
    %c16_i32_54 = arith.constant 16 : i32
    %483 = tpu.dynamic_rotate %469 by %c16_i32_54 dim 1 : vector<2x256xf32>, i32 -> vector<2x256xf32>
    %484 = vector.broadcast %479 : vector<1x256xf32> to vector<2x256xf32>
    %485 = arith.mulf %483, %484 : vector<2x256xf32>
    %486 = vector.extract_strided_slice %0 {offsets = [2, 0, 0], sizes = [1, 1, 256], strides = [1, 1, 1]} : vector<9x1x256xf32> to vector<1x1x256xf32>
    %487 = vector.shape_cast %486 : vector<1x1x256xf32> to vector<1x256xf32>
    %c15_i32_55 = arith.constant 15 : i32
    %488 = tpu.dynamic_rotate %295 by %c15_i32_55 dim 1 : vector<2x256xf32>, i32 -> vector<2x256xf32>
    %489 = vector.broadcast %487 : vector<1x256xf32> to vector<2x256xf32>
    %490 = arith.mulf %488, %489 : vector<2x256xf32>
    %c15_i32_56 = arith.constant 15 : i32
    %491 = tpu.dynamic_rotate %469 by %c15_i32_56 dim 1 : vector<2x256xf32>, i32 -> vector<2x256xf32>
    %492 = vector.broadcast %487 : vector<1x256xf32> to vector<2x256xf32>
    %493 = arith.mulf %491, %492 : vector<2x256xf32>
    %494 = vector.extract_strided_slice %0 {offsets = [3, 0, 0], sizes = [1, 1, 256], strides = [1, 1, 1]} : vector<9x1x256xf32> to vector<1x1x256xf32>
    %495 = vector.shape_cast %494 : vector<1x1x256xf32> to vector<1x256xf32>
    %c1_i32_57 = arith.constant 1 : i32
    %496 = tpu.dynamic_rotate %295 by %c1_i32_57 dim 1 : vector<2x256xf32>, i32 -> vector<2x256xf32>
    %497 = vector.broadcast %495 : vector<1x256xf32> to vector<2x256xf32>
    %498 = arith.mulf %496, %497 : vector<2x256xf32>
    %c1_i32_58 = arith.constant 1 : i32
    %499 = tpu.dynamic_rotate %469 by %c1_i32_58 dim 1 : vector<2x256xf32>, i32 -> vector<2x256xf32>
    %500 = vector.broadcast %495 : vector<1x256xf32> to vector<2x256xf32>
    %501 = arith.mulf %499, %500 : vector<2x256xf32>
    %502 = vector.extract_strided_slice %0 {offsets = [5, 0, 0], sizes = [1, 1, 256], strides = [1, 1, 1]} : vector<9x1x256xf32> to vector<1x1x256xf32>
    %503 = vector.shape_cast %502 : vector<1x1x256xf32> to vector<1x256xf32>
    %c255_i32_59 = arith.constant 255 : i32
    %504 = tpu.dynamic_rotate %295 by %c255_i32_59 dim 1 : vector<2x256xf32>, i32 -> vector<2x256xf32>
    %505 = vector.broadcast %503 : vector<1x256xf32> to vector<2x256xf32>
    %506 = arith.mulf %504, %505 : vector<2x256xf32>
    %c255_i32_60 = arith.constant 255 : i32
    %507 = tpu.dynamic_rotate %469 by %c255_i32_60 dim 1 : vector<2x256xf32>, i32 -> vector<2x256xf32>
    %508 = vector.broadcast %503 : vector<1x256xf32> to vector<2x256xf32>
    %509 = arith.mulf %507, %508 : vector<2x256xf32>
    %510 = vector.extract_strided_slice %0 {offsets = [6, 0, 0], sizes = [1, 1, 256], strides = [1, 1, 1]} : vector<9x1x256xf32> to vector<1x1x256xf32>
    %511 = vector.shape_cast %510 : vector<1x1x256xf32> to vector<1x256xf32>
    %c241_i32_61 = arith.constant 241 : i32
    %512 = tpu.dynamic_rotate %295 by %c241_i32_61 dim 1 : vector<2x256xf32>, i32 -> vector<2x256xf32>
    %513 = vector.broadcast %511 : vector<1x256xf32> to vector<2x256xf32>
    %514 = arith.mulf %512, %513 : vector<2x256xf32>
    %c241_i32_62 = arith.constant 241 : i32
    %515 = tpu.dynamic_rotate %469 by %c241_i32_62 dim 1 : vector<2x256xf32>, i32 -> vector<2x256xf32>
    %516 = vector.broadcast %511 : vector<1x256xf32> to vector<2x256xf32>
    %517 = arith.mulf %515, %516 : vector<2x256xf32>
    %518 = vector.extract_strided_slice %0 {offsets = [7, 0, 0], sizes = [1, 1, 256], strides = [1, 1, 1]} : vector<9x1x256xf32> to vector<1x1x256xf32>
    %519 = vector.shape_cast %518 : vector<1x1x256xf32> to vector<1x256xf32>
    %c240_i32_63 = arith.constant 240 : i32
    %520 = tpu.dynamic_rotate %295 by %c240_i32_63 dim 1 : vector<2x256xf32>, i32 -> vector<2x256xf32>
    %521 = vector.broadcast %519 : vector<1x256xf32> to vector<2x256xf32>
    %522 = arith.mulf %520, %521 : vector<2x256xf32>
    %c240_i32_64 = arith.constant 240 : i32
    %523 = tpu.dynamic_rotate %469 by %c240_i32_64 dim 1 : vector<2x256xf32>, i32 -> vector<2x256xf32>
    %524 = vector.broadcast %519 : vector<1x256xf32> to vector<2x256xf32>
    %525 = arith.mulf %523, %524 : vector<2x256xf32>
    %526 = vector.extract_strided_slice %0 {offsets = [8, 0, 0], sizes = [1, 1, 256], strides = [1, 1, 1]} : vector<9x1x256xf32> to vector<1x1x256xf32>
    %527 = vector.shape_cast %526 : vector<1x1x256xf32> to vector<1x256xf32>
    %c239_i32_65 = arith.constant 239 : i32
    %528 = tpu.dynamic_rotate %295 by %c239_i32_65 dim 1 : vector<2x256xf32>, i32 -> vector<2x256xf32>
    %529 = vector.broadcast %527 : vector<1x256xf32> to vector<2x256xf32>
    %530 = arith.mulf %528, %529 : vector<2x256xf32>
    %c239_i32_66 = arith.constant 239 : i32
    %531 = tpu.dynamic_rotate %469 by %c239_i32_66 dim 1 : vector<2x256xf32>, i32 -> vector<2x256xf32>
    %532 = vector.broadcast %527 : vector<1x256xf32> to vector<2x256xf32>
    %533 = arith.mulf %531, %532 : vector<2x256xf32>
    %c0_67 = arith.constant 0 : index
    %534 = memref.load %arg6[%c0_67] : memref<36xf32, #tpu.memory_space<smem>>
    %535 = vector.broadcast %534 : f32 to vector<2x256xf32>
    %536 = arith.mulf %535, %474 : vector<2x256xf32>
    %c2_68 = arith.constant 2 : index
    %537 = memref.load %arg6[%c2_68] : memref<36xf32, #tpu.memory_space<smem>>
    %538 = vector.broadcast %537 : f32 to vector<2x256xf32>
    %539 = arith.mulf %538, %477 : vector<2x256xf32>
    %540 = arith.addf %536, %539 : vector<2x256xf32>
    %c4_69 = arith.constant 4 : index
    %541 = memref.load %arg6[%c4_69] : memref<36xf32, #tpu.memory_space<smem>>
    %542 = vector.broadcast %541 : f32 to vector<2x256xf32>
    %543 = arith.mulf %542, %482 : vector<2x256xf32>
    %544 = arith.addf %540, %543 : vector<2x256xf32>
    %c6_70 = arith.constant 6 : index
    %545 = memref.load %arg6[%c6_70] : memref<36xf32, #tpu.memory_space<smem>>
    %546 = vector.broadcast %545 : f32 to vector<2x256xf32>
    %547 = arith.mulf %546, %485 : vector<2x256xf32>
    %548 = arith.addf %544, %547 : vector<2x256xf32>
    %c8_71 = arith.constant 8 : index
    %549 = memref.load %arg6[%c8_71] : memref<36xf32, #tpu.memory_space<smem>>
    %550 = vector.broadcast %549 : f32 to vector<2x256xf32>
    %551 = arith.mulf %550, %490 : vector<2x256xf32>
    %552 = arith.addf %548, %551 : vector<2x256xf32>
    %c10_72 = arith.constant 10 : index
    %553 = memref.load %arg6[%c10_72] : memref<36xf32, #tpu.memory_space<smem>>
    %554 = vector.broadcast %553 : f32 to vector<2x256xf32>
    %555 = arith.mulf %554, %493 : vector<2x256xf32>
    %556 = arith.addf %552, %555 : vector<2x256xf32>
    %c12_73 = arith.constant 12 : index
    %557 = memref.load %arg6[%c12_73] : memref<36xf32, #tpu.memory_space<smem>>
    %558 = vector.broadcast %557 : f32 to vector<2x256xf32>
    %559 = arith.mulf %558, %498 : vector<2x256xf32>
    %560 = arith.addf %556, %559 : vector<2x256xf32>
    %c14_74 = arith.constant 14 : index
    %561 = memref.load %arg6[%c14_74] : memref<36xf32, #tpu.memory_space<smem>>
    %562 = vector.broadcast %561 : f32 to vector<2x256xf32>
    %563 = arith.mulf %562, %501 : vector<2x256xf32>
    %564 = arith.addf %560, %563 : vector<2x256xf32>
    %c16_75 = arith.constant 16 : index
    %565 = memref.load %arg6[%c16_75] : memref<36xf32, #tpu.memory_space<smem>>
    %566 = vector.broadcast %565 : f32 to vector<2x256xf32>
    %567 = arith.mulf %566, %295 : vector<2x256xf32>
    %568 = arith.addf %564, %567 : vector<2x256xf32>
    %c18_76 = arith.constant 18 : index
    %569 = memref.load %arg6[%c18_76] : memref<36xf32, #tpu.memory_space<smem>>
    %570 = vector.broadcast %569 : f32 to vector<2x256xf32>
    %571 = arith.mulf %570, %469 : vector<2x256xf32>
    %572 = arith.addf %568, %571 : vector<2x256xf32>
    %c20_77 = arith.constant 20 : index
    %573 = memref.load %arg6[%c20_77] : memref<36xf32, #tpu.memory_space<smem>>
    %574 = vector.broadcast %573 : f32 to vector<2x256xf32>
    %575 = arith.mulf %574, %506 : vector<2x256xf32>
    %576 = arith.addf %572, %575 : vector<2x256xf32>
    %c22_78 = arith.constant 22 : index
    %577 = memref.load %arg6[%c22_78] : memref<36xf32, #tpu.memory_space<smem>>
    %578 = vector.broadcast %577 : f32 to vector<2x256xf32>
    %579 = arith.mulf %578, %509 : vector<2x256xf32>
    %580 = arith.addf %576, %579 : vector<2x256xf32>
    %c24_79 = arith.constant 24 : index
    %581 = memref.load %arg6[%c24_79] : memref<36xf32, #tpu.memory_space<smem>>
    %582 = vector.broadcast %581 : f32 to vector<2x256xf32>
    %583 = arith.mulf %582, %514 : vector<2x256xf32>
    %584 = arith.addf %580, %583 : vector<2x256xf32>
    %c26_80 = arith.constant 26 : index
    %585 = memref.load %arg6[%c26_80] : memref<36xf32, #tpu.memory_space<smem>>
    %586 = vector.broadcast %585 : f32 to vector<2x256xf32>
    %587 = arith.mulf %586, %517 : vector<2x256xf32>
    %588 = arith.addf %584, %587 : vector<2x256xf32>
    %c28_81 = arith.constant 28 : index
    %589 = memref.load %arg6[%c28_81] : memref<36xf32, #tpu.memory_space<smem>>
    %590 = vector.broadcast %589 : f32 to vector<2x256xf32>
    %591 = arith.mulf %590, %522 : vector<2x256xf32>
    %592 = arith.addf %588, %591 : vector<2x256xf32>
    %c30_82 = arith.constant 30 : index
    %593 = memref.load %arg6[%c30_82] : memref<36xf32, #tpu.memory_space<smem>>
    %594 = vector.broadcast %593 : f32 to vector<2x256xf32>
    %595 = arith.mulf %594, %525 : vector<2x256xf32>
    %596 = arith.addf %592, %595 : vector<2x256xf32>
    %c32_83 = arith.constant 32 : index
    %597 = memref.load %arg6[%c32_83] : memref<36xf32, #tpu.memory_space<smem>>
    %598 = vector.broadcast %597 : f32 to vector<2x256xf32>
    %599 = arith.mulf %598, %530 : vector<2x256xf32>
    %600 = arith.addf %596, %599 : vector<2x256xf32>
    %c34_84 = arith.constant 34 : index
    %601 = memref.load %arg6[%c34_84] : memref<36xf32, #tpu.memory_space<smem>>
    %602 = vector.broadcast %601 : f32 to vector<2x256xf32>
    %603 = arith.mulf %602, %533 : vector<2x256xf32>
    %604 = arith.addf %600, %603 : vector<2x256xf32>
    %c0_85 = arith.constant 0 : index
    %605 = memref.load %arg7[%c0_85] : memref<2xf32, #tpu.memory_space<smem>>
    %606 = vector.broadcast %605 : f32 to vector<2x256xf32>
    %607 = arith.addf %604, %606 : vector<2x256xf32>
    %cst_86 = arith.constant dense<0.000000e+00> : vector<2xf32>
    %608 = vector.multi_reduction <add>, %607, %cst_86 [1] : vector<2x256xf32> to vector<2xf32>
    %609 = vector.shape_cast %608 : vector<2xf32> to vector<2x1xf32>
    %cst_87 = arith.constant dense<0.000000e+00> : vector<1xf32>
    %610 = vector.multi_reduction <add>, %609, %cst_87 [0] : vector<2x1xf32> to vector<1xf32>
    %611 = vector.shape_cast %610 : vector<1xf32> to vector<1x1xf32>
    %cst_88 = arith.constant 0.001953125 : f32
    %612 = vector.broadcast %cst_88 : f32 to vector<1x1xf32>
    %613 = arith.mulf %611, %612 : vector<1x1xf32>
    %614 = vector.broadcast %613 : vector<1x1xf32> to vector<2x256xf32>
    %615 = arith.subf %607, %614 : vector<2x256xf32>
    %616 = arith.mulf %615, %615 : vector<2x256xf32>
    %cst_89 = arith.constant dense<0.000000e+00> : vector<2xf32>
    %617 = vector.multi_reduction <add>, %616, %cst_89 [1] : vector<2x256xf32> to vector<2xf32>
    %618 = vector.shape_cast %617 : vector<2xf32> to vector<2x1xf32>
    %cst_90 = arith.constant dense<0.000000e+00> : vector<1xf32>
    %619 = vector.multi_reduction <add>, %618, %cst_90 [0] : vector<2x1xf32> to vector<1xf32>
    %620 = vector.shape_cast %619 : vector<1xf32> to vector<1x1xf32>
    %cst_91 = arith.constant 0.001953125 : f32
    %621 = vector.broadcast %cst_91 : f32 to vector<1x1xf32>
    %622 = arith.mulf %620, %621 : vector<1x1xf32>
    %c0_92 = arith.constant 0 : index
    %623 = memref.load %arg8[%c0_92] : memref<2xf32, #tpu.memory_space<smem>>
    %cst_93 = arith.constant 9.99999974E-6 : f32
    %624 = vector.broadcast %cst_93 : f32 to vector<1x1xf32>
    %625 = arith.addf %622, %624 : vector<1x1xf32>
    %626 = math.rsqrt %625 : vector<1x1xf32>
    %627 = vector.broadcast %623 : f32 to vector<1x1xf32>
    %628 = arith.mulf %627, %626 : vector<1x1xf32>
    %629 = vector.broadcast %628 : vector<1x1xf32> to vector<2x256xf32>
    %630 = arith.mulf %615, %629 : vector<2x256xf32>
    %c0_94 = arith.constant 0 : index
    %631 = memref.load %arg9[%c0_94] : memref<2xf32, #tpu.memory_space<smem>>
    %632 = vector.broadcast %631 : f32 to vector<2x256xf32>
    %633 = arith.addf %630, %632 : vector<2x256xf32>
    %cst_95 = arith.constant 0.000000e+00 : f32
    %634 = vector.broadcast %cst_95 : f32 to vector<2x256xf32>
    %635 = arith.maximumf %633, %634 : vector<2x256xf32>
    %c1_96 = arith.constant 1 : index
    %636 = memref.load %arg6[%c1_96] : memref<36xf32, #tpu.memory_space<smem>>
    %637 = vector.broadcast %636 : f32 to vector<2x256xf32>
    %638 = arith.mulf %637, %474 : vector<2x256xf32>
    %c3_97 = arith.constant 3 : index
    %639 = memref.load %arg6[%c3_97] : memref<36xf32, #tpu.memory_space<smem>>
    %640 = vector.broadcast %639 : f32 to vector<2x256xf32>
    %641 = arith.mulf %640, %477 : vector<2x256xf32>
    %642 = arith.addf %638, %641 : vector<2x256xf32>
    %c5_98 = arith.constant 5 : index
    %643 = memref.load %arg6[%c5_98] : memref<36xf32, #tpu.memory_space<smem>>
    %644 = vector.broadcast %643 : f32 to vector<2x256xf32>
    %645 = arith.mulf %644, %482 : vector<2x256xf32>
    %646 = arith.addf %642, %645 : vector<2x256xf32>
    %c7_99 = arith.constant 7 : index
    %647 = memref.load %arg6[%c7_99] : memref<36xf32, #tpu.memory_space<smem>>
    %648 = vector.broadcast %647 : f32 to vector<2x256xf32>
    %649 = arith.mulf %648, %485 : vector<2x256xf32>
    %650 = arith.addf %646, %649 : vector<2x256xf32>
    %c9_100 = arith.constant 9 : index
    %651 = memref.load %arg6[%c9_100] : memref<36xf32, #tpu.memory_space<smem>>
    %652 = vector.broadcast %651 : f32 to vector<2x256xf32>
    %653 = arith.mulf %652, %490 : vector<2x256xf32>
    %654 = arith.addf %650, %653 : vector<2x256xf32>
    %c11_101 = arith.constant 11 : index
    %655 = memref.load %arg6[%c11_101] : memref<36xf32, #tpu.memory_space<smem>>
    %656 = vector.broadcast %655 : f32 to vector<2x256xf32>
    %657 = arith.mulf %656, %493 : vector<2x256xf32>
    %658 = arith.addf %654, %657 : vector<2x256xf32>
    %c13_102 = arith.constant 13 : index
    %659 = memref.load %arg6[%c13_102] : memref<36xf32, #tpu.memory_space<smem>>
    %660 = vector.broadcast %659 : f32 to vector<2x256xf32>
    %661 = arith.mulf %660, %498 : vector<2x256xf32>
    %662 = arith.addf %658, %661 : vector<2x256xf32>
    %c15_103 = arith.constant 15 : index
    %663 = memref.load %arg6[%c15_103] : memref<36xf32, #tpu.memory_space<smem>>
    %664 = vector.broadcast %663 : f32 to vector<2x256xf32>
    %665 = arith.mulf %664, %501 : vector<2x256xf32>
    %666 = arith.addf %662, %665 : vector<2x256xf32>
    %c17_104 = arith.constant 17 : index
    %667 = memref.load %arg6[%c17_104] : memref<36xf32, #tpu.memory_space<smem>>
    %668 = vector.broadcast %667 : f32 to vector<2x256xf32>
    %669 = arith.mulf %668, %295 : vector<2x256xf32>
    %670 = arith.addf %666, %669 : vector<2x256xf32>
    %c19_105 = arith.constant 19 : index
    %671 = memref.load %arg6[%c19_105] : memref<36xf32, #tpu.memory_space<smem>>
    %672 = vector.broadcast %671 : f32 to vector<2x256xf32>
    %673 = arith.mulf %672, %469 : vector<2x256xf32>
    %674 = arith.addf %670, %673 : vector<2x256xf32>
    %c21_106 = arith.constant 21 : index
    %675 = memref.load %arg6[%c21_106] : memref<36xf32, #tpu.memory_space<smem>>
    %676 = vector.broadcast %675 : f32 to vector<2x256xf32>
    %677 = arith.mulf %676, %506 : vector<2x256xf32>
    %678 = arith.addf %674, %677 : vector<2x256xf32>
    %c23_107 = arith.constant 23 : index
    %679 = memref.load %arg6[%c23_107] : memref<36xf32, #tpu.memory_space<smem>>
    %680 = vector.broadcast %679 : f32 to vector<2x256xf32>
    %681 = arith.mulf %680, %509 : vector<2x256xf32>
    %682 = arith.addf %678, %681 : vector<2x256xf32>
    %c25_108 = arith.constant 25 : index
    %683 = memref.load %arg6[%c25_108] : memref<36xf32, #tpu.memory_space<smem>>
    %684 = vector.broadcast %683 : f32 to vector<2x256xf32>
    %685 = arith.mulf %684, %514 : vector<2x256xf32>
    %686 = arith.addf %682, %685 : vector<2x256xf32>
    %c27_109 = arith.constant 27 : index
    %687 = memref.load %arg6[%c27_109] : memref<36xf32, #tpu.memory_space<smem>>
    %688 = vector.broadcast %687 : f32 to vector<2x256xf32>
    %689 = arith.mulf %688, %517 : vector<2x256xf32>
    %690 = arith.addf %686, %689 : vector<2x256xf32>
    %c29_110 = arith.constant 29 : index
    %691 = memref.load %arg6[%c29_110] : memref<36xf32, #tpu.memory_space<smem>>
    %692 = vector.broadcast %691 : f32 to vector<2x256xf32>
    %693 = arith.mulf %692, %522 : vector<2x256xf32>
    %694 = arith.addf %690, %693 : vector<2x256xf32>
    %c31_111 = arith.constant 31 : index
    %695 = memref.load %arg6[%c31_111] : memref<36xf32, #tpu.memory_space<smem>>
    %696 = vector.broadcast %695 : f32 to vector<2x256xf32>
    %697 = arith.mulf %696, %525 : vector<2x256xf32>
    %698 = arith.addf %694, %697 : vector<2x256xf32>
    %c33_112 = arith.constant 33 : index
    %699 = memref.load %arg6[%c33_112] : memref<36xf32, #tpu.memory_space<smem>>
    %700 = vector.broadcast %699 : f32 to vector<2x256xf32>
    %701 = arith.mulf %700, %530 : vector<2x256xf32>
    %702 = arith.addf %698, %701 : vector<2x256xf32>
    %c35_113 = arith.constant 35 : index
    %703 = memref.load %arg6[%c35_113] : memref<36xf32, #tpu.memory_space<smem>>
    %704 = vector.broadcast %703 : f32 to vector<2x256xf32>
    %705 = arith.mulf %704, %533 : vector<2x256xf32>
    %706 = arith.addf %702, %705 : vector<2x256xf32>
    %c1_114 = arith.constant 1 : index
    %707 = memref.load %arg7[%c1_114] : memref<2xf32, #tpu.memory_space<smem>>
    %708 = vector.broadcast %707 : f32 to vector<2x256xf32>
    %709 = arith.addf %706, %708 : vector<2x256xf32>
    %cst_115 = arith.constant dense<0.000000e+00> : vector<2xf32>
    %710 = vector.multi_reduction <add>, %709, %cst_115 [1] : vector<2x256xf32> to vector<2xf32>
    %711 = vector.shape_cast %710 : vector<2xf32> to vector<2x1xf32>
    %cst_116 = arith.constant dense<0.000000e+00> : vector<1xf32>
    %712 = vector.multi_reduction <add>, %711, %cst_116 [0] : vector<2x1xf32> to vector<1xf32>
    %713 = vector.shape_cast %712 : vector<1xf32> to vector<1x1xf32>
    %cst_117 = arith.constant 0.001953125 : f32
    %714 = vector.broadcast %cst_117 : f32 to vector<1x1xf32>
    %715 = arith.mulf %713, %714 : vector<1x1xf32>
    %716 = vector.broadcast %715 : vector<1x1xf32> to vector<2x256xf32>
    %717 = arith.subf %709, %716 : vector<2x256xf32>
    %718 = arith.mulf %717, %717 : vector<2x256xf32>
    %cst_118 = arith.constant dense<0.000000e+00> : vector<2xf32>
    %719 = vector.multi_reduction <add>, %718, %cst_118 [1] : vector<2x256xf32> to vector<2xf32>
    %720 = vector.shape_cast %719 : vector<2xf32> to vector<2x1xf32>
    %cst_119 = arith.constant dense<0.000000e+00> : vector<1xf32>
    %721 = vector.multi_reduction <add>, %720, %cst_119 [0] : vector<2x1xf32> to vector<1xf32>
    %722 = vector.shape_cast %721 : vector<1xf32> to vector<1x1xf32>
    %cst_120 = arith.constant 0.001953125 : f32
    %723 = vector.broadcast %cst_120 : f32 to vector<1x1xf32>
    %724 = arith.mulf %722, %723 : vector<1x1xf32>
    %c1_121 = arith.constant 1 : index
    %725 = memref.load %arg8[%c1_121] : memref<2xf32, #tpu.memory_space<smem>>
    %cst_122 = arith.constant 9.99999974E-6 : f32
    %726 = vector.broadcast %cst_122 : f32 to vector<1x1xf32>
    %727 = arith.addf %724, %726 : vector<1x1xf32>
    %728 = math.rsqrt %727 : vector<1x1xf32>
    %729 = vector.broadcast %725 : f32 to vector<1x1xf32>
    %730 = arith.mulf %729, %728 : vector<1x1xf32>
    %731 = vector.broadcast %730 : vector<1x1xf32> to vector<2x256xf32>
    %732 = arith.mulf %717, %731 : vector<2x256xf32>
    %c1_123 = arith.constant 1 : index
    %733 = memref.load %arg9[%c1_123] : memref<2xf32, #tpu.memory_space<smem>>
    %734 = vector.broadcast %733 : f32 to vector<2x256xf32>
    %735 = arith.addf %732, %734 : vector<2x256xf32>
    %cst_124 = arith.constant 0.000000e+00 : f32
    %736 = vector.broadcast %cst_124 : f32 to vector<2x256xf32>
    %737 = arith.maximumf %735, %736 : vector<2x256xf32>
    %738 = vector.extract_strided_slice %0 {offsets = [0, 0, 0], sizes = [1, 1, 256], strides = [1, 1, 1]} : vector<9x1x256xf32> to vector<1x1x256xf32>
    %739 = vector.shape_cast %738 : vector<1x1x256xf32> to vector<1x256xf32>
    %c17_i32_125 = arith.constant 17 : i32
    %740 = tpu.dynamic_rotate %635 by %c17_i32_125 dim 1 : vector<2x256xf32>, i32 -> vector<2x256xf32>
    %741 = vector.broadcast %739 : vector<1x256xf32> to vector<2x256xf32>
    %742 = arith.mulf %740, %741 : vector<2x256xf32>
    %c17_i32_126 = arith.constant 17 : i32
    %743 = tpu.dynamic_rotate %737 by %c17_i32_126 dim 1 : vector<2x256xf32>, i32 -> vector<2x256xf32>
    %744 = vector.broadcast %739 : vector<1x256xf32> to vector<2x256xf32>
    %745 = arith.mulf %743, %744 : vector<2x256xf32>
    %746 = vector.extract_strided_slice %0 {offsets = [1, 0, 0], sizes = [1, 1, 256], strides = [1, 1, 1]} : vector<9x1x256xf32> to vector<1x1x256xf32>
    %747 = vector.shape_cast %746 : vector<1x1x256xf32> to vector<1x256xf32>
    %c16_i32_127 = arith.constant 16 : i32
    %748 = tpu.dynamic_rotate %635 by %c16_i32_127 dim 1 : vector<2x256xf32>, i32 -> vector<2x256xf32>
    %749 = vector.broadcast %747 : vector<1x256xf32> to vector<2x256xf32>
    %750 = arith.mulf %748, %749 : vector<2x256xf32>
    %c16_i32_128 = arith.constant 16 : i32
    %751 = tpu.dynamic_rotate %737 by %c16_i32_128 dim 1 : vector<2x256xf32>, i32 -> vector<2x256xf32>
    %752 = vector.broadcast %747 : vector<1x256xf32> to vector<2x256xf32>
    %753 = arith.mulf %751, %752 : vector<2x256xf32>
    %754 = vector.extract_strided_slice %0 {offsets = [2, 0, 0], sizes = [1, 1, 256], strides = [1, 1, 1]} : vector<9x1x256xf32> to vector<1x1x256xf32>
    %755 = vector.shape_cast %754 : vector<1x1x256xf32> to vector<1x256xf32>
    %c15_i32_129 = arith.constant 15 : i32
    %756 = tpu.dynamic_rotate %635 by %c15_i32_129 dim 1 : vector<2x256xf32>, i32 -> vector<2x256xf32>
    %757 = vector.broadcast %755 : vector<1x256xf32> to vector<2x256xf32>
    %758 = arith.mulf %756, %757 : vector<2x256xf32>
    %c15_i32_130 = arith.constant 15 : i32
    %759 = tpu.dynamic_rotate %737 by %c15_i32_130 dim 1 : vector<2x256xf32>, i32 -> vector<2x256xf32>
    %760 = vector.broadcast %755 : vector<1x256xf32> to vector<2x256xf32>
    %761 = arith.mulf %759, %760 : vector<2x256xf32>
    %762 = vector.extract_strided_slice %0 {offsets = [3, 0, 0], sizes = [1, 1, 256], strides = [1, 1, 1]} : vector<9x1x256xf32> to vector<1x1x256xf32>
    %763 = vector.shape_cast %762 : vector<1x1x256xf32> to vector<1x256xf32>
    %c1_i32_131 = arith.constant 1 : i32
    %764 = tpu.dynamic_rotate %635 by %c1_i32_131 dim 1 : vector<2x256xf32>, i32 -> vector<2x256xf32>
    %765 = vector.broadcast %763 : vector<1x256xf32> to vector<2x256xf32>
    %766 = arith.mulf %764, %765 : vector<2x256xf32>
    %c1_i32_132 = arith.constant 1 : i32
    %767 = tpu.dynamic_rotate %737 by %c1_i32_132 dim 1 : vector<2x256xf32>, i32 -> vector<2x256xf32>
    %768 = vector.broadcast %763 : vector<1x256xf32> to vector<2x256xf32>
    %769 = arith.mulf %767, %768 : vector<2x256xf32>
    %770 = vector.extract_strided_slice %0 {offsets = [5, 0, 0], sizes = [1, 1, 256], strides = [1, 1, 1]} : vector<9x1x256xf32> to vector<1x1x256xf32>
    %771 = vector.shape_cast %770 : vector<1x1x256xf32> to vector<1x256xf32>
    %c255_i32_133 = arith.constant 255 : i32
    %772 = tpu.dynamic_rotate %635 by %c255_i32_133 dim 1 : vector<2x256xf32>, i32 -> vector<2x256xf32>
    %773 = vector.broadcast %771 : vector<1x256xf32> to vector<2x256xf32>
    %774 = arith.mulf %772, %773 : vector<2x256xf32>
    %c255_i32_134 = arith.constant 255 : i32
    %775 = tpu.dynamic_rotate %737 by %c255_i32_134 dim 1 : vector<2x256xf32>, i32 -> vector<2x256xf32>
    %776 = vector.broadcast %771 : vector<1x256xf32> to vector<2x256xf32>
    %777 = arith.mulf %775, %776 : vector<2x256xf32>
    %778 = vector.extract_strided_slice %0 {offsets = [6, 0, 0], sizes = [1, 1, 256], strides = [1, 1, 1]} : vector<9x1x256xf32> to vector<1x1x256xf32>
    %779 = vector.shape_cast %778 : vector<1x1x256xf32> to vector<1x256xf32>
    %c241_i32_135 = arith.constant 241 : i32
    %780 = tpu.dynamic_rotate %635 by %c241_i32_135 dim 1 : vector<2x256xf32>, i32 -> vector<2x256xf32>
    %781 = vector.broadcast %779 : vector<1x256xf32> to vector<2x256xf32>
    %782 = arith.mulf %780, %781 : vector<2x256xf32>
    %c241_i32_136 = arith.constant 241 : i32
    %783 = tpu.dynamic_rotate %737 by %c241_i32_136 dim 1 : vector<2x256xf32>, i32 -> vector<2x256xf32>
    %784 = vector.broadcast %779 : vector<1x256xf32> to vector<2x256xf32>
    %785 = arith.mulf %783, %784 : vector<2x256xf32>
    %786 = vector.extract_strided_slice %0 {offsets = [7, 0, 0], sizes = [1, 1, 256], strides = [1, 1, 1]} : vector<9x1x256xf32> to vector<1x1x256xf32>
    %787 = vector.shape_cast %786 : vector<1x1x256xf32> to vector<1x256xf32>
    %c240_i32_137 = arith.constant 240 : i32
    %788 = tpu.dynamic_rotate %635 by %c240_i32_137 dim 1 : vector<2x256xf32>, i32 -> vector<2x256xf32>
    %789 = vector.broadcast %787 : vector<1x256xf32> to vector<2x256xf32>
    %790 = arith.mulf %788, %789 : vector<2x256xf32>
    %c240_i32_138 = arith.constant 240 : i32
    %791 = tpu.dynamic_rotate %737 by %c240_i32_138 dim 1 : vector<2x256xf32>, i32 -> vector<2x256xf32>
    %792 = vector.broadcast %787 : vector<1x256xf32> to vector<2x256xf32>
    %793 = arith.mulf %791, %792 : vector<2x256xf32>
    %794 = vector.extract_strided_slice %0 {offsets = [8, 0, 0], sizes = [1, 1, 256], strides = [1, 1, 1]} : vector<9x1x256xf32> to vector<1x1x256xf32>
    %795 = vector.shape_cast %794 : vector<1x1x256xf32> to vector<1x256xf32>
    %c239_i32_139 = arith.constant 239 : i32
    %796 = tpu.dynamic_rotate %635 by %c239_i32_139 dim 1 : vector<2x256xf32>, i32 -> vector<2x256xf32>
    %797 = vector.broadcast %795 : vector<1x256xf32> to vector<2x256xf32>
    %798 = arith.mulf %796, %797 : vector<2x256xf32>
    %c239_i32_140 = arith.constant 239 : i32
    %799 = tpu.dynamic_rotate %737 by %c239_i32_140 dim 1 : vector<2x256xf32>, i32 -> vector<2x256xf32>
    %800 = vector.broadcast %795 : vector<1x256xf32> to vector<2x256xf32>
    %801 = arith.mulf %799, %800 : vector<2x256xf32>
    %c0_141 = arith.constant 0 : index
    %802 = memref.load %arg10[%c0_141] : memref<36xf32, #tpu.memory_space<smem>>
    %803 = vector.broadcast %802 : f32 to vector<2x256xf32>
    %804 = arith.mulf %803, %742 : vector<2x256xf32>
    %c2_142 = arith.constant 2 : index
    %805 = memref.load %arg10[%c2_142] : memref<36xf32, #tpu.memory_space<smem>>
    %806 = vector.broadcast %805 : f32 to vector<2x256xf32>
    %807 = arith.mulf %806, %745 : vector<2x256xf32>
    %808 = arith.addf %804, %807 : vector<2x256xf32>
    %c4_143 = arith.constant 4 : index
    %809 = memref.load %arg10[%c4_143] : memref<36xf32, #tpu.memory_space<smem>>
    %810 = vector.broadcast %809 : f32 to vector<2x256xf32>
    %811 = arith.mulf %810, %750 : vector<2x256xf32>
    %812 = arith.addf %808, %811 : vector<2x256xf32>
    %c6_144 = arith.constant 6 : index
    %813 = memref.load %arg10[%c6_144] : memref<36xf32, #tpu.memory_space<smem>>
    %814 = vector.broadcast %813 : f32 to vector<2x256xf32>
    %815 = arith.mulf %814, %753 : vector<2x256xf32>
    %816 = arith.addf %812, %815 : vector<2x256xf32>
    %c8_145 = arith.constant 8 : index
    %817 = memref.load %arg10[%c8_145] : memref<36xf32, #tpu.memory_space<smem>>
    %818 = vector.broadcast %817 : f32 to vector<2x256xf32>
    %819 = arith.mulf %818, %758 : vector<2x256xf32>
    %820 = arith.addf %816, %819 : vector<2x256xf32>
    %c10_146 = arith.constant 10 : index
    %821 = memref.load %arg10[%c10_146] : memref<36xf32, #tpu.memory_space<smem>>
    %822 = vector.broadcast %821 : f32 to vector<2x256xf32>
    %823 = arith.mulf %822, %761 : vector<2x256xf32>
    %824 = arith.addf %820, %823 : vector<2x256xf32>
    %c12_147 = arith.constant 12 : index
    %825 = memref.load %arg10[%c12_147] : memref<36xf32, #tpu.memory_space<smem>>
    %826 = vector.broadcast %825 : f32 to vector<2x256xf32>
    %827 = arith.mulf %826, %766 : vector<2x256xf32>
    %828 = arith.addf %824, %827 : vector<2x256xf32>
    %c14_148 = arith.constant 14 : index
    %829 = memref.load %arg10[%c14_148] : memref<36xf32, #tpu.memory_space<smem>>
    %830 = vector.broadcast %829 : f32 to vector<2x256xf32>
    %831 = arith.mulf %830, %769 : vector<2x256xf32>
    %832 = arith.addf %828, %831 : vector<2x256xf32>
    %c16_149 = arith.constant 16 : index
    %833 = memref.load %arg10[%c16_149] : memref<36xf32, #tpu.memory_space<smem>>
    %834 = vector.broadcast %833 : f32 to vector<2x256xf32>
    %835 = arith.mulf %834, %635 : vector<2x256xf32>
    %836 = arith.addf %832, %835 : vector<2x256xf32>
    %c18_150 = arith.constant 18 : index
    %837 = memref.load %arg10[%c18_150] : memref<36xf32, #tpu.memory_space<smem>>
    %838 = vector.broadcast %837 : f32 to vector<2x256xf32>
    %839 = arith.mulf %838, %737 : vector<2x256xf32>
    %840 = arith.addf %836, %839 : vector<2x256xf32>
    %c20_151 = arith.constant 20 : index
    %841 = memref.load %arg10[%c20_151] : memref<36xf32, #tpu.memory_space<smem>>
    %842 = vector.broadcast %841 : f32 to vector<2x256xf32>
    %843 = arith.mulf %842, %774 : vector<2x256xf32>
    %844 = arith.addf %840, %843 : vector<2x256xf32>
    %c22_152 = arith.constant 22 : index
    %845 = memref.load %arg10[%c22_152] : memref<36xf32, #tpu.memory_space<smem>>
    %846 = vector.broadcast %845 : f32 to vector<2x256xf32>
    %847 = arith.mulf %846, %777 : vector<2x256xf32>
    %848 = arith.addf %844, %847 : vector<2x256xf32>
    %c24_153 = arith.constant 24 : index
    %849 = memref.load %arg10[%c24_153] : memref<36xf32, #tpu.memory_space<smem>>
    %850 = vector.broadcast %849 : f32 to vector<2x256xf32>
    %851 = arith.mulf %850, %782 : vector<2x256xf32>
    %852 = arith.addf %848, %851 : vector<2x256xf32>
    %c26_154 = arith.constant 26 : index
    %853 = memref.load %arg10[%c26_154] : memref<36xf32, #tpu.memory_space<smem>>
    %854 = vector.broadcast %853 : f32 to vector<2x256xf32>
    %855 = arith.mulf %854, %785 : vector<2x256xf32>
    %856 = arith.addf %852, %855 : vector<2x256xf32>
    %c28_155 = arith.constant 28 : index
    %857 = memref.load %arg10[%c28_155] : memref<36xf32, #tpu.memory_space<smem>>
    %858 = vector.broadcast %857 : f32 to vector<2x256xf32>
    %859 = arith.mulf %858, %790 : vector<2x256xf32>
    %860 = arith.addf %856, %859 : vector<2x256xf32>
    %c30_156 = arith.constant 30 : index
    %861 = memref.load %arg10[%c30_156] : memref<36xf32, #tpu.memory_space<smem>>
    %862 = vector.broadcast %861 : f32 to vector<2x256xf32>
    %863 = arith.mulf %862, %793 : vector<2x256xf32>
    %864 = arith.addf %860, %863 : vector<2x256xf32>
    %c32_157 = arith.constant 32 : index
    %865 = memref.load %arg10[%c32_157] : memref<36xf32, #tpu.memory_space<smem>>
    %866 = vector.broadcast %865 : f32 to vector<2x256xf32>
    %867 = arith.mulf %866, %798 : vector<2x256xf32>
    %868 = arith.addf %864, %867 : vector<2x256xf32>
    %c34_158 = arith.constant 34 : index
    %869 = memref.load %arg10[%c34_158] : memref<36xf32, #tpu.memory_space<smem>>
    %870 = vector.broadcast %869 : f32 to vector<2x256xf32>
    %871 = arith.mulf %870, %801 : vector<2x256xf32>
    %872 = arith.addf %868, %871 : vector<2x256xf32>
    %c0_159 = arith.constant 0 : index
    %873 = memref.load %arg11[%c0_159] : memref<2xf32, #tpu.memory_space<smem>>
    %874 = vector.broadcast %873 : f32 to vector<2x256xf32>
    %875 = arith.addf %872, %874 : vector<2x256xf32>
    %cst_160 = arith.constant dense<0.000000e+00> : vector<2xf32>
    %876 = vector.multi_reduction <add>, %875, %cst_160 [1] : vector<2x256xf32> to vector<2xf32>
    %877 = vector.shape_cast %876 : vector<2xf32> to vector<2x1xf32>
    %cst_161 = arith.constant dense<0.000000e+00> : vector<1xf32>
    %878 = vector.multi_reduction <add>, %877, %cst_161 [0] : vector<2x1xf32> to vector<1xf32>
    %879 = vector.shape_cast %878 : vector<1xf32> to vector<1x1xf32>
    %cst_162 = arith.constant 0.001953125 : f32
    %880 = vector.broadcast %cst_162 : f32 to vector<1x1xf32>
    %881 = arith.mulf %879, %880 : vector<1x1xf32>
    %882 = vector.broadcast %881 : vector<1x1xf32> to vector<2x256xf32>
    %883 = arith.subf %875, %882 : vector<2x256xf32>
    %884 = arith.mulf %883, %883 : vector<2x256xf32>
    %cst_163 = arith.constant dense<0.000000e+00> : vector<2xf32>
    %885 = vector.multi_reduction <add>, %884, %cst_163 [1] : vector<2x256xf32> to vector<2xf32>
    %886 = vector.shape_cast %885 : vector<2xf32> to vector<2x1xf32>
    %cst_164 = arith.constant dense<0.000000e+00> : vector<1xf32>
    %887 = vector.multi_reduction <add>, %886, %cst_164 [0] : vector<2x1xf32> to vector<1xf32>
    %888 = vector.shape_cast %887 : vector<1xf32> to vector<1x1xf32>
    %cst_165 = arith.constant 0.001953125 : f32
    %889 = vector.broadcast %cst_165 : f32 to vector<1x1xf32>
    %890 = arith.mulf %888, %889 : vector<1x1xf32>
    %c0_166 = arith.constant 0 : index
    %891 = memref.load %arg12[%c0_166] : memref<2xf32, #tpu.memory_space<smem>>
    %cst_167 = arith.constant 9.99999974E-6 : f32
    %892 = vector.broadcast %cst_167 : f32 to vector<1x1xf32>
    %893 = arith.addf %890, %892 : vector<1x1xf32>
    %894 = math.rsqrt %893 : vector<1x1xf32>
    %895 = vector.broadcast %891 : f32 to vector<1x1xf32>
    %896 = arith.mulf %895, %894 : vector<1x1xf32>
    %897 = vector.broadcast %896 : vector<1x1xf32> to vector<2x256xf32>
    %898 = arith.mulf %883, %897 : vector<2x256xf32>
    %c0_168 = arith.constant 0 : index
    %899 = memref.load %arg13[%c0_168] : memref<2xf32, #tpu.memory_space<smem>>
    %900 = vector.broadcast %899 : f32 to vector<2x256xf32>
    %901 = arith.addf %898, %900 : vector<2x256xf32>
    %cst_169 = arith.constant 0.000000e+00 : f32
    %902 = vector.broadcast %cst_169 : f32 to vector<2x256xf32>
    %903 = arith.maximumf %901, %902 : vector<2x256xf32>
    %c1_170 = arith.constant 1 : index
    %904 = memref.load %arg10[%c1_170] : memref<36xf32, #tpu.memory_space<smem>>
    %905 = vector.broadcast %904 : f32 to vector<2x256xf32>
    %906 = arith.mulf %905, %742 : vector<2x256xf32>
    %c3_171 = arith.constant 3 : index
    %907 = memref.load %arg10[%c3_171] : memref<36xf32, #tpu.memory_space<smem>>
    %908 = vector.broadcast %907 : f32 to vector<2x256xf32>
    %909 = arith.mulf %908, %745 : vector<2x256xf32>
    %910 = arith.addf %906, %909 : vector<2x256xf32>
    %c5_172 = arith.constant 5 : index
    %911 = memref.load %arg10[%c5_172] : memref<36xf32, #tpu.memory_space<smem>>
    %912 = vector.broadcast %911 : f32 to vector<2x256xf32>
    %913 = arith.mulf %912, %750 : vector<2x256xf32>
    %914 = arith.addf %910, %913 : vector<2x256xf32>
    %c7_173 = arith.constant 7 : index
    %915 = memref.load %arg10[%c7_173] : memref<36xf32, #tpu.memory_space<smem>>
    %916 = vector.broadcast %915 : f32 to vector<2x256xf32>
    %917 = arith.mulf %916, %753 : vector<2x256xf32>
    %918 = arith.addf %914, %917 : vector<2x256xf32>
    %c9_174 = arith.constant 9 : index
    %919 = memref.load %arg10[%c9_174] : memref<36xf32, #tpu.memory_space<smem>>
    %920 = vector.broadcast %919 : f32 to vector<2x256xf32>
    %921 = arith.mulf %920, %758 : vector<2x256xf32>
    %922 = arith.addf %918, %921 : vector<2x256xf32>
    %c11_175 = arith.constant 11 : index
    %923 = memref.load %arg10[%c11_175] : memref<36xf32, #tpu.memory_space<smem>>
    %924 = vector.broadcast %923 : f32 to vector<2x256xf32>
    %925 = arith.mulf %924, %761 : vector<2x256xf32>
    %926 = arith.addf %922, %925 : vector<2x256xf32>
    %c13_176 = arith.constant 13 : index
    %927 = memref.load %arg10[%c13_176] : memref<36xf32, #tpu.memory_space<smem>>
    %928 = vector.broadcast %927 : f32 to vector<2x256xf32>
    %929 = arith.mulf %928, %766 : vector<2x256xf32>
    %930 = arith.addf %926, %929 : vector<2x256xf32>
    %c15_177 = arith.constant 15 : index
    %931 = memref.load %arg10[%c15_177] : memref<36xf32, #tpu.memory_space<smem>>
    %932 = vector.broadcast %931 : f32 to vector<2x256xf32>
    %933 = arith.mulf %932, %769 : vector<2x256xf32>
    %934 = arith.addf %930, %933 : vector<2x256xf32>
    %c17_178 = arith.constant 17 : index
    %935 = memref.load %arg10[%c17_178] : memref<36xf32, #tpu.memory_space<smem>>
    %936 = vector.broadcast %935 : f32 to vector<2x256xf32>
    %937 = arith.mulf %936, %635 : vector<2x256xf32>
    %938 = arith.addf %934, %937 : vector<2x256xf32>
    %c19_179 = arith.constant 19 : index
    %939 = memref.load %arg10[%c19_179] : memref<36xf32, #tpu.memory_space<smem>>
    %940 = vector.broadcast %939 : f32 to vector<2x256xf32>
    %941 = arith.mulf %940, %737 : vector<2x256xf32>
    %942 = arith.addf %938, %941 : vector<2x256xf32>
    %c21_180 = arith.constant 21 : index
    %943 = memref.load %arg10[%c21_180] : memref<36xf32, #tpu.memory_space<smem>>
    %944 = vector.broadcast %943 : f32 to vector<2x256xf32>
    %945 = arith.mulf %944, %774 : vector<2x256xf32>
    %946 = arith.addf %942, %945 : vector<2x256xf32>
    %c23_181 = arith.constant 23 : index
    %947 = memref.load %arg10[%c23_181] : memref<36xf32, #tpu.memory_space<smem>>
    %948 = vector.broadcast %947 : f32 to vector<2x256xf32>
    %949 = arith.mulf %948, %777 : vector<2x256xf32>
    %950 = arith.addf %946, %949 : vector<2x256xf32>
    %c25_182 = arith.constant 25 : index
    %951 = memref.load %arg10[%c25_182] : memref<36xf32, #tpu.memory_space<smem>>
    %952 = vector.broadcast %951 : f32 to vector<2x256xf32>
    %953 = arith.mulf %952, %782 : vector<2x256xf32>
    %954 = arith.addf %950, %953 : vector<2x256xf32>
    %c27_183 = arith.constant 27 : index
    %955 = memref.load %arg10[%c27_183] : memref<36xf32, #tpu.memory_space<smem>>
    %956 = vector.broadcast %955 : f32 to vector<2x256xf32>
    %957 = arith.mulf %956, %785 : vector<2x256xf32>
    %958 = arith.addf %954, %957 : vector<2x256xf32>
    %c29_184 = arith.constant 29 : index
    %959 = memref.load %arg10[%c29_184] : memref<36xf32, #tpu.memory_space<smem>>
    %960 = vector.broadcast %959 : f32 to vector<2x256xf32>
    %961 = arith.mulf %960, %790 : vector<2x256xf32>
    %962 = arith.addf %958, %961 : vector<2x256xf32>
    %c31_185 = arith.constant 31 : index
    %963 = memref.load %arg10[%c31_185] : memref<36xf32, #tpu.memory_space<smem>>
    %964 = vector.broadcast %963 : f32 to vector<2x256xf32>
    %965 = arith.mulf %964, %793 : vector<2x256xf32>
    %966 = arith.addf %962, %965 : vector<2x256xf32>
    %c33_186 = arith.constant 33 : index
    %967 = memref.load %arg10[%c33_186] : memref<36xf32, #tpu.memory_space<smem>>
    %968 = vector.broadcast %967 : f32 to vector<2x256xf32>
    %969 = arith.mulf %968, %798 : vector<2x256xf32>
    %970 = arith.addf %966, %969 : vector<2x256xf32>
    %c35_187 = arith.constant 35 : index
    %971 = memref.load %arg10[%c35_187] : memref<36xf32, #tpu.memory_space<smem>>
    %972 = vector.broadcast %971 : f32 to vector<2x256xf32>
    %973 = arith.mulf %972, %801 : vector<2x256xf32>
    %974 = arith.addf %970, %973 : vector<2x256xf32>
    %c1_188 = arith.constant 1 : index
    %975 = memref.load %arg11[%c1_188] : memref<2xf32, #tpu.memory_space<smem>>
    %976 = vector.broadcast %975 : f32 to vector<2x256xf32>
    %977 = arith.addf %974, %976 : vector<2x256xf32>
    %cst_189 = arith.constant dense<0.000000e+00> : vector<2xf32>
    %978 = vector.multi_reduction <add>, %977, %cst_189 [1] : vector<2x256xf32> to vector<2xf32>
    %979 = vector.shape_cast %978 : vector<2xf32> to vector<2x1xf32>
    %cst_190 = arith.constant dense<0.000000e+00> : vector<1xf32>
    %980 = vector.multi_reduction <add>, %979, %cst_190 [0] : vector<2x1xf32> to vector<1xf32>
    %981 = vector.shape_cast %980 : vector<1xf32> to vector<1x1xf32>
    %cst_191 = arith.constant 0.001953125 : f32
    %982 = vector.broadcast %cst_191 : f32 to vector<1x1xf32>
    %983 = arith.mulf %981, %982 : vector<1x1xf32>
    %984 = vector.broadcast %983 : vector<1x1xf32> to vector<2x256xf32>
    %985 = arith.subf %977, %984 : vector<2x256xf32>
    %986 = arith.mulf %985, %985 : vector<2x256xf32>
    %cst_192 = arith.constant dense<0.000000e+00> : vector<2xf32>
    %987 = vector.multi_reduction <add>, %986, %cst_192 [1] : vector<2x256xf32> to vector<2xf32>
    %988 = vector.shape_cast %987 : vector<2xf32> to vector<2x1xf32>
    %cst_193 = arith.constant dense<0.000000e+00> : vector<1xf32>
    %989 = vector.multi_reduction <add>, %988, %cst_193 [0] : vector<2x1xf32> to vector<1xf32>
    %990 = vector.shape_cast %989 : vector<1xf32> to vector<1x1xf32>
    %cst_194 = arith.constant 0.001953125 : f32
    %991 = vector.broadcast %cst_194 : f32 to vector<1x1xf32>
    %992 = arith.mulf %990, %991 : vector<1x1xf32>
    %c1_195 = arith.constant 1 : index
    %993 = memref.load %arg12[%c1_195] : memref<2xf32, #tpu.memory_space<smem>>
    %cst_196 = arith.constant 9.99999974E-6 : f32
    %994 = vector.broadcast %cst_196 : f32 to vector<1x1xf32>
    %995 = arith.addf %992, %994 : vector<1x1xf32>
    %996 = math.rsqrt %995 : vector<1x1xf32>
    %997 = vector.broadcast %993 : f32 to vector<1x1xf32>
    %998 = arith.mulf %997, %996 : vector<1x1xf32>
    %999 = vector.broadcast %998 : vector<1x1xf32> to vector<2x256xf32>
    %1000 = arith.mulf %985, %999 : vector<2x256xf32>
    %c1_197 = arith.constant 1 : index
    %1001 = memref.load %arg13[%c1_197] : memref<2xf32, #tpu.memory_space<smem>>
    %1002 = vector.broadcast %1001 : f32 to vector<2x256xf32>
    %1003 = arith.addf %1000, %1002 : vector<2x256xf32>
    %cst_198 = arith.constant 0.000000e+00 : f32
    %1004 = vector.broadcast %cst_198 : f32 to vector<2x256xf32>
    %1005 = arith.maximumf %1003, %1004 : vector<2x256xf32>
    %1006 = vector.extract_strided_slice %0 {offsets = [0, 0, 0], sizes = [1, 1, 256], strides = [1, 1, 1]} : vector<9x1x256xf32> to vector<1x1x256xf32>
    %1007 = vector.shape_cast %1006 : vector<1x1x256xf32> to vector<1x256xf32>
    %c17_i32_199 = arith.constant 17 : i32
    %1008 = tpu.dynamic_rotate %903 by %c17_i32_199 dim 1 : vector<2x256xf32>, i32 -> vector<2x256xf32>
    %1009 = vector.broadcast %1007 : vector<1x256xf32> to vector<2x256xf32>
    %1010 = arith.mulf %1008, %1009 : vector<2x256xf32>
    %c17_i32_200 = arith.constant 17 : i32
    %1011 = tpu.dynamic_rotate %1005 by %c17_i32_200 dim 1 : vector<2x256xf32>, i32 -> vector<2x256xf32>
    %1012 = vector.broadcast %1007 : vector<1x256xf32> to vector<2x256xf32>
    %1013 = arith.mulf %1011, %1012 : vector<2x256xf32>
    %1014 = vector.extract_strided_slice %0 {offsets = [1, 0, 0], sizes = [1, 1, 256], strides = [1, 1, 1]} : vector<9x1x256xf32> to vector<1x1x256xf32>
    %1015 = vector.shape_cast %1014 : vector<1x1x256xf32> to vector<1x256xf32>
    %c16_i32_201 = arith.constant 16 : i32
    %1016 = tpu.dynamic_rotate %903 by %c16_i32_201 dim 1 : vector<2x256xf32>, i32 -> vector<2x256xf32>
    %1017 = vector.broadcast %1015 : vector<1x256xf32> to vector<2x256xf32>
    %1018 = arith.mulf %1016, %1017 : vector<2x256xf32>
    %c16_i32_202 = arith.constant 16 : i32
    %1019 = tpu.dynamic_rotate %1005 by %c16_i32_202 dim 1 : vector<2x256xf32>, i32 -> vector<2x256xf32>
    %1020 = vector.broadcast %1015 : vector<1x256xf32> to vector<2x256xf32>
    %1021 = arith.mulf %1019, %1020 : vector<2x256xf32>
    %1022 = vector.extract_strided_slice %0 {offsets = [2, 0, 0], sizes = [1, 1, 256], strides = [1, 1, 1]} : vector<9x1x256xf32> to vector<1x1x256xf32>
    %1023 = vector.shape_cast %1022 : vector<1x1x256xf32> to vector<1x256xf32>
    %c15_i32_203 = arith.constant 15 : i32
    %1024 = tpu.dynamic_rotate %903 by %c15_i32_203 dim 1 : vector<2x256xf32>, i32 -> vector<2x256xf32>
    %1025 = vector.broadcast %1023 : vector<1x256xf32> to vector<2x256xf32>
    %1026 = arith.mulf %1024, %1025 : vector<2x256xf32>
    %c15_i32_204 = arith.constant 15 : i32
    %1027 = tpu.dynamic_rotate %1005 by %c15_i32_204 dim 1 : vector<2x256xf32>, i32 -> vector<2x256xf32>
    %1028 = vector.broadcast %1023 : vector<1x256xf32> to vector<2x256xf32>
    %1029 = arith.mulf %1027, %1028 : vector<2x256xf32>
    %1030 = vector.extract_strided_slice %0 {offsets = [3, 0, 0], sizes = [1, 1, 256], strides = [1, 1, 1]} : vector<9x1x256xf32> to vector<1x1x256xf32>
    %1031 = vector.shape_cast %1030 : vector<1x1x256xf32> to vector<1x256xf32>
    %c1_i32_205 = arith.constant 1 : i32
    %1032 = tpu.dynamic_rotate %903 by %c1_i32_205 dim 1 : vector<2x256xf32>, i32 -> vector<2x256xf32>
    %1033 = vector.broadcast %1031 : vector<1x256xf32> to vector<2x256xf32>
    %1034 = arith.mulf %1032, %1033 : vector<2x256xf32>
    %c1_i32_206 = arith.constant 1 : i32
    %1035 = tpu.dynamic_rotate %1005 by %c1_i32_206 dim 1 : vector<2x256xf32>, i32 -> vector<2x256xf32>
    %1036 = vector.broadcast %1031 : vector<1x256xf32> to vector<2x256xf32>
    %1037 = arith.mulf %1035, %1036 : vector<2x256xf32>
    %1038 = vector.extract_strided_slice %0 {offsets = [5, 0, 0], sizes = [1, 1, 256], strides = [1, 1, 1]} : vector<9x1x256xf32> to vector<1x1x256xf32>
    %1039 = vector.shape_cast %1038 : vector<1x1x256xf32> to vector<1x256xf32>
    %c255_i32_207 = arith.constant 255 : i32
    %1040 = tpu.dynamic_rotate %903 by %c255_i32_207 dim 1 : vector<2x256xf32>, i32 -> vector<2x256xf32>
    %1041 = vector.broadcast %1039 : vector<1x256xf32> to vector<2x256xf32>
    %1042 = arith.mulf %1040, %1041 : vector<2x256xf32>
    %c255_i32_208 = arith.constant 255 : i32
    %1043 = tpu.dynamic_rotate %1005 by %c255_i32_208 dim 1 : vector<2x256xf32>, i32 -> vector<2x256xf32>
    %1044 = vector.broadcast %1039 : vector<1x256xf32> to vector<2x256xf32>
    %1045 = arith.mulf %1043, %1044 : vector<2x256xf32>
    %1046 = vector.extract_strided_slice %0 {offsets = [6, 0, 0], sizes = [1, 1, 256], strides = [1, 1, 1]} : vector<9x1x256xf32> to vector<1x1x256xf32>
    %1047 = vector.shape_cast %1046 : vector<1x1x256xf32> to vector<1x256xf32>
    %c241_i32_209 = arith.constant 241 : i32
    %1048 = tpu.dynamic_rotate %903 by %c241_i32_209 dim 1 : vector<2x256xf32>, i32 -> vector<2x256xf32>
    %1049 = vector.broadcast %1047 : vector<1x256xf32> to vector<2x256xf32>
    %1050 = arith.mulf %1048, %1049 : vector<2x256xf32>
    %c241_i32_210 = arith.constant 241 : i32
    %1051 = tpu.dynamic_rotate %1005 by %c241_i32_210 dim 1 : vector<2x256xf32>, i32 -> vector<2x256xf32>
    %1052 = vector.broadcast %1047 : vector<1x256xf32> to vector<2x256xf32>
    %1053 = arith.mulf %1051, %1052 : vector<2x256xf32>
    %1054 = vector.extract_strided_slice %0 {offsets = [7, 0, 0], sizes = [1, 1, 256], strides = [1, 1, 1]} : vector<9x1x256xf32> to vector<1x1x256xf32>
    %1055 = vector.shape_cast %1054 : vector<1x1x256xf32> to vector<1x256xf32>
    %c240_i32_211 = arith.constant 240 : i32
    %1056 = tpu.dynamic_rotate %903 by %c240_i32_211 dim 1 : vector<2x256xf32>, i32 -> vector<2x256xf32>
    %1057 = vector.broadcast %1055 : vector<1x256xf32> to vector<2x256xf32>
    %1058 = arith.mulf %1056, %1057 : vector<2x256xf32>
    %c240_i32_212 = arith.constant 240 : i32
    %1059 = tpu.dynamic_rotate %1005 by %c240_i32_212 dim 1 : vector<2x256xf32>, i32 -> vector<2x256xf32>
    %1060 = vector.broadcast %1055 : vector<1x256xf32> to vector<2x256xf32>
    %1061 = arith.mulf %1059, %1060 : vector<2x256xf32>
    %1062 = vector.extract_strided_slice %0 {offsets = [8, 0, 0], sizes = [1, 1, 256], strides = [1, 1, 1]} : vector<9x1x256xf32> to vector<1x1x256xf32>
    %1063 = vector.shape_cast %1062 : vector<1x1x256xf32> to vector<1x256xf32>
    %c239_i32_213 = arith.constant 239 : i32
    %1064 = tpu.dynamic_rotate %903 by %c239_i32_213 dim 1 : vector<2x256xf32>, i32 -> vector<2x256xf32>
    %1065 = vector.broadcast %1063 : vector<1x256xf32> to vector<2x256xf32>
    %1066 = arith.mulf %1064, %1065 : vector<2x256xf32>
    %c239_i32_214 = arith.constant 239 : i32
    %1067 = tpu.dynamic_rotate %1005 by %c239_i32_214 dim 1 : vector<2x256xf32>, i32 -> vector<2x256xf32>
    %1068 = vector.broadcast %1063 : vector<1x256xf32> to vector<2x256xf32>
    %1069 = arith.mulf %1067, %1068 : vector<2x256xf32>
    %c0_215 = arith.constant 0 : index
    %1070 = memref.load %arg14[%c0_215] : memref<36xf32, #tpu.memory_space<smem>>
    %1071 = vector.broadcast %1070 : f32 to vector<2x256xf32>
    %1072 = arith.mulf %1071, %1010 : vector<2x256xf32>
    %c2_216 = arith.constant 2 : index
    %1073 = memref.load %arg14[%c2_216] : memref<36xf32, #tpu.memory_space<smem>>
    %1074 = vector.broadcast %1073 : f32 to vector<2x256xf32>
    %1075 = arith.mulf %1074, %1013 : vector<2x256xf32>
    %1076 = arith.addf %1072, %1075 : vector<2x256xf32>
    %c4_217 = arith.constant 4 : index
    %1077 = memref.load %arg14[%c4_217] : memref<36xf32, #tpu.memory_space<smem>>
    %1078 = vector.broadcast %1077 : f32 to vector<2x256xf32>
    %1079 = arith.mulf %1078, %1018 : vector<2x256xf32>
    %1080 = arith.addf %1076, %1079 : vector<2x256xf32>
    %c6_218 = arith.constant 6 : index
    %1081 = memref.load %arg14[%c6_218] : memref<36xf32, #tpu.memory_space<smem>>
    %1082 = vector.broadcast %1081 : f32 to vector<2x256xf32>
    %1083 = arith.mulf %1082, %1021 : vector<2x256xf32>
    %1084 = arith.addf %1080, %1083 : vector<2x256xf32>
    %c8_219 = arith.constant 8 : index
    %1085 = memref.load %arg14[%c8_219] : memref<36xf32, #tpu.memory_space<smem>>
    %1086 = vector.broadcast %1085 : f32 to vector<2x256xf32>
    %1087 = arith.mulf %1086, %1026 : vector<2x256xf32>
    %1088 = arith.addf %1084, %1087 : vector<2x256xf32>
    %c10_220 = arith.constant 10 : index
    %1089 = memref.load %arg14[%c10_220] : memref<36xf32, #tpu.memory_space<smem>>
    %1090 = vector.broadcast %1089 : f32 to vector<2x256xf32>
    %1091 = arith.mulf %1090, %1029 : vector<2x256xf32>
    %1092 = arith.addf %1088, %1091 : vector<2x256xf32>
    %c12_221 = arith.constant 12 : index
    %1093 = memref.load %arg14[%c12_221] : memref<36xf32, #tpu.memory_space<smem>>
    %1094 = vector.broadcast %1093 : f32 to vector<2x256xf32>
    %1095 = arith.mulf %1094, %1034 : vector<2x256xf32>
    %1096 = arith.addf %1092, %1095 : vector<2x256xf32>
    %c14_222 = arith.constant 14 : index
    %1097 = memref.load %arg14[%c14_222] : memref<36xf32, #tpu.memory_space<smem>>
    %1098 = vector.broadcast %1097 : f32 to vector<2x256xf32>
    %1099 = arith.mulf %1098, %1037 : vector<2x256xf32>
    %1100 = arith.addf %1096, %1099 : vector<2x256xf32>
    %c16_223 = arith.constant 16 : index
    %1101 = memref.load %arg14[%c16_223] : memref<36xf32, #tpu.memory_space<smem>>
    %1102 = vector.broadcast %1101 : f32 to vector<2x256xf32>
    %1103 = arith.mulf %1102, %903 : vector<2x256xf32>
    %1104 = arith.addf %1100, %1103 : vector<2x256xf32>
    %c18_224 = arith.constant 18 : index
    %1105 = memref.load %arg14[%c18_224] : memref<36xf32, #tpu.memory_space<smem>>
    %1106 = vector.broadcast %1105 : f32 to vector<2x256xf32>
    %1107 = arith.mulf %1106, %1005 : vector<2x256xf32>
    %1108 = arith.addf %1104, %1107 : vector<2x256xf32>
    %c20_225 = arith.constant 20 : index
    %1109 = memref.load %arg14[%c20_225] : memref<36xf32, #tpu.memory_space<smem>>
    %1110 = vector.broadcast %1109 : f32 to vector<2x256xf32>
    %1111 = arith.mulf %1110, %1042 : vector<2x256xf32>
    %1112 = arith.addf %1108, %1111 : vector<2x256xf32>
    %c22_226 = arith.constant 22 : index
    %1113 = memref.load %arg14[%c22_226] : memref<36xf32, #tpu.memory_space<smem>>
    %1114 = vector.broadcast %1113 : f32 to vector<2x256xf32>
    %1115 = arith.mulf %1114, %1045 : vector<2x256xf32>
    %1116 = arith.addf %1112, %1115 : vector<2x256xf32>
    %c24_227 = arith.constant 24 : index
    %1117 = memref.load %arg14[%c24_227] : memref<36xf32, #tpu.memory_space<smem>>
    %1118 = vector.broadcast %1117 : f32 to vector<2x256xf32>
    %1119 = arith.mulf %1118, %1050 : vector<2x256xf32>
    %1120 = arith.addf %1116, %1119 : vector<2x256xf32>
    %c26_228 = arith.constant 26 : index
    %1121 = memref.load %arg14[%c26_228] : memref<36xf32, #tpu.memory_space<smem>>
    %1122 = vector.broadcast %1121 : f32 to vector<2x256xf32>
    %1123 = arith.mulf %1122, %1053 : vector<2x256xf32>
    %1124 = arith.addf %1120, %1123 : vector<2x256xf32>
    %c28_229 = arith.constant 28 : index
    %1125 = memref.load %arg14[%c28_229] : memref<36xf32, #tpu.memory_space<smem>>
    %1126 = vector.broadcast %1125 : f32 to vector<2x256xf32>
    %1127 = arith.mulf %1126, %1058 : vector<2x256xf32>
    %1128 = arith.addf %1124, %1127 : vector<2x256xf32>
    %c30_230 = arith.constant 30 : index
    %1129 = memref.load %arg14[%c30_230] : memref<36xf32, #tpu.memory_space<smem>>
    %1130 = vector.broadcast %1129 : f32 to vector<2x256xf32>
    %1131 = arith.mulf %1130, %1061 : vector<2x256xf32>
    %1132 = arith.addf %1128, %1131 : vector<2x256xf32>
    %c32_231 = arith.constant 32 : index
    %1133 = memref.load %arg14[%c32_231] : memref<36xf32, #tpu.memory_space<smem>>
    %1134 = vector.broadcast %1133 : f32 to vector<2x256xf32>
    %1135 = arith.mulf %1134, %1066 : vector<2x256xf32>
    %1136 = arith.addf %1132, %1135 : vector<2x256xf32>
    %c34_232 = arith.constant 34 : index
    %1137 = memref.load %arg14[%c34_232] : memref<36xf32, #tpu.memory_space<smem>>
    %1138 = vector.broadcast %1137 : f32 to vector<2x256xf32>
    %1139 = arith.mulf %1138, %1069 : vector<2x256xf32>
    %1140 = arith.addf %1136, %1139 : vector<2x256xf32>
    %c0_233 = arith.constant 0 : index
    %1141 = memref.load %arg15[%c0_233] : memref<2xf32, #tpu.memory_space<smem>>
    %1142 = vector.broadcast %1141 : f32 to vector<2x256xf32>
    %1143 = arith.addf %1140, %1142 : vector<2x256xf32>
    %cst_234 = arith.constant dense<0.000000e+00> : vector<2xf32>
    %1144 = vector.multi_reduction <add>, %1143, %cst_234 [1] : vector<2x256xf32> to vector<2xf32>
    %1145 = vector.shape_cast %1144 : vector<2xf32> to vector<2x1xf32>
    %cst_235 = arith.constant dense<0.000000e+00> : vector<1xf32>
    %1146 = vector.multi_reduction <add>, %1145, %cst_235 [0] : vector<2x1xf32> to vector<1xf32>
    %1147 = vector.shape_cast %1146 : vector<1xf32> to vector<1x1xf32>
    %cst_236 = arith.constant 0.001953125 : f32
    %1148 = vector.broadcast %cst_236 : f32 to vector<1x1xf32>
    %1149 = arith.mulf %1147, %1148 : vector<1x1xf32>
    %1150 = vector.broadcast %1149 : vector<1x1xf32> to vector<2x256xf32>
    %1151 = arith.subf %1143, %1150 : vector<2x256xf32>
    %1152 = arith.mulf %1151, %1151 : vector<2x256xf32>
    %cst_237 = arith.constant dense<0.000000e+00> : vector<2xf32>
    %1153 = vector.multi_reduction <add>, %1152, %cst_237 [1] : vector<2x256xf32> to vector<2xf32>
    %1154 = vector.shape_cast %1153 : vector<2xf32> to vector<2x1xf32>
    %cst_238 = arith.constant dense<0.000000e+00> : vector<1xf32>
    %1155 = vector.multi_reduction <add>, %1154, %cst_238 [0] : vector<2x1xf32> to vector<1xf32>
    %1156 = vector.shape_cast %1155 : vector<1xf32> to vector<1x1xf32>
    %cst_239 = arith.constant 0.001953125 : f32
    %1157 = vector.broadcast %cst_239 : f32 to vector<1x1xf32>
    %1158 = arith.mulf %1156, %1157 : vector<1x1xf32>
    %c0_240 = arith.constant 0 : index
    %1159 = memref.load %arg16[%c0_240] : memref<2xf32, #tpu.memory_space<smem>>
    %cst_241 = arith.constant 9.99999974E-6 : f32
    %1160 = vector.broadcast %cst_241 : f32 to vector<1x1xf32>
    %1161 = arith.addf %1158, %1160 : vector<1x1xf32>
    %1162 = math.rsqrt %1161 : vector<1x1xf32>
    %1163 = vector.broadcast %1159 : f32 to vector<1x1xf32>
    %1164 = arith.mulf %1163, %1162 : vector<1x1xf32>
    %1165 = vector.broadcast %1164 : vector<1x1xf32> to vector<2x256xf32>
    %1166 = arith.mulf %1151, %1165 : vector<2x256xf32>
    %c0_242 = arith.constant 0 : index
    %1167 = memref.load %arg17[%c0_242] : memref<2xf32, #tpu.memory_space<smem>>
    %1168 = vector.broadcast %1167 : f32 to vector<2x256xf32>
    %1169 = arith.addf %1166, %1168 : vector<2x256xf32>
    %cst_243 = arith.constant 0.000000e+00 : f32
    %1170 = vector.broadcast %cst_243 : f32 to vector<2x256xf32>
    %1171 = arith.maximumf %1169, %1170 : vector<2x256xf32>
    %c1_244 = arith.constant 1 : index
    %1172 = memref.load %arg14[%c1_244] : memref<36xf32, #tpu.memory_space<smem>>
    %1173 = vector.broadcast %1172 : f32 to vector<2x256xf32>
    %1174 = arith.mulf %1173, %1010 : vector<2x256xf32>
    %c3_245 = arith.constant 3 : index
    %1175 = memref.load %arg14[%c3_245] : memref<36xf32, #tpu.memory_space<smem>>
    %1176 = vector.broadcast %1175 : f32 to vector<2x256xf32>
    %1177 = arith.mulf %1176, %1013 : vector<2x256xf32>
    %1178 = arith.addf %1174, %1177 : vector<2x256xf32>
    %c5_246 = arith.constant 5 : index
    %1179 = memref.load %arg14[%c5_246] : memref<36xf32, #tpu.memory_space<smem>>
    %1180 = vector.broadcast %1179 : f32 to vector<2x256xf32>
    %1181 = arith.mulf %1180, %1018 : vector<2x256xf32>
    %1182 = arith.addf %1178, %1181 : vector<2x256xf32>
    %c7_247 = arith.constant 7 : index
    %1183 = memref.load %arg14[%c7_247] : memref<36xf32, #tpu.memory_space<smem>>
    %1184 = vector.broadcast %1183 : f32 to vector<2x256xf32>
    %1185 = arith.mulf %1184, %1021 : vector<2x256xf32>
    %1186 = arith.addf %1182, %1185 : vector<2x256xf32>
    %c9_248 = arith.constant 9 : index
    %1187 = memref.load %arg14[%c9_248] : memref<36xf32, #tpu.memory_space<smem>>
    %1188 = vector.broadcast %1187 : f32 to vector<2x256xf32>
    %1189 = arith.mulf %1188, %1026 : vector<2x256xf32>
    %1190 = arith.addf %1186, %1189 : vector<2x256xf32>
    %c11_249 = arith.constant 11 : index
    %1191 = memref.load %arg14[%c11_249] : memref<36xf32, #tpu.memory_space<smem>>
    %1192 = vector.broadcast %1191 : f32 to vector<2x256xf32>
    %1193 = arith.mulf %1192, %1029 : vector<2x256xf32>
    %1194 = arith.addf %1190, %1193 : vector<2x256xf32>
    %c13_250 = arith.constant 13 : index
    %1195 = memref.load %arg14[%c13_250] : memref<36xf32, #tpu.memory_space<smem>>
    %1196 = vector.broadcast %1195 : f32 to vector<2x256xf32>
    %1197 = arith.mulf %1196, %1034 : vector<2x256xf32>
    %1198 = arith.addf %1194, %1197 : vector<2x256xf32>
    %c15_251 = arith.constant 15 : index
    %1199 = memref.load %arg14[%c15_251] : memref<36xf32, #tpu.memory_space<smem>>
    %1200 = vector.broadcast %1199 : f32 to vector<2x256xf32>
    %1201 = arith.mulf %1200, %1037 : vector<2x256xf32>
    %1202 = arith.addf %1198, %1201 : vector<2x256xf32>
    %c17_252 = arith.constant 17 : index
    %1203 = memref.load %arg14[%c17_252] : memref<36xf32, #tpu.memory_space<smem>>
    %1204 = vector.broadcast %1203 : f32 to vector<2x256xf32>
    %1205 = arith.mulf %1204, %903 : vector<2x256xf32>
    %1206 = arith.addf %1202, %1205 : vector<2x256xf32>
    %c19_253 = arith.constant 19 : index
    %1207 = memref.load %arg14[%c19_253] : memref<36xf32, #tpu.memory_space<smem>>
    %1208 = vector.broadcast %1207 : f32 to vector<2x256xf32>
    %1209 = arith.mulf %1208, %1005 : vector<2x256xf32>
    %1210 = arith.addf %1206, %1209 : vector<2x256xf32>
    %c21_254 = arith.constant 21 : index
    %1211 = memref.load %arg14[%c21_254] : memref<36xf32, #tpu.memory_space<smem>>
    %1212 = vector.broadcast %1211 : f32 to vector<2x256xf32>
    %1213 = arith.mulf %1212, %1042 : vector<2x256xf32>
    %1214 = arith.addf %1210, %1213 : vector<2x256xf32>
    %c23_255 = arith.constant 23 : index
    %1215 = memref.load %arg14[%c23_255] : memref<36xf32, #tpu.memory_space<smem>>
    %1216 = vector.broadcast %1215 : f32 to vector<2x256xf32>
    %1217 = arith.mulf %1216, %1045 : vector<2x256xf32>
    %1218 = arith.addf %1214, %1217 : vector<2x256xf32>
    %c25_256 = arith.constant 25 : index
    %1219 = memref.load %arg14[%c25_256] : memref<36xf32, #tpu.memory_space<smem>>
    %1220 = vector.broadcast %1219 : f32 to vector<2x256xf32>
    %1221 = arith.mulf %1220, %1050 : vector<2x256xf32>
    %1222 = arith.addf %1218, %1221 : vector<2x256xf32>
    %c27_257 = arith.constant 27 : index
    %1223 = memref.load %arg14[%c27_257] : memref<36xf32, #tpu.memory_space<smem>>
    %1224 = vector.broadcast %1223 : f32 to vector<2x256xf32>
    %1225 = arith.mulf %1224, %1053 : vector<2x256xf32>
    %1226 = arith.addf %1222, %1225 : vector<2x256xf32>
    %c29_258 = arith.constant 29 : index
    %1227 = memref.load %arg14[%c29_258] : memref<36xf32, #tpu.memory_space<smem>>
    %1228 = vector.broadcast %1227 : f32 to vector<2x256xf32>
    %1229 = arith.mulf %1228, %1058 : vector<2x256xf32>
    %1230 = arith.addf %1226, %1229 : vector<2x256xf32>
    %c31_259 = arith.constant 31 : index
    %1231 = memref.load %arg14[%c31_259] : memref<36xf32, #tpu.memory_space<smem>>
    %1232 = vector.broadcast %1231 : f32 to vector<2x256xf32>
    %1233 = arith.mulf %1232, %1061 : vector<2x256xf32>
    %1234 = arith.addf %1230, %1233 : vector<2x256xf32>
    %c33_260 = arith.constant 33 : index
    %1235 = memref.load %arg14[%c33_260] : memref<36xf32, #tpu.memory_space<smem>>
    %1236 = vector.broadcast %1235 : f32 to vector<2x256xf32>
    %1237 = arith.mulf %1236, %1066 : vector<2x256xf32>
    %1238 = arith.addf %1234, %1237 : vector<2x256xf32>
    %c35_261 = arith.constant 35 : index
    %1239 = memref.load %arg14[%c35_261] : memref<36xf32, #tpu.memory_space<smem>>
    %1240 = vector.broadcast %1239 : f32 to vector<2x256xf32>
    %1241 = arith.mulf %1240, %1069 : vector<2x256xf32>
    %1242 = arith.addf %1238, %1241 : vector<2x256xf32>
    %c1_262 = arith.constant 1 : index
    %1243 = memref.load %arg15[%c1_262] : memref<2xf32, #tpu.memory_space<smem>>
    %1244 = vector.broadcast %1243 : f32 to vector<2x256xf32>
    %1245 = arith.addf %1242, %1244 : vector<2x256xf32>
    %cst_263 = arith.constant dense<0.000000e+00> : vector<2xf32>
    %1246 = vector.multi_reduction <add>, %1245, %cst_263 [1] : vector<2x256xf32> to vector<2xf32>
    %1247 = vector.shape_cast %1246 : vector<2xf32> to vector<2x1xf32>
    %cst_264 = arith.constant dense<0.000000e+00> : vector<1xf32>
    %1248 = vector.multi_reduction <add>, %1247, %cst_264 [0] : vector<2x1xf32> to vector<1xf32>
    %1249 = vector.shape_cast %1248 : vector<1xf32> to vector<1x1xf32>
    %cst_265 = arith.constant 0.001953125 : f32
    %1250 = vector.broadcast %cst_265 : f32 to vector<1x1xf32>
    %1251 = arith.mulf %1249, %1250 : vector<1x1xf32>
    %1252 = vector.broadcast %1251 : vector<1x1xf32> to vector<2x256xf32>
    %1253 = arith.subf %1245, %1252 : vector<2x256xf32>
    %1254 = arith.mulf %1253, %1253 : vector<2x256xf32>
    %cst_266 = arith.constant dense<0.000000e+00> : vector<2xf32>
    %1255 = vector.multi_reduction <add>, %1254, %cst_266 [1] : vector<2x256xf32> to vector<2xf32>
    %1256 = vector.shape_cast %1255 : vector<2xf32> to vector<2x1xf32>
    %cst_267 = arith.constant dense<0.000000e+00> : vector<1xf32>
    %1257 = vector.multi_reduction <add>, %1256, %cst_267 [0] : vector<2x1xf32> to vector<1xf32>
    %1258 = vector.shape_cast %1257 : vector<1xf32> to vector<1x1xf32>
    %cst_268 = arith.constant 0.001953125 : f32
    %1259 = vector.broadcast %cst_268 : f32 to vector<1x1xf32>
    %1260 = arith.mulf %1258, %1259 : vector<1x1xf32>
    %c1_269 = arith.constant 1 : index
    %1261 = memref.load %arg16[%c1_269] : memref<2xf32, #tpu.memory_space<smem>>
    %cst_270 = arith.constant 9.99999974E-6 : f32
    %1262 = vector.broadcast %cst_270 : f32 to vector<1x1xf32>
    %1263 = arith.addf %1260, %1262 : vector<1x1xf32>
    %1264 = math.rsqrt %1263 : vector<1x1xf32>
    %1265 = vector.broadcast %1261 : f32 to vector<1x1xf32>
    %1266 = arith.mulf %1265, %1264 : vector<1x1xf32>
    %1267 = vector.broadcast %1266 : vector<1x1xf32> to vector<2x256xf32>
    %1268 = arith.mulf %1253, %1267 : vector<2x256xf32>
    %c1_271 = arith.constant 1 : index
    %1269 = memref.load %arg17[%c1_271] : memref<2xf32, #tpu.memory_space<smem>>
    %1270 = vector.broadcast %1269 : f32 to vector<2x256xf32>
    %1271 = arith.addf %1268, %1270 : vector<2x256xf32>
    %cst_272 = arith.constant 0.000000e+00 : f32
    %1272 = vector.broadcast %cst_272 : f32 to vector<2x256xf32>
    %1273 = arith.maximumf %1271, %1272 : vector<2x256xf32>
    %cst_273 = arith.constant dense<0.000000e+00> : vector<2xf32>
    %1274 = vector.multi_reduction <add>, %1171, %cst_273 [1] : vector<2x256xf32> to vector<2xf32>
    %1275 = vector.shape_cast %1274 : vector<2xf32> to vector<2x1xf32>
    %cst_274 = arith.constant 3.906250e-03 : f32
    %1276 = vector.broadcast %cst_274 : f32 to vector<2x1xf32>
    %1277 = arith.mulf %1275, %1276 : vector<2x1xf32>
    %cst_275 = arith.constant dense<0.000000e+00> : vector<2xf32>
    %1278 = vector.multi_reduction <add>, %1273, %cst_275 [1] : vector<2x256xf32> to vector<2xf32>
    %1279 = vector.shape_cast %1278 : vector<2xf32> to vector<2x1xf32>
    %cst_276 = arith.constant 3.906250e-03 : f32
    %1280 = vector.broadcast %cst_276 : f32 to vector<2x1xf32>
    %1281 = arith.mulf %1279, %1280 : vector<2x1xf32>
    %1282 = tpu.concatenate %1277, %1281 in 1 : vector<2x1xf32>, vector<2x1xf32> -> vector<2x2xf32>
    %c0_277 = arith.constant 0 : index
    %c0_278 = arith.constant 0 : index
    %1283 = vector.load %arg18[%c0_277, %c0_278] : memref<2x64xf32, #tpu.memory_space<vmem>>, vector<2x64xf32>
    %cst_279 = arith.constant dense<0.000000e+00> : vector<2x64xf32>
    %1284 = tpu.matmul %1282, %1283, %cst_279 {dimension_numbers = #tpu.dot_dimension_numbers<[1], [0], [0], [1], [0, 0, 1, 1], [], []>} : vector<2x2xf32>, vector<2x64xf32>, vector<2x64xf32> -> vector<2x64xf32>
    %c0_280 = arith.constant 0 : index
    %c0_281 = arith.constant 0 : index
    %1285 = vector.load %arg19[%c0_280, %c0_281] : memref<1x64xf32, #tpu.memory_space<vmem>>, vector<1x64xf32>
    %1286 = vector.broadcast %1285 : vector<1x64xf32> to vector<2x64xf32>
    %1287 = arith.addf %1284, %1286 : vector<2x64xf32>
    %c0_282 = arith.constant 0 : index
    %c0_283 = arith.constant 0 : index
    %1288 = vector.load %arg20[%c0_282, %c0_283] : memref<64x2xf32, #tpu.memory_space<vmem>>, vector<64x2xf32>
    %cst_284 = arith.constant dense<0.000000e+00> : vector<2x2xf32>
    %1289 = tpu.matmul %1287, %1288, %cst_284 {dimension_numbers = #tpu.dot_dimension_numbers<[1], [0], [0], [1], [0, 0, 1, 1], [], []>} : vector<2x64xf32>, vector<64x2xf32>, vector<2x2xf32> -> vector<2x2xf32>
    %c0_285 = arith.constant 0 : index
    %c0_286 = arith.constant 0 : index
    %1290 = vector.load %arg21[%c0_285, %c0_286] : memref<1x2xf32, #tpu.memory_space<vmem>>, vector<1x2xf32>
    %1291 = vector.broadcast %1290 : vector<1x2xf32> to vector<2x2xf32>
    %1292 = arith.addf %1289, %1291 : vector<2x2xf32>
    %c0_287 = arith.constant 0 : index
    %c0_288 = arith.constant 0 : index
    %1293 = vector.load %arg22[%c0_287, %c0_288] : memref<2x2xf32, #tpu.memory_space<vmem>>, vector<2x2xf32>
    tpu.vector_store %arg22[%c0_287, %c0_288], %1292 {strides = array<i32>} : memref<2x2xf32, #tpu.memory_space<vmem>>, vector<2x2xf32>,
    return
  }
}

</mosaic_0001>

<bundles_post_ra>
// kernel: path_finder_forward.1
= control target key start
LH: loop header
LB: loop body
LE: loop exit
PB: predicated region body
PF: predicated region fallthrough
CT: control target
= control target key end

     0   :  { %s5736_s0 = inlined_call_operand.vmem [shape: f32[2,4,256], index: 0, kind: input, shape index: {}]   ;;  %s5737_s1 = inlined_call_operand.vmem [shape: f32[9,1,256], index: 1, kind: input, shape index: {}]   ;;  %s5738_s2 = inlined_call_operand.vmem [shape: f32[72], index: 2, kind: input, shape index: {}]   ;;  %s5739_s3 = inlined_call_operand.vmem [shape: f32[2], index: 3, kind: input, shape index: {}]   ;;  %s5740_s4 = inlined_call_operand.vmem [shape: f32[2], index: 4, kind: input, shape index: {}]   ;;  %s5741_s5 = inlined_call_operand.vmem [shape: f32[2], index: 5, kind: input, shape index: {}]   ;;  %s5742_s6 = inlined_call_operand.vmem [shape: f32[36], index: 6, kind: input, shape index: {}]   ;;  %s5743_s7 = inlined_call_operand.vmem [shape: f32[2], index: 7, kind: input, shape index: {}]   ;;  %s5744_s8 = inlined_call_operand.vmem [shape: f32[2], index: 8, kind: input, shape index: {}]   ;;  %s5745_s9 = inlined_call_operand.vmem [shape: f32[2], index: 9, kind: input, shape index: {}]   ;;  %s5746_s10 = inlined_call_operand.vmem [shape: f32[36], index: 10, kind: input, shape index: {}]   ;;  %s5747_s11 = inlined_call_operand.vmem [shape: f32[2], index: 11, kind: input, shape index: {}]   ;;  %s5748_s12 = inlined_call_operand.vmem [shape: f32[2], index: 12, kind: input, shape index: {}]   ;;  %s5749_s13 = inlined_call_operand.vmem [shape: f32[2], index: 13, kind: input, shape index: {}]   ;;  %s5750_s14 = inlined_call_operand.vmem [shape: f32[36], index: 14, kind: input, shape index: {}]   ;;  %s5751_s15 = inlined_call_operand.vmem [shape: f32[2], index: 15, kind: input, shape index: {}]   ;;  %s5752_s16 = inlined_call_operand.vmem [shape: f32[2], index: 16, kind: input, shape index: {}]   ;;  %s5753_s17 = inlined_call_operand.vmem [shape: f32[2], index: 17, kind: input, shape index: {}]   ;;  %s5754_s18 = inlined_call_operand.vmem [shape: f32[2,64], index: 18, kind: input, shape index: {}]   ;;  %s5755_s19 = inlined_call_operand.vmem [shape: f32[1,64], index: 19, kind: input, shape index: {}]   ;;  %s5756_s20 = inlined_call_operand.vmem [shape: f32[64,2], index: 20, kind: input, shape index: {}]   ;;  %s5757_s21 = inlined_call_operand.vmem [shape: f32[1,2], index: 21, kind: input, shape index: {}]   ;;  %s5758_s22 = inlined_call_operand.hbm [shape: f32[2,2], index: 22, kind: output, shape index: {}]  }
   0x1   :  { %5810 = sst [smem:[#allocation56_spill]] %s5736_s0 }
   0x2   :  { %5811 = sst [smem:[#allocation57_spill]] %s5737_s1 }
   0x3   :  { %5812 = sst [smem:[#allocation58_spill]] %s5738_s2 }
   0x4   :  { %5813 = sst [smem:[#allocation59_spill]] %s5739_s3 }
   0x5   :  { %5814 = sst [smem:[#allocation60_spill]] %s5740_s4 }
   0x6   :  { %5815 = sst [smem:[#allocation61_spill]] %s5741_s5 }
   0x7   :  { %5816 = sst [smem:[#allocation62_spill]] %s5742_s6 }
   0x8   :  { %5817 = sst [smem:[#allocation63_spill]] %s5754_s18 }
   0x9   :  { %5818 = sst [smem:[#allocation64_spill]] %s5755_s19 }
   0xa   :  { %5819 = sst [smem:[#allocation65_spill]] %s5756_s20 }
   0xb   :  { %5820 = sst [smem:[#allocation66_spill]] %s5757_s21 }
   0xc   :  { %5821 = sst [smem:[#allocation67_spill]] %s5758_s22 }
   0xd   :  { %27 = vsyncpa [#allocation4], 0 }
   0xe   :  { %28 = vsyncpa [#allocation6], 0 }
   0xf   :  { %29 = vsyncpa [#allocation9], 0 }
  0x10   :  { %30 = vsyncpa [#allocation12], 0 }
  0x11   :  { %31 = vsyncpa [#allocation15], 0 }
  0x12   :  { %32 = vsyncpa [#allocation18], 0 }
  0x13   :  { %33 = vsyncpa [#allocation21], 0 }
  0x14   :  { %34 = vsyncpa [#allocation24], 0 }
  0x15   :  { %35 = vsyncpa [#allocation27], 0  ;;  %s5822_s29 = sld [smem:[#allocation59_spill]] }
  0x1b   :  { %s57_s30 = sshll.u32 %s5822_s29, 4  ;;  %s58_s30 = int_to_ptr.vmem [resolvable:$true] %s57_s30 }
  0x1c   :  { %36 = vsyncpa [#allocation3], 0  ;;  %s5823_s23 = sld [smem:[#allocation61_spill]]  ;;  %s3190_s5 = scalar_lea.vmem %s58_s30, 16 }
  0x1d   :  { %p3191_p0 = scmp.ne.s32.totalorder %s58_s30, %s3190_s5  ;;  %p3195_p1 = scmp.lt.s32.totalorder %s58_s30, %s58_s30 }
  0x1e   :  { %p3196_p2 = scmp.lt.s32.totalorder %s3190_s5, %s3190_s5 }
  0x20   :  { %p3197_p3 = por %p3196_p2, %p3195_p1 }
  0x22   :  { %s77_s1 = sshll.u32 %s5823_s23, 4  ;;  %p3198_p4 = pnand %p3197_p3, %p3191_p0  ;;  %s78_s1 = int_to_ptr.vmem [resolvable:$true] %s77_s1 }
  0x24   :  { %3201 = shalt.err (!%p3198_p4)
}
  0x25   :  { %s3422_s24 = smov [#allocation5]   ;;  %s3202_s6 = scalar_lea.vmem %s78_s1, 16 }
  0x26   :  { %60 = dma.vmem_to_smem %s58_s30, 16, %s3422_s24, [#allocation6]  }
  0x27   :  { %p3203_p5 = scmp.ne.s32.totalorder %s78_s1, %s3202_s6  ;;  %p3207_p6 = scmp.lt.s32.totalorder %s78_s1, %s78_s1 }
  0x28   :  { %p3208_p7 = scmp.lt.s32.totalorder %s3202_s6, %s3202_s6 }
  0x2a   :  { %p3209_p8 = por %p3208_p7, %p3207_p6 }
  0x2c   :  { %p3210_p9 = pnand %p3209_p8, %p3203_p5 }
  0x2e   :  { %3213 = shalt.err (!%p3210_p9)
}
  0x2f   :  { %s3423_s25 = smov [#allocation8]   ;;  %s97_s27 = sshll.u32 %s5743_s7, 4  ;;  %s98_s27 = int_to_ptr.vmem [resolvable:$true] %s97_s27 }
  0x30   :  { %80 = dma.vmem_to_smem %s78_s1, 16, %s3423_s25, [#allocation9]  }
  0x31   :  { %s117_s29 = sshll.u32 %s5745_s9, 4  ;;  %s3214_s30 = scalar_lea.vmem %s98_s27, 16  ;;  %s118_s29 = int_to_ptr.vmem [resolvable:$true] %s117_s29 }
  0x32   :  { %p3215_p10 = scmp.ne.s32.totalorder %s98_s27, %s3214_s30  ;;  %p3219_p11 = scmp.lt.s32.totalorder %s98_s27, %s98_s27 }
  0x33   :  { %p3220_p12 = scmp.lt.s32.totalorder %s3214_s30, %s3214_s30 }
  0x35   :  { %p3221_p13 = por %p3220_p12, %p3219_p11 }
  0x37   :  { %p3222_p0 = pnand %p3221_p13, %p3215_p10 }
  0x39   :  { %3225 = shalt.err (!%p3222_p0)
}
  0x3a   :  { %s3424_s4 = smov [#allocation11]   ;;  %s3226_s0 = scalar_lea.vmem %s118_s29, 16 }
  0x3b   :  { %100 = dma.vmem_to_smem %s98_s27, 16, %s3424_s4, [#allocation12]  }
  0x3c   :  { %p3227_p1 = scmp.ne.s32.totalorder %s118_s29, %s3226_s0  ;;  %p3231_p2 = scmp.lt.s32.totalorder %s118_s29, %s118_s29 }
  0x3d   :  { %p3232_p3 = scmp.lt.s32.totalorder %s3226_s0, %s3226_s0 }
  0x3f   :  { %p3233_p4 = por %p3232_p3, %p3231_p2 }
  0x41   :  { %p3234_p5 = pnand %p3233_p4, %p3227_p1 }
  0x43   :  { %3237 = shalt.err (!%p3234_p5)
}
  0x44   :  { %s3425_s7 = smov [#allocation14]   ;;  %s137_s1 = sshll.u32 %s5747_s11, 4  ;;  %s138_s1 = int_to_ptr.vmem [resolvable:$true] %s137_s1 }
  0x45   :  { %120 = dma.vmem_to_smem %s118_s29, 16, %s3425_s7, [#allocation15]  }
  0x46   :  { %s157_s6 = sshll.u32 %s5749_s13, 4  ;;  %s3238_s25 = scalar_lea.vmem %s138_s1, 16  ;;  %s158_s6 = int_to_ptr.vmem [resolvable:$true] %s157_s6 }
  0x47   :  { %p3239_p6 = scmp.ne.s32.totalorder %s138_s1, %s3238_s25  ;;  %p3243_p7 = scmp.lt.s32.totalorder %s138_s1, %s138_s1 }
  0x48   :  { %p3244_p8 = scmp.lt.s32.totalorder %s3238_s25, %s3238_s25 }
  0x4a   :  { %p3245_p9 = por %p3244_p8, %p3243_p7 }
  0x4c   :  { %p3246_p10 = pnand %p3245_p9, %p3239_p6 }
  0x4e   :  { %3249 = shalt.err (!%p3246_p10)
}
  0x4f   :  { %s3426_s26 = smov [#allocation17]   ;;  %s3250_s2 = scalar_lea.vmem %s158_s6, 16 }
  0x50   :  { %140 = dma.vmem_to_smem %s138_s1, 16, %s3426_s26, [#allocation18]  }
  0x51   :  { %p3251_p11 = scmp.ne.s32.totalorder %s158_s6, %s3250_s2  ;;  %p3255_p12 = scmp.lt.s32.totalorder %s158_s6, %s158_s6 }
  0x52   :  { %p3256_p13 = scmp.lt.s32.totalorder %s3250_s2, %s3250_s2 }
  0x54   :  { %p3257_p0 = por %p3256_p13, %p3255_p12 }
  0x56   :  { %p3258_p1 = pnand %p3257_p0, %p3251_p11 }
  0x58   :  { %3261 = shalt.err (!%p3258_p1)
}
  0x59   :  { %s3427_s11 = smov [#allocation20]   ;;  %s177_s3 = sshll.u32 %s5751_s15, 4  ;;  %s178_s3 = int_to_ptr.vmem [resolvable:$true] %s177_s3 }
  0x5a   :  { %160 = dma.vmem_to_smem %s158_s6, 16, %s3427_s11, [#allocation21]  }
  0x5b   :  { %s5824_s30 = sld [smem:[#allocation58_spill]]  ;;  %s3262_s0 = scalar_lea.vmem %s178_s3, 16 }
  0x5c   :  { %p3263_p2 = scmp.ne.s32.totalorder %s178_s3, %s3262_s0  ;;  %p3267_p3 = scmp.lt.s32.totalorder %s178_s3, %s178_s3 }
  0x5d   :  { %p3268_p4 = scmp.lt.s32.totalorder %s3262_s0, %s3262_s0 }
  0x5f   :  { %p3269_p5 = por %p3268_p4, %p3267_p3 }
  0x61   :  { %s47_s4 = sshll.u32 %s5824_s30, 4  ;;  %p3270_p6 = pnand %p3269_p5, %p3263_p2  ;;  %s48_s4 = int_to_ptr.vmem [resolvable:$true] %s47_s4 }
  0x63   :  { %3273 = shalt.err (!%p3270_p6)
}
  0x64   :  { %s3428_s7 = smov [#allocation23]   ;;  %s3274_s9 = scalar_lea.vmem %s48_s4, 16 }
  0x65   :  { %180 = dma.vmem_to_smem %s178_s3, 16, %s3428_s7, [#allocation24]  }
  0x66   :  { %p3275_p7 = scmp.ne.s32.totalorder %s48_s4, %s3274_s9  ;;  %p3279_p8 = scmp.lt.s32.totalorder %s48_s4, %s48_s4 }
  0x67   :  { %p3280_p9 = scmp.lt.s32.totalorder %s3274_s9, %s3274_s9 }
  0x69   :  { %p3281_p10 = por %p3280_p9, %p3279_p8 }
  0x6b   :  { %p3282_p11 = pnand %p3281_p10, %p3275_p7 }
  0x6d   :  { %3285 = shalt.err (!%p3282_p11)
}
  0x6e   :  { %s3429_s15 = smov [#allocation2]   ;;  %s5825_s5 = sld [smem:[#allocation60_spill]] }
  0x6f   :  { %50 = dma.vmem_to_smem %s48_s4, 16, %s3429_s15, [#allocation4]  }
  0x70   :  { %s5826_s26 = sld [smem:[#allocation62_spill]] }
  0x74   :  { %s67_s24 = sshll.u32 %s5825_s5, 4  ;;  %s68_s24 = int_to_ptr.vmem [resolvable:$true] %s67_s24 }
  0x75   :  { %s3286_s11 = scalar_lea.vmem %s68_s24, 16  ;;  %p3291_p13 = scmp.lt.s32.totalorder %s68_s24, %s68_s24 }
  0x76   :  { %s87_s2 = sshll.u32 %s5826_s26, 4  ;;  %p3287_p12 = scmp.ne.s32.totalorder %s68_s24, %s3286_s11  ;;  %s88_s2 = int_to_ptr.vmem [resolvable:$true] %s87_s2 }
  0x77   :  { %p3292_p0 = scmp.lt.s32.totalorder %s3286_s11, %s3286_s11 }
  0x79   :  { %p3293_p1 = por %p3292_p0, %p3291_p13 }
  0x7b   :  { %p3294_p2 = pnand %p3293_p1, %p3287_p12 }
  0x7d   :  { %3297 = shalt.err (!%p3294_p2)
}
  0x7e   :  { %s3430_s13 = smov [#allocation7]   ;;  %s3298_s27 = scalar_lea.vmem %s88_s2, 16 }
  0x7f   :  { %70 = dma.vmem_to_smem %s68_s24, 16, %s3430_s13, [#allocation6]  }
  0x80   :  { %p3299_p3 = scmp.ne.s32.totalorder %s88_s2, %s3298_s27  ;;  %p3303_p4 = scmp.lt.s32.totalorder %s88_s2, %s88_s2 }
  0x81   :  { %p3304_p5 = scmp.lt.s32.totalorder %s3298_s27, %s3298_s27 }
  0x83   :  { %p3305_p6 = por %p3304_p5, %p3303_p4 }
  0x85   :  { %p3306_p7 = pnand %p3305_p6, %p3299_p3 }
  0x87   :  { %3309 = shalt.err (!%p3306_p7)
}
  0x88   :  { %s3431_s3 = smov [#allocation10]   ;;  %s107_s30 = sshll.u32 %s5744_s8, 4  ;;  %s108_s30 = int_to_ptr.vmem [resolvable:$true] %s107_s30 }
  0x89   :  { %90 = dma.vmem_to_smem %s88_s2, 16, %s3431_s3, [#allocation9]  }
  0x8a   :  { %s127_s7 = sshll.u32 %s5746_s10, 4  ;;  %s3310_s9 = scalar_lea.vmem %s108_s30, 16  ;;  %s128_s7 = int_to_ptr.vmem [resolvable:$true] %s127_s7 }
  0x8b   :  { %p3311_p8 = scmp.ne.s32.totalorder %s108_s30, %s3310_s9  ;;  %p3315_p9 = scmp.lt.s32.totalorder %s108_s30, %s108_s30 }
  0x8c   :  { %p3316_p10 = scmp.lt.s32.totalorder %s3310_s9, %s3310_s9 }
  0x8e   :  { %p3317_p11 = por %p3316_p10, %p3315_p9 }
  0x90   :  { %p3318_p12 = pnand %p3317_p11, %p3311_p8 }
  0x92   :  { %3321 = shalt.err (!%p3318_p12)
}
  0x93   :  { %s3432_s15 = smov [#allocation13]   ;;  %s3322_s23 = scalar_lea.vmem %s128_s7, 16 }
  0x94   :  { %110 = dma.vmem_to_smem %s108_s30, 16, %s3432_s15, [#allocation12]  }
  0x95   :  { %p3323_p13 = scmp.ne.s32.totalorder %s128_s7, %s3322_s23  ;;  %p3327_p0 = scmp.lt.s32.totalorder %s128_s7, %s128_s7 }
  0x96   :  { %p3328_p1 = scmp.lt.s32.totalorder %s3322_s23, %s3322_s23 }
  0x98   :  { %p3329_p2 = por %p3328_p1, %p3327_p0 }
  0x9a   :  { %p3330_p3 = pnand %p3329_p2, %p3323_p13 }
  0x9c   :  { %3333 = shalt.err (!%p3330_p3)
}
  0x9d   :  { %s3433_s8 = smov [#allocation16]   ;;  %s147_s5 = sshll.u32 %s5748_s12, 4  ;;  %s148_s5 = int_to_ptr.vmem [resolvable:$true] %s147_s5 }
  0x9e   :  { %130 = dma.vmem_to_smem %s128_s7, 16, %s3433_s8, [#allocation15]  }
  0x9f   :  { %s167_s25 = sshll.u32 %s5750_s14, 4  ;;  %s3334_s26 = scalar_lea.vmem %s148_s5, 16  ;;  %s168_s25 = int_to_ptr.vmem [resolvable:$true] %s167_s25 }
  0xa0   :  { %p3335_p4 = scmp.ne.s32.totalorder %s148_s5, %s3334_s26  ;;  %p3339_p5 = scmp.lt.s32.totalorder %s148_s5, %s148_s5 }
  0xa1   :  { %p3340_p6 = scmp.lt.s32.totalorder %s3334_s26, %s3334_s26 }
  0xa3   :  { %p3341_p7 = por %p3340_p6, %p3339_p5 }
  0xa5   :  { %p3342_p8 = pnand %p3341_p7, %p3335_p4 }
  0xa7   :  { %3345 = shalt.err (!%p3342_p8)
}
  0xa8   :  { %s3434_s2 = smov [#allocation19]   ;;  %s3346_s11 = scalar_lea.vmem %s168_s25, 16 }
  0xa9   :  { %150 = dma.vmem_to_smem %s148_s5, 16, %s3434_s2, [#allocation18]  }
  0xaa   :  { %p3347_p9 = scmp.ne.s32.totalorder %s168_s25, %s3346_s11  ;;  %p3351_p10 = scmp.lt.s32.totalorder %s168_s25, %s168_s25 }
  0xab   :  { %p3352_p11 = scmp.lt.s32.totalorder %s3346_s11, %s3346_s11 }
  0xad   :  { %p3353_p12 = por %p3352_p11, %p3351_p10 }
  0xaf   :  { %p3354_p13 = pnand %p3353_p12, %p3347_p9 }
  0xb1   :  { %3357 = shalt.err (!%p3354_p13)
}
  0xb2   :  { %s3435_s12 = smov [#allocation22]   ;;  %s187_s27 = sshll.u32 %s5752_s16, 4  ;;  %s188_s27 = int_to_ptr.vmem [resolvable:$true] %s187_s27 }
  0xb3   :  { %170 = dma.vmem_to_smem %s168_s25, 16, %s3435_s12, [#allocation21]  }
  0xb4   :  { %s197_s29 = sshll.u32 %s5753_s17, 4  ;;  %s3358_s30 = scalar_lea.vmem %s188_s27, 16  ;;  %s198_s29 = int_to_ptr.vmem [resolvable:$true] %s197_s29 }
  0xb5   :  { %p3359_p0 = scmp.ne.s32.totalorder %s188_s27, %s3358_s30  ;;  %p3363_p1 = scmp.lt.s32.totalorder %s188_s27, %s188_s27 }
  0xb6   :  { %p3364_p2 = scmp.lt.s32.totalorder %s3358_s30, %s3358_s30 }
  0xb8   :  { %p3365_p3 = por %p3364_p2, %p3363_p1 }
  0xba   :  { %p3366_p4 = pnand %p3365_p3, %p3359_p0 }
  0xbc   :  { %3369 = shalt.err (!%p3366_p4)
}
  0xbd   :  { %s3436_s4 = smov [#allocation25]   ;;  %s3370_s0 = scalar_lea.vmem %s198_s29, 16 }
  0xbe   :  { %190 = dma.vmem_to_smem %s188_s27, 16, %s3436_s4, [#allocation24]  }
  0xbf   :  { %p3371_p5 = scmp.ne.s32.totalorder %s198_s29, %s3370_s0  ;;  %p3375_p6 = scmp.lt.s32.totalorder %s198_s29, %s198_s29 }
  0xc0   :  { %p3376_p7 = scmp.lt.s32.totalorder %s3370_s0, %s3370_s0 }
  0xc2   :  { %p3377_p8 = por %p3376_p7, %p3375_p6 }
  0xc4   :  { %p3378_p9 = pnand %p3377_p8, %p3371_p5 }
  0xc6   :  { %3381 = shalt.err (!%p3378_p9)
}
  0xc7   :  { %s3437_s16 = smov [#allocation26]  }
  0xc8   :  { %200 = dma.vmem_to_smem %s198_s29, 16, %s3437_s16, [#allocation27]  }
  0xc9   :  { %3402 = dma.done.wait [#allocation4], 16  }
  0xca   :  { %3403 = vsyncadd [#allocation4], 4294967280 }
  0xcb   :  { %3404 = dma.done.wait [#allocation6], 32  }
  0xcc   :  { %3405 = vsyncadd [#allocation6], 4294967264 }
  0xcd   :  { %3406 = dma.done.wait [#allocation9], 32  }
  0xce   :  { %3407 = vsyncadd [#allocation9], 4294967264 }
  0xcf   :  { %3408 = dma.done.wait [#allocation12], 32  }
  0xd0   :  { %3409 = vsyncadd [#allocation12], 4294967264 }
  0xd1   :  { %3410 = dma.done.wait [#allocation15], 32  }
  0xd2   :  { %3411 = vsyncadd [#allocation15], 4294967264 }
  0xd3   :  { %3412 = dma.done.wait [#allocation18], 32  }
  0xd4   :  { %3413 = vsyncadd [#allocation18], 4294967264 }
  0xd5   :  { %3414 = dma.done.wait [#allocation21], 32  }
  0xd6   :  { %3415 = vsyncadd [#allocation21], 4294967264 }
  0xd7   :  { %3416 = dma.done.wait [#allocation24], 32  }
  0xd8   :  { %3417 = vsyncadd [#allocation24], 4294967264 }
  0xd9   :  { %3418 = dma.done.wait [#allocation27], 16  }
  0xda   :  { %3419 = vsyncadd [#allocation27], 4294967280 }
  0xdb   :  { %257 = sfence }
  0xdc   :  { %v270_v0 = vlaneseq  ;;  %s5827_s9 = sld [smem:[#allocation56_spill]]  ;;  %vm286_vm0 = vcmask 1041409   ;;  %s5771_s8 = smov 17   ;;  %vm1011_vm9 = vcmask 1041408   ;;  %vm3447_vm10 = vmmov 0  }
  0xdd   :  { %s5769_s10 = smov 16   ;;  %s5767_s1 = smov 15   ;;  %vm2718_vm11 = vcmask 7168   ;;  %vm2728_vm12 = vcmask 15360   ;;  %vm2820_vm13 = vcmask 523264   ;;  %vm2894_vm14 = vcmask 9216  }
  0xde   :  { %v271_v1 = vshrl.u32 %v270_v0, 7  ;;  %s5765_s5 = smov 1   ;;  %s5763_s24 = smov 127   ;;  %v3869_v37 = vand.u32 127, %v270_v0 }
  0xdf   :  { %s3775_s6 = sld [smem:[#allocation2 + $0x2]]  ;;  %s5761_s25 = smov 113  }
  0xe0   :  { %v3623_v4 = vsub.s32 1, %v271_v1  ;;  %v3625_v5 = vsub.s32 0, %v271_v1  ;;  %v3627_v6 = vsub.s32 5, %v271_v1  ;;  %v3629_v7 = vsub.s32 4, %v271_v1  ;;  %s3781_s26 = sld [smem:[#allocation2 + $0x3]] }
  0xe1   :  { %v3631_v8 = vsub.s32 6, %v271_v1  ;;  %v3633_v9 = vsub.s32 2, %v271_v1  ;;  %v3665_v22 = vsub.s32 7, %v271_v1  ;;  %v3667_v23 = vsub.s32 3, %v271_v1  ;;  %s3783_s2 = sld [smem:[#allocation2]] }
  0xe2   :  { %v3616_v2 = vld [vmem:[%s5827_s9] sm:$0xff]  ;;  %v3621_v3 = vld [vmem:[%s5827_s9 + $0x8] sm:$0xff]  ;;  %s3785_s11 = sld [smem:[#allocation2 + $0x1]]  ;;  %s5777_s9 = smov 112   ;;  %vm297_vm1 = vcmp.lt.s32.totalorder %v3869_v37, 17  ;;  %vm401_vm2 = vcmp.lt.s32.totalorder %v3869_v37, 16 }
  0xe3   :  { %v316_v10 = vrot.slane %v3616_v2, %v3623_v4  ;;  %v324_v11 = vrot.slane %v3621_v3, %v3623_v4  ;;  %v273_v12 = vrot.slane %v3616_v2, %v3625_v5  ;;  %v281_v13 = vrot.slane %v3621_v3, %v3625_v5  ;;  %s3787_s12 = sld [smem:[#allocation2 + $0x4]] }
  0xe4   :  { %v320_v14 = vrot.slane %v3616_v2, %v3627_v6  ;;  %v328_v15 = vrot.slane %v3621_v3, %v3627_v6  ;;  %v277_v16 = vrot.slane %v3616_v2, %v3629_v7  ;;  %v285_v17 = vrot.slane %v3621_v3, %v3629_v7  ;;  %s3793_s14 = sld [smem:[#allocation2 + $0x5]] }
  0xe5   :  { %v3652_v18 = vsel %vm286_vm0, %v324_v11, %v316_v10  ;;  %v3655_v19 = vsel %vm286_vm0, %v281_v13, %v273_v12  ;;  %v348_v20 = vrot.slane %v3616_v2, %v3631_v8  ;;  %v356_v21 = vrot.slane %v3621_v3, %v3631_v8  ;;  %s3795_s13 = sld [smem:[#allocation2 + $0x6]] }
  0xe6   :  { %333 = vrot.lane.b32.xlu1 %v3652_v18, %s5771_s8  ;;  %291 = vrot.lane.b32.xlu0 %v3655_v19, %s5771_s8  ;;  %v3670_v24 = vsel %vm286_vm0, %v328_v15, %v320_v14  ;;  %v3673_v25 = vsel %vm286_vm0, %v285_v17, %v277_v16  ;;  %v344_v26 = vrot.slane %v3616_v2, %v3633_v9  ;;  %5828 = sst [smem:[#allocation39_spill]] %s3781_s26  ;;  %v710_v38 = vstv %s3775_s6 }
  0xe7   :  { %v352_v27 = vrot.slane %v3621_v3, %v3633_v9  ;;  %v3684_v28 = vsel %vm286_vm0, %v356_v21, %v348_v20  ;;  %v376_v29 = vrot.slane %v3616_v2, %v3665_v22  ;;  %v384_v31 = vrot.slane %v3621_v3, %v3665_v22  ;;  %s3797_s27 = sld [smem:[#allocation2 + $0x7]] }
  0xe8   :  { %v372_v32 = vrot.slane %v3616_v2, %v3667_v23  ;;  %v380_v33 = vrot.slane %v3621_v3, %v3667_v23  ;;  %s3799_s3 = sld [smem:[#allocation2 + $0x8]]  ;;  %v1060_v39 = vstv %s3781_s26  ;;  %v706_v41 = vstv %s3783_s2 }
  0xe9   :  { %v3689_v30 = vsel %vm286_vm0, %v352_v27, %v344_v26  ;;  %v3702_v34 = vsel %vm286_vm0, %v384_v31, %v376_v29  ;;  %s3805_s28 = sld [smem:[#allocation2 + $0x9]]  ;;  %v1056_v42 = vstv %s3785_s11  ;;  %v716_v43 = vstv %s3787_s12 }
  0xea   :  { %335 = vrot.lane.b32.xlu1 %v3670_v24, %s5771_s8  ;;  %293 = vrot.lane.b32.xlu0 %v3673_v25, %s5771_s8  ;;  %v3705_v35 = vsel %vm286_vm0, %v380_v33, %v372_v32  ;;  %s3807_s29 = sld [smem:[#allocation2 + $0xa]]  ;;  %v1066_v45 = vstv %s3793_s14  ;;  %vm445_vm3 = vcmp.lt.s32.totalorder %v3869_v37, 15  ;;  %vm489_vm4 = vcmp.lt.s32.totalorder %v3869_v37, 1 }
  0xeb   :  { %5829 = sst [smem:[#allocation40_spill]] %s3795_s13  ;;  %v722_v46 = vstv %s3795_s13  ;;  %vm533_vm5 = vcmp.lt.s32.totalorder %v3869_v37, 127  ;;  %vm577_vm6 = vcmp.lt.s32.totalorder %v3869_v37, 113  ;;  %vm621_vm7 = vcmp.lt.s32.totalorder %v3869_v37, 112 }
  0xec   :  { %s3809_s30 = sld [smem:[#allocation2 + $0xb]]  ;;  %vm665_vm8 = vcmp.lt.s32.totalorder %v3869_v37, 111 }
  0xed   :  { %s3811_s4 = sld [smem:[#allocation2 + $0xc]]  ;;  %v1072_v47 = vstv %s3797_s27 }
  0xee   :  { %363 = vrot.lane.b32.xlu1 %v3684_v28, %s5771_s8  ;;  %361 = vrot.lane.b32.xlu0 %v3689_v30, %s5771_s8  ;;  %5830 = sst [smem:[#allocation41_spill]] %s3799_s3  ;;  %s5785_s3 = smov 111  }
  0xef   :  { %s3817_s0 = sld [smem:[#allocation2 + $0xd]] }
  0xf0   :  { %s3819_s16 = sld [smem:[#allocation2 + $0xe]] }
  0xf1   :  { %s3821_s17 = sld [smem:[#allocation2 + $0xf]] }
  0xf2   :  { %391 = vrot.lane.b32.xlu1 %v3702_v34, %s5771_s8  ;;  %389 = vrot.lane.b32.xlu0 %v3705_v35, %s5771_s8  ;;  %s3823_s7 = sld [smem:[#allocation2 + $0x10]] }
  0xf3   :  { %s3829_s15 = sld [smem:[#allocation2 + $0x11]] }
  0xf4   :  { %s3831_s23 = sld [smem:[#allocation2 + $0x12]] }
  0xf5   :  { %5831 = sst [smem:[#allocation42_spill]] %s3817_s0 }
  0xf6   :  { %399 = vrot.lane.b32.xlu1 %v3673_v25, %s5769_s10  ;;  %397 = vrot.lane.b32.xlu0 %v3655_v19, %s5769_s10  ;;  %s3847_s8 = sld [smem:[#allocation2 + $0x18]] }
  0xf7   :  { %5832 = sst [smem:[#allocation43_spill]] %s3821_s17 }
  0xf8   :  { %5833 = sst [smem:[#allocation44_spill]] %s3823_s7  ;;  %s5846_s7 = smov 111  }
  0xf9   :  { %s3853_s22 = sld [smem:[#allocation2 + $0x19]] }
  0xfa   :  { %419 = vrot.lane.b32.xlu1 %v3670_v24, %s5769_s10  ;;  %417 = vrot.lane.b32.xlu0 %v3652_v18, %s5769_s10  ;;  %s3855_s21 = sld [smem:[#allocation2 + $0x20]] }
  0xfb   :  { %s5836_s18 = sld [smem:[#allocation57_spill]] }
  0xfc   :  { %5835 = sst [smem:[#allocation46_spill]] %s3847_s8 }
  0xfd   :  { %s3862_s8 = sld [smem:[#allocation2 + $0x1a]] }
  0xfe   :  { %427 = vrot.lane.b32.xlu1 %v3684_v28, %s5769_s10  ;;  %425 = vrot.lane.b32.xlu0 %v3689_v30, %s5769_s10  ;;  %s3873_s19 = sld [smem:[#allocation2 + $0x21]] }
  0xff   :  { %s3890_s26 = sld [smem:[#allocation2 + $0x1c]] }
 0x100   :  { %s3901_s13 = sld [smem:[#allocation2 + $0x23]]  ;;  %v800_v61 = vstv %s3855_s21 }
 0x101   :  { %v258_v36 = vld [vmem:[%s5836_s18] sm:$0x3]  ;;  %v259_v44 = vld [vmem:[%s5836_s18 + $0x2] sm:$0x3]  ;;  %v260_v53 = vld [vmem:[%s5836_s18 + $0x4] sm:$0x3]  ;;  %v801_v20 = vmul.f32 %v800_v61, %v3616_v2 }
 0x102   :  { %435 = vrot.lane.b32.xlu1 %v3702_v34, %s5769_s10  ;;  %433 = vrot.lane.b32.xlu0 %v3705_v35, %s5769_s10  ;;  %s3845_s10 = sld [smem:[#allocation2 + $0x17]]  ;;  %v3876_v40 = vrot.slane %v258_v36, %v3625_v5  ;;  %v3893_v49 = vrot.slane %v258_v36, %v3623_v4  ;;  %v3908_v54 = vrot.slane %v259_v44, %v3625_v5  ;;  %v261_v11 = vld [vmem:[%s5836_s18 + $0x6] sm:$0x3] }
 0x103   :  { %5837 = sst [smem:[#allocation47_spill]] %s3862_s8  ;;  %v3911_v55 = vrot.slane %v259_v44, %v3623_v4  ;;  %v3927_v1 = vrot.slane %v260_v53, %v3625_v5  ;;  %v3945_v17 = vrot.slane %v260_v53, %v3623_v4  ;;  %v3964_v33 = vrot.slane %v261_v11, %v3623_v4 }
 0x104   :  { %5838 = vst [vmem:[#allocation48_spill] sm:$0xff] %v3876_v40  ;;  %5841 = vst [vmem:[#allocation51_spill] sm:$0xff] %v3893_v49  ;;  %s3915_s8 = sld [smem:[#allocation2 + $0x1d]]  ;;  %v1150_v21 = vstv %s3873_s19  ;;  %v808_v32 = vrot.slane %v801_v20, %v3625_v5 }
 0x105   :  { %5840 = sst [smem:[#allocation50_spill]] %s3890_s26  ;;  %5842 = vst [vmem:[#allocation52_spill] sm:$0xff] %v3908_v54  ;;  %5843 = vst [vmem:[#allocation53_spill] sm:$0xff] %v3911_v55  ;;  %v1151_v53 = vmul.f32 %v1150_v21, %v3616_v2 }
 0x106   :  { %443 = vrot.lane.b32.xlu1 %v3673_v25, %s5767_s1  ;;  %441 = vrot.lane.b32.xlu0 %v3655_v19, %s5767_s1  ;;  %s3938_s21 = sld [smem:[#allocation2 + $0x1e]] }
 0x107   :  { %s5847_s17 = sld [smem:[#allocation46_spill]]  ;;  %v1158_v14 = vrot.slane %v1151_v53, %v3625_v5  ;;  %v1162_v13 = vrot.slane %v1151_v53, %v3629_v7 }
 0x108   :  { %5834 = sst [smem:[#allocation45_spill]] %s3845_s10 }
 0x109   :  { %s3860_s10 = sld [smem:[#allocation2 + $0x22]] }
 0x10a   :  { %463 = vrot.lane.b32.xlu1 %v3670_v24, %s5767_s1  ;;  %461 = vrot.lane.b32.xlu0 %v3652_v18, %s5767_s1  ;;  %5844 = sst [smem:[#allocation54_spill]] %s3915_s8 }
 0x10b   :  { %s3959_s0 = sld [smem:[#allocation2 + $0x24]] }
 0x10c   :  { %s3967_s19 = sld [smem:[#allocation2 + $0x26]] }
 0x10d   :  { %s3973_s20 = sld [smem:[#allocation2 + $0x28]] }
 0x10e   :  { %471 = vrot.lane.b32.xlu1 %v3684_v28, %s5767_s1  ;;  %469 = vrot.lane.b32.xlu0 %v3689_v30, %s5767_s1  ;;  %s4039_s26 = sld [smem:[#allocation2 + $0x29]] }
 0x10f   :  { %v828_v12 = vstv %s3860_s10  ;;  %s3949_s10 = sld [smem:[#allocation2 + $0x1f]] }
 0x110   :  { %v830_v26 = vmul.f32 %v828_v12, %v3621_v3  ;;  %s5852_s2 = sld [smem:[#allocation41_spill]] }
 0x111   :  { %s5859_s11 = sld [smem:[#allocation42_spill]] }
 0x112   :  { %479 = vrot.lane.b32.xlu1 %v3702_v34, %s5767_s1  ;;  %477 = vrot.lane.b32.xlu0 %v3705_v35, %s5767_s1  ;;  %s3843_s1 = sld [smem:[#allocation2 + $0x16]]  ;;  %v844_v16 = vrot.slane %v830_v26, %v3623_v4  ;;  %v884_v58 = vstv %s3967_s19 }
 0x113   :  { %s5864_s12 = sld [smem:[#allocation43_spill]] }
 0x114   :  { %s5866_s14 = sld [smem:[#allocation44_spill]] }
 0x115   :  { %s5880_s27 = sld [smem:[#allocation45_spill]] }
 0x116   :  { %487 = vrot.lane.b32.xlu1 %v3673_v25, %s5765_s5  ;;  %485 = vrot.lane.b32.xlu0 %v3655_v19, %s5765_s5  ;;  %s4415_s8 = sld [smem:[#allocation2 + $0x39]] }
 0x117   :  { %s4421_s6 = sld [smem:[#allocation2 + $0x3a]] }
 0x118   :  { %s4833_s19 = sld [smem:[#allocation10 + $0x6]] }
 0x11a   :  { %507 = vrot.lane.b32.xlu1 %v3670_v24, %s5765_s5  ;;  %505 = vrot.lane.b32.xlu0 %v3652_v18, %s5765_s5 }
 0x11e   :  { %515 = vrot.lane.b32.xlu1 %v3684_v28, %s5765_s5  ;;  %513 = vrot.lane.b32.xlu0 %v3689_v30, %s5765_s5 }
 0x122   :  { %523 = vrot.lane.b32.xlu1 %v3702_v34, %s5765_s5  ;;  %521 = vrot.lane.b32.xlu0 %v3705_v35, %s5765_s5  ;;  %s3841_s5 = sld [smem:[#allocation2 + $0x15]] }
 0x126   :  { %531 = vrot.lane.b32.xlu1 %v3673_v25, %s5763_s24  ;;  %529 = vrot.lane.b32.xlu0 %v3655_v19, %s5763_s24 }
 0x12a   :  { %551 = vrot.lane.b32.xlu1 %v3670_v24, %s5763_s24  ;;  %549 = vrot.lane.b32.xlu0 %v3652_v18, %s5763_s24 }
 0x12e   :  { %559 = vrot.lane.b32.xlu1 %v3684_v28, %s5763_s24  ;;  %557 = vrot.lane.b32.xlu0 %v3689_v30, %s5763_s24 }
 0x132   :  { %567 = vrot.lane.b32.xlu1 %v3702_v34, %s5763_s24  ;;  %565 = vrot.lane.b32.xlu0 %v3705_v35, %s5763_s24  ;;  %s3835_s24 = sld [smem:[#allocation2 + $0x14]] }
 0x136   :  { %575 = vrot.lane.b32.xlu1 %v3673_v25, %s5761_s25  ;;  %573 = vrot.lane.b32.xlu0 %v3655_v19, %s5761_s25 }
 0x13a   :  { %595 = vrot.lane.b32.xlu1 %v3670_v24, %s5761_s25  ;;  %593 = vrot.lane.b32.xlu0 %v3652_v18, %s5761_s25 }
 0x13e   :  { %603 = vrot.lane.b32.xlu1 %v3684_v28, %s5761_s25  ;;  %601 = vrot.lane.b32.xlu0 %v3689_v30, %s5761_s25 }
 0x142   :  { %611 = vrot.lane.b32.xlu1 %v3702_v34, %s5761_s25  ;;  %609 = vrot.lane.b32.xlu0 %v3705_v35, %s5761_s25  ;;  %s3833_s25 = sld [smem:[#allocation2 + $0x13]] }
 0x146   :  { %619 = vrot.lane.b32.xlu1 %v3673_v25, %s5777_s9  ;;  %617 = vrot.lane.b32.xlu0 %v3655_v19, %s5777_s9 }
 0x14a   :  { %639 = vrot.lane.b32.xlu1 %v3670_v24, %s5777_s9  ;;  %637 = vrot.lane.b32.xlu0 %v3652_v18, %s5777_s9 }
 0x14e   :  { %647 = vrot.lane.b32.xlu1 %v3684_v28, %s5777_s9  ;;  %645 = vrot.lane.b32.xlu0 %v3689_v30, %s5777_s9 }
 0x152   :  { %655 = vrot.lane.b32.xlu1 %v3702_v34, %s5777_s9  ;;  %653 = vrot.lane.b32.xlu0 %v3705_v35, %s5777_s9  ;;  %s3884_s9 = sld [smem:[#allocation2 + $0x1b]] }
 0x156   :  { %663 = vrot.lane.b32.xlu1 %v3673_v25, %s5785_s3  ;;  %661 = vrot.lane.b32.xlu0 %v3655_v19, %s5785_s3  ;;  %s5848_s3 = sld [smem:[#allocation47_spill]]  ;;  %v802_v25 = vmul.f32 %v800_v61, %v3621_v3  ;;  %v1152_v61 = vmul.f32 %v1150_v21, %v3621_v3  ;;  %v1178_v19 = vstv %s3901_s13 }
 0x157   :  { %s3987_s13 = sld [smem:[#allocation2 + $0x25]]  ;;  %v1180_v15 = vmul.f32 %v1178_v19, %v3621_v3 }
 0x158   :  { %5839 = sst [smem:[#allocation49_spill]] %s3884_s9  ;;  %v3921_v62 = vpop.permute.xlu1 %333  ;;  %v3923_v63 = vpop.permute.xlu0 %291  ;;  %v816_v44 = vrot.slane %v802_v25, %v3625_v5  ;;  %v820_v36 = vrot.slane %v802_v25, %v3629_v7  ;;  %v1179_v25 = vmul.f32 %v1178_v19, %v3616_v2  ;;  %v1166_v10 = vrot.slane %v1152_v61, %v3625_v5 }
 0x159   :  { %s3996_s9 = sld [smem:[#allocation2 + $0x27]]  ;;  %v1170_v0 = vrot.slane %v1152_v61, %v3629_v7  ;;  %v856_v61 = vstv %s3959_s0 }
 0x15a   :  { %683 = vrot.lane.b32.xlu1 %v3670_v24, %s5846_s7  ;;  %681 = vrot.lane.b32.xlu0 %v3652_v18, %s5846_s7  ;;  %v3954_v24 = vrot.slane %v261_v11, %v3625_v5  ;;  %v829_v18 = vmul.f32 %v828_v12, %v3616_v2  ;;  %v812_v11 = vrot.slane %v801_v20, %v3629_v7  ;;  %s4486_s0 = sld [smem:[#allocation2 + $0x41]] }
 0x15b   :  { %v848_v12 = vrot.slane %v830_v26, %v3627_v6  ;;  %v4016_v7 = vsel %vm286_vm0, %v816_v44, %v808_v32  ;;  %v1186_v59 = vrot.slane %v1179_v25, %v3623_v4  ;;  %v4032_v32 = vsel %vm286_vm0, %v1166_v10, %v1158_v14 }
 0x15c   :  { %v336_v27 = vpop.permute.xlu1 %335  ;;  %v294_v29 = vpop.permute.xlu0 %293  ;;  %v836_v21 = vrot.slane %v829_v18, %v3623_v4  ;;  %v1198_v10 = vrot.slane %v1180_v15, %v3627_v6 }
 0x15d   :  { %v299_v14 = vsel %vm297_vm1, %v294_v29, %v3923_v63 }
 0x15e   :  { %691 = vrot.lane.b32.xlu1 %v3684_v28, %s5846_s7  ;;  %689 = vrot.lane.b32.xlu0 %v3689_v30, %s5846_s7  ;;  %v262_v28 = vld [vmem:[%s5836_s18 + $0xa] sm:$0x3]  ;;  %v840_v30 = vrot.slane %v829_v18, %v3627_v6  ;;  %v4022_v53 = vsel %vm286_vm0, %v844_v16, %v836_v21  ;;  %v1190_v16 = vrot.slane %v1179_v25, %v3627_v6 }
 0x15f   :  { %v4007_v60 = vrot.slane %v262_v28, %v3625_v5  ;;  %v4010_v19 = vrot.slane %v262_v28, %v3623_v4  ;;  %v4058_v21 = vmul.f32 %v856_v61, %v3621_v3 }
 0x160   :  { %v364_v20 = vpop.permute.xlu1 %363  ;;  %v362_v31 = vpop.permute.xlu0 %361  ;;  %v4026_v28 = vsel %vm286_vm0, %v848_v12, %v840_v30  ;;  %v337_v12 = vsel %vm297_vm1, %v3921_v62, %v336_v27  ;;  %v4061_v30 = vmul.f32 %v884_v58, %v3616_v2 }
 0x161   :  { %5849 = vst [vmem:[#allocation55_spill] sm:$0xff] %v4010_v19 }
 0x162   :  { %699 = vrot.lane.b32.xlu1 %v3702_v34, %s5846_s7  ;;  %697 = vrot.lane.b32.xlu0 %v3705_v35, %s5846_s7  ;;  %v4019_v34 = vsel %vm286_vm0, %v820_v36, %v812_v11  ;;  %v1194_v35 = vrot.slane %v1180_v15, %v3623_v4  ;;  %v4035_v36 = vsel %vm286_vm0, %v1170_v0, %v1162_v13 }
 0x163   :  { %v338_v11 = vsel %vm297_vm1, %v336_v27, %v3921_v62  ;;  %v4049_v0 = vmul.f32 %v856_v61, %v3616_v2  ;;  %v298_v13 = vsel %vm297_vm1, %v3923_v63, %v294_v29  ;;  %v4067_v15 = vmul.f32 %v884_v58, %v3621_v3 }
 0x164   :  { %v392_v26 = vpop.permute.xlu1 %391  ;;  %v390_v18 = vpop.permute.xlu0 %389  ;;  %v4064_v6 = vsel %vm286_vm0, %v1194_v35, %v1186_v59  ;;  %v339_v57 = vmul.f32 %v338_v11, %v3876_v40  ;;  %v340_v63 = vmul.f32 %v337_v12, %v3893_v49  ;;  %v365_v29 = vsel %vm297_vm1, %v362_v31, %v364_v20 }
 0x165   :  { %v366_v61 = vsel %vm297_vm1, %v364_v20, %v362_v31  ;;  %v311_v59 = vmul.f32 %v3876_v40, %v299_v14  ;;  %v312_v35 = vmul.f32 %v3893_v49, %v298_v13  ;;  %v4080_v58 = vsel %vm286_vm0, %v1198_v10, %v1190_v16 }
 0x166   :  { %v367_v16 = vmul.f32 %v366_v61, %v3876_v40  ;;  %v368_v10 = vmul.f32 %v365_v29, %v3893_v49  ;;  %v393_v14 = vsel %vm297_vm1, %v390_v18, %v392_v26  ;;  %v394_v44 = vsel %vm297_vm1, %v392_v26, %v390_v18 }
 0x167   :  { %v711_v25 = vmul.f32 %v710_v38, %v339_v57  ;;  %v712_v13 = vmul.f32 %v710_v38, %v340_v63  ;;  %v707_v31 = vmul.f32 %v706_v41, %v311_v59  ;;  %v708_v12 = vmul.f32 %v706_v41, %v312_v35 }
 0x168   :  { %v400_v62 = vpop.permute.xlu1 %399  ;;  %v398_v27 = vpop.permute.xlu0 %397  ;;  %v1061_v56 = vmul.f32 %v1060_v39, %v339_v57  ;;  %v1062_v52 = vmul.f32 %v1060_v39, %v340_v63  ;;  %v395_v38 = vmul.f32 %v394_v44, %v3876_v40  ;;  %v396_v29 = vmul.f32 %v393_v14, %v3893_v49 }
 0x169   :  { %v402_v18 = vsel %vm401_vm2, %v398_v27, %v400_v62  ;;  %v403_v26 = vsel %vm401_vm2, %v400_v62, %v398_v27  ;;  %v1057_v61 = vmul.f32 %v1056_v42, %v311_v59  ;;  %v1058_v41 = vmul.f32 %v1056_v42, %v312_v35 }
 0x16a   :  { %v717_v51 = vmul.f32 %v716_v43, %v367_v16  ;;  %v718_v62 = vmul.f32 %v716_v43, %v368_v10  ;;  %v415_v39 = vmul.f32 %v3908_v54, %v403_v26  ;;  %v416_v44 = vmul.f32 %v3911_v55, %v402_v18 }
 0x16b   :  { %v713_v42 = vadd.f32 %v711_v25, %v707_v31  ;;  %v714_v35 = vadd.f32 %v712_v13, %v708_v12  ;;  %v1067_v43 = vmul.f32 %v1066_v45, %v367_v16  ;;  %v1068_v14 = vmul.f32 %v1066_v45, %v368_v10 }
 0x16c   :  { %v420_v11 = vpop.permute.xlu1 %419  ;;  %v418_v20 = vpop.permute.xlu0 %417  ;;  %v723_v26 = vmul.f32 %v722_v46, %v395_v38  ;;  %v724_v18 = vmul.f32 %v722_v46, %v396_v29  ;;  %v1063_v59 = vadd.f32 %v1061_v56, %v1057_v61  ;;  %v1064_v48 = vadd.f32 %v1062_v52, %v1058_v41 }
 0x16d   :  { %v421_v63 = vsel %vm401_vm2, %v418_v20, %v420_v11  ;;  %v422_v50 = vsel %vm401_vm2, %v420_v11, %v418_v20  ;;  %v719_v25 = vadd.f32 %v717_v51, %v713_v42  ;;  %v720_v12 = vadd.f32 %v718_v62, %v714_v35 }
 0x16e   :  { %v1073_v45 = vmul.f32 %v1072_v47, %v395_v38  ;;  %v1074_v16 = vmul.f32 %v1072_v47, %v396_v29  ;;  %v5853_v10 = vstv %s5852_s2  ;;  %v423_v19 = vmul.f32 %v422_v50, %v3908_v54  ;;  %s4429_s2 = sld [smem:[#allocation2 + $0x3b]] }
 0x16f   :  { %v729_v46 = vmul.f32 %v5853_v10, %v415_v39  ;;  %v5854_v49 = vmov %v5853_v10  ;;  %v424_v11 = vmul.f32 %v421_v63, %v3911_v55  ;;  %v1069_v56 = vadd.f32 %v1067_v43, %v1063_v59 }
 0x170   :  { %v428_v27 = vpop.permute.xlu1 %427  ;;  %v426_v57 = vpop.permute.xlu0 %425  ;;  %v730_v40 = vmul.f32 %v5854_v49, %v416_v44  ;;  %v1070_v20 = vadd.f32 %v1068_v14, %v1064_v48  ;;  %v725_v61 = vadd.f32 %v723_v26, %v719_v25  ;;  %v726_v47 = vadd.f32 %v724_v18, %v720_v12 }
 0x171   :  { %v429_v51 = vsel %vm401_vm2, %v426_v57, %v428_v27  ;;  %v430_v52 = vsel %vm401_vm2, %v428_v27, %v426_v57  ;;  %v5855_v29 = vstv %s3805_s28  ;;  %v1075_v27 = vadd.f32 %v1073_v45, %v1069_v56  ;;  %s5905_s28 = sld [smem:[#allocation54_spill]] }
 0x172   :  { %v1079_v38 = vmul.f32 %v5855_v29, %v415_v39  ;;  %v5856_v41 = vmov %v5855_v29  ;;  %v1076_v57 = vadd.f32 %v1074_v16, %v1070_v20  ;;  %v431_v48 = vmul.f32 %v430_v52, %v3908_v54 }
 0x173   :  { %v1080_v49 = vmul.f32 %v5856_v41, %v416_v44  ;;  %v432_v59 = vmul.f32 %v429_v51, %v3911_v55  ;;  %v731_v39 = vadd.f32 %v729_v46, %v725_v61  ;;  %v732_v44 = vadd.f32 %v730_v40, %v726_v47 }
 0x174   :  { %v436_v31 = vpop.permute.xlu1 %435  ;;  %v434_v13 = vpop.permute.xlu0 %433  ;;  %v5857_v35 = vstv %s3807_s29  ;;  %v5860_v40 = vstv %s3809_s30  ;;  %v5862_v56 = vstv %s3811_s4  ;;  %s4319_s29 = sld [smem:[#allocation2 + $0x2d]] }
 0x175   :  { %v437_v50 = vsel %vm401_vm2, %v434_v13, %v436_v31  ;;  %v438_v62 = vsel %vm401_vm2, %v436_v31, %v434_v13  ;;  %v735_v43 = vmul.f32 %v5857_v35, %v423_v19  ;;  %v5858_v14 = vmov %v5857_v35  ;;  %s4323_s30 = sld [smem:[#allocation2 + $0x2e]] }
 0x176   :  { %v736_v26 = vmul.f32 %v5858_v14, %v424_v11  ;;  %v439_v18 = vmul.f32 %v438_v62, %v3908_v54  ;;  %v440_v25 = vmul.f32 %v437_v50, %v3911_v55  ;;  %v1081_v13 = vadd.f32 %v1079_v38, %v1075_v27  ;;  %s4329_s4 = sld [smem:[#allocation2 + $0x2f]] }
 0x177   :  { %v1082_v45 = vadd.f32 %v1080_v49, %v1076_v57  ;;  %v1085_v16 = vmul.f32 %v5860_v40, %v423_v19  ;;  %v5861_v10 = vmov %v5860_v40  ;;  %v741_v20 = vmul.f32 %v5862_v56, %v431_v48 }
 0x178   :  { %v444_v63 = vpop.permute.xlu1 %443  ;;  %v442_v42 = vpop.permute.xlu0 %441  ;;  %v1086_v46 = vmul.f32 %v5861_v10, %v424_v11  ;;  %v5863_v61 = vmov %v5862_v56  ;;  %v737_v38 = vadd.f32 %v735_v43, %v731_v39  ;;  %v738_v50 = vadd.f32 %v736_v26, %v732_v44 }
 0x179   :  { %v446_v12 = vsel %vm445_vm3, %v442_v42, %v444_v63  ;;  %v447_v31 = vsel %vm445_vm3, %v444_v63, %v442_v42  ;;  %v742_v47 = vmul.f32 %v5863_v61, %v432_v59  ;;  %v5865_v11 = vstv %s5859_s11  ;;  %s4437_s11 = sld [smem:[#allocation2 + $0x3c]] }
 0x17a   :  { %v459_v49 = vmul.f32 %v3927_v1, %v447_v31  ;;  %v460_v19 = vmul.f32 %v3945_v17, %v446_v12  ;;  %v1091_v62 = vmul.f32 %v5865_v11, %v431_v48  ;;  %v5867_v63 = vmov %v5865_v11 }
 0x17b   :  { %v1092_v42 = vmul.f32 %v5867_v63, %v432_v59  ;;  %v5868_v27 = vstv %s3819_s16  ;;  %v1087_v39 = vadd.f32 %v1085_v16, %v1081_v13  ;;  %v1088_v44 = vadd.f32 %v1086_v46, %v1082_v45  ;;  %s4339_s16 = sld [smem:[#allocation2 + $0x30]] }
 0x17c   :  { %v464_v51 = vpop.permute.xlu1 %463  ;;  %v462_v52 = vpop.permute.xlu0 %461  ;;  %v747_v57 = vmul.f32 %v5868_v27, %v439_v18  ;;  %v5869_v35 = vmov %v5868_v27  ;;  %v743_v31 = vadd.f32 %v741_v20, %v737_v38  ;;  %v744_v59 = vadd.f32 %v742_v47, %v738_v50 }
 0x17d   :  { %v465_v29 = vsel %vm445_vm3, %v462_v52, %v464_v51  ;;  %v466_v41 = vsel %vm445_vm3, %v464_v51, %v462_v52  ;;  %v748_v14 = vmul.f32 %v5869_v35, %v440_v25  ;;  %v5870_v40 = vstv %s5864_s12  ;;  %s4443_s12 = sld [smem:[#allocation2 + $0x3d]] }
 0x17e   :  { %v467_v43 = vmul.f32 %v466_v41, %v3927_v1  ;;  %v468_v26 = vmul.f32 %v465_v29, %v3945_v17  ;;  %v1097_v10 = vmul.f32 %v5870_v40, %v439_v18  ;;  %v5871_v51 = vmov %v5870_v40 }
 0x17f   :  { %v1098_v52 = vmul.f32 %v5871_v51, %v440_v25  ;;  %v5872_v56 = vstv %s5866_s14  ;;  %v1093_v29 = vadd.f32 %v1091_v62, %v1087_v39  ;;  %v1094_v41 = vadd.f32 %v1092_v42, %v1088_v44  ;;  %s4505_s14 = sld [smem:[#allocation2 + $0x42]] }
 0x180   :  { %v472_v12 = vpop.permute.xlu1 %471  ;;  %v470_v48 = vpop.permute.xlu0 %469  ;;  %v753_v61 = vmul.f32 %v5872_v56, %v459_v49  ;;  %v5873_v13 = vmov %v5872_v56  ;;  %v749_v11 = vadd.f32 %v747_v57, %v743_v31  ;;  %v750_v20 = vadd.f32 %v748_v14, %v744_v59 }
 0x181   :  { %v754_v45 = vmul.f32 %v5873_v13, %v460_v19  ;;  %v473_v16 = vsel %vm445_vm3, %v470_v48, %v472_v12  ;;  %v474_v46 = vsel %vm445_vm3, %v472_v12, %v470_v48  ;;  %v5874_v47 = vstv %s3829_s15  ;;  %s4352_s15 = sld [smem:[#allocation2 + $0x32]] }
 0x182   :  { %v1103_v18 = vmul.f32 %v5874_v47, %v459_v49  ;;  %v5875_v38 = vmov %v5874_v47  ;;  %v5876_v50 = vstv %s3831_s23  ;;  %v475_v56 = vmul.f32 %v474_v46, %v3927_v1  ;;  %s4379_s23 = sld [smem:[#allocation2 + $0x34]] }
 0x183   :  { %v1104_v25 = vmul.f32 %v5875_v38, %v460_v19  ;;  %v759_v63 = vmul.f32 %v5876_v50, %v467_v43  ;;  %v5877_v27 = vmov %v5876_v50  ;;  %v476_v12 = vmul.f32 %v473_v16, %v3945_v17 }
 0x184   :  { %v760_v35 = vmul.f32 %v5877_v27, %v468_v26  ;;  %v480_v40 = vpop.permute.xlu1 %479  ;;  %v478_v51 = vpop.permute.xlu0 %477  ;;  %v1099_v49 = vadd.f32 %v1097_v10, %v1093_v29  ;;  %v1100_v19 = vadd.f32 %v1098_v52, %v1094_v41  ;;  %v755_v57 = vadd.f32 %v753_v61, %v749_v11 }
 0x185   :  { %v481_v62 = vsel %vm445_vm3, %v478_v51, %v480_v40  ;;  %v482_v42 = vsel %vm445_vm3, %v480_v40, %v478_v51  ;;  %v756_v14 = vadd.f32 %v754_v45, %v750_v20  ;;  %v5878_v39 = vstv %s3833_s25  ;;  %s5903_s25 = sld [smem:[#allocation50_spill]] }
 0x186   :  { %v1109_v44 = vmul.f32 %v5878_v39, %v467_v43  ;;  %v5879_v48 = vmov %v5878_v39  ;;  %v483_v59 = vmul.f32 %v482_v42, %v3927_v1  ;;  %v484_v13 = vmul.f32 %v481_v62, %v3945_v17 }
 0x187   :  { %v1110_v31 = vmul.f32 %v5879_v48, %v468_v26  ;;  %v1105_v16 = vadd.f32 %v1103_v18, %v1099_v49  ;;  %v1106_v46 = vadd.f32 %v1104_v25, %v1100_v19  ;;  %v5881_v61 = vrot.slane %v4049_v0, %v3633_v9 }
 0x188   :  { %v488_v10 = vpop.permute.xlu1 %487  ;;  %v486_v52 = vpop.permute.xlu0 %485  ;;  %v5882_v45 = vrot.slane %v4058_v21, %v3633_v9  ;;  %v5883_v26 = vstv %s3987_s13  ;;  %v761_v41 = vadd.f32 %v759_v63, %v755_v57  ;;  %v762_v11 = vadd.f32 %v760_v35, %v756_v14 }
 0x189   :  { %v4249_v29 = vmul.f32 %v5883_v26, %v3616_v2  ;;  %v5884_v20 = vstv %s3835_s24  ;;  %v5886_v25 = vstv %s3841_s5  ;;  %v490_v51 = vsel %vm489_vm4, %v486_v52, %v488_v10  ;;  %s4287_s5 = sld [smem:[#allocation2 + $0x2a]] }
 0x18a   :  { %v4244_v43 = vsel %vm286_vm0, %v5882_v45, %v5881_v61  ;;  %v765_v47 = vmul.f32 %v5884_v20, %v475_v56  ;;  %v5885_v18 = vmov %v5884_v20  ;;  %v1115_v50 = vmul.f32 %v5886_v25, %v475_v56  ;;  %s4303_s24 = sld [smem:[#allocation2 + $0x2c]] }
 0x18b   :  { %v766_v38 = vmul.f32 %v5885_v18, %v476_v12  ;;  %v5887_v27 = vmov %v5886_v25  ;;  %v491_v62 = vsel %vm489_vm4, %v488_v10, %v486_v52  ;;  %v1111_v42 = vadd.f32 %v1109_v44, %v1105_v16 }
 0x18c   :  { %v1116_v40 = vmul.f32 %v5887_v27, %v476_v12  ;;  %v1112_v49 = vadd.f32 %v1110_v31, %v1106_v46  ;;  %v5888_v19 = vstv %s3843_s1  ;;  %v5890_v14 = vstv %s5880_s27  ;;  %v508_v45 = vpop.permute.xlu1 %507  ;;  %v506_v10 = vpop.permute.xlu0 %505  ;;  %s5893_s1 = sld [smem:[#allocation49_spill]] }
 0x18d   :  { %v771_v63 = vmul.f32 %v5888_v19, %v483_v59  ;;  %v5889_v35 = vmov %v5888_v19  ;;  %v1121_v56 = vmul.f32 %v5890_v14, %v483_v59  ;;  %v5891_v39 = vmov %v5890_v14  ;;  %s4821_s27 = sld [smem:[#allocation10]] }
 0x18e   :  { %v772_v57 = vmul.f32 %v5889_v35, %v484_v13  ;;  %v1122_v12 = vmul.f32 %v5891_v39, %v484_v13  ;;  %v503_v48 = vmul.f32 %v3954_v24, %v491_v62  ;;  %v504_v61 = vmul.f32 %v3964_v33, %v490_v51 }
 0x18f   :  { %v767_v44 = vadd.f32 %v765_v47, %v761_v41  ;;  %v768_v16 = vadd.f32 %v766_v38, %v762_v11  ;;  %v509_v31 = vsel %vm489_vm4, %v506_v10, %v508_v45  ;;  %v510_v46 = vsel %vm489_vm4, %v508_v45, %v506_v10 }
 0x190   :  { %v1117_v52 = vadd.f32 %v1115_v50, %v1111_v42  ;;  %v1118_v59 = vadd.f32 %v1116_v40, %v1112_v49  ;;  %v5892_v26 = vstv %s5847_s17  ;;  %v5895_v25 = vstv %s3853_s22  ;;  %v516_v42 = vpop.permute.xlu1 %515  ;;  %v514_v40 = vpop.permute.xlu0 %513  ;;  %s4297_s22 = sld [smem:[#allocation2 + $0x2b]] }
 0x191   :  { %v777_v13 = vmul.f32 %v5892_v26, %v503_v48  ;;  %v5894_v20 = vmov %v5892_v26  ;;  %v1127_v27 = vmul.f32 %v5895_v25, %v503_v48  ;;  %v5896_v41 = vmov %v5895_v25  ;;  %s4350_s17 = sld [smem:[#allocation2 + $0x31]] }
 0x192   :  { %v778_v18 = vmul.f32 %v5894_v20, %v504_v61  ;;  %v1128_v11 = vmul.f32 %v5896_v41, %v504_v61  ;;  %v511_v47 = vmul.f32 %v510_v46, %v3954_v24  ;;  %v512_v38 = vmul.f32 %v509_v31, %v3964_v33 }
 0x193   :  { %v773_v51 = vadd.f32 %v771_v63, %v767_v44  ;;  %v774_v62 = vadd.f32 %v772_v57, %v768_v16  ;;  %v1123_v19 = vadd.f32 %v1121_v56, %v1117_v52  ;;  %v1124_v50 = vadd.f32 %v1122_v12, %v1118_v59 }
 0x194   :  { %v5897_v49 = vstv %s5848_s3  ;;  %v5899_v48 = vstv %s5893_s1  ;;  %v517_v57 = vsel %vm489_vm4, %v514_v40, %v516_v42  ;;  %v518_v56 = vsel %vm489_vm4, %v516_v42, %v514_v40  ;;  %v522_v25 = vpop.permute.xlu0 %521  ;;  %s4388_s3 = sld [smem:[#allocation2 + $0x36]] }
 0x195   :  { %v783_v35 = vmul.f32 %v5897_v49, %v511_v47  ;;  %v5898_v14 = vmov %v5897_v49  ;;  %v1133_v45 = vmul.f32 %v5899_v48, %v511_v47  ;;  %v5900_v61 = vmov %v5899_v48  ;;  %s4460_s1 = sld [smem:[#allocation2 + $0x3e]] }
 0x196   :  { %v784_v39 = vmul.f32 %v5898_v14, %v512_v38  ;;  %v1134_v10 = vmul.f32 %v5900_v61, %v512_v38  ;;  %v779_v31 = vadd.f32 %v777_v13, %v773_v51  ;;  %v780_v63 = vadd.f32 %v778_v18, %v774_v62 }
 0x197   :  { %v1129_v12 = vadd.f32 %v1127_v27, %v1123_v19  ;;  %v1130_v44 = vadd.f32 %v1128_v11, %v1124_v50  ;;  %v5901_v16 = vrot.slane %v4049_v0, %v3631_v8  ;;  %v5902_v46 = vrot.slane %v4058_v21, %v3631_v8  ;;  %v524_v21 = vpop.permute.xlu1 %523 }
 0x198   :  { %v5904_v59 = vstv %s3987_s13  ;;  %v785_v13 = vadd.f32 %v783_v35, %v779_v31  ;;  %v786_v20 = vadd.f32 %v784_v39, %v780_v63  ;;  %v519_v0 = vmul.f32 %v518_v56, %v3954_v24  ;;  %s4409_s13 = sld [smem:[#allocation2 + $0x38]] }
 0x199   :  { %v4312_v52 = vsel %vm286_vm0, %v5902_v46, %v5901_v16  ;;  %v4317_v26 = vmul.f32 %v5904_v59, %v3621_v3  ;;  %v520_v18 = vmul.f32 %v517_v57, %v3964_v33  ;;  %v1135_v27 = vadd.f32 %v1133_v45, %v1129_v12  ;;  %v530_v12 = vpop.permute.xlu0 %529 }
 0x19a   :  { %v1136_v41 = vadd.f32 %v1134_v10, %v1130_v44  ;;  %v525_v11 = vsel %vm489_vm4, %v522_v25, %v524_v21  ;;  %v526_v47 = vsel %vm489_vm4, %v524_v21, %v522_v25  ;;  %v5906_v38 = vstv %s5903_s25  ;;  %s4464_s25 = sld [smem:[#allocation2 + $0x3f]] }
 0x19b   :  { %v789_v51 = vmul.f32 %v5906_v38, %v519_v0  ;;  %v5907_v62 = vmov %v5906_v38  ;;  %v5908_v50 = vstv %s5905_s28  ;;  %v527_v35 = vmul.f32 %v526_v47, %v3954_v24  ;;  %v532_v56 = vpop.permute.xlu1 %531  ;;  %s4478_s28 = sld [smem:[#allocation2 + $0x40]] }
 0x19c   :  { %v790_v19 = vmul.f32 %v5907_v62, %v520_v18  ;;  %v1139_v42 = vmul.f32 %v5908_v50, %v519_v0  ;;  %v5909_v40 = vmov %v5908_v50  ;;  %v528_v14 = vmul.f32 %v525_v11, %v3964_v33 }
 0x19d   :  { %v1140_v49 = vmul.f32 %v5909_v40, %v520_v18  ;;  %v5910_v39 = vstv %s3996_s9  ;;  %v791_v10 = vadd.f32 %v789_v51, %v785_v13  ;;  %v5912_v44 = vstv %s3938_s21  ;;  %s4362_s9 = sld [smem:[#allocation2 + $0x33]] }
 0x19e   :  { %v1235_v48 = vmul.f32 %v5910_v39, %v3616_v2  ;;  %v5911_v45 = vmov %v5910_v39  ;;  %v792_v31 = vadd.f32 %v790_v19, %v786_v20  ;;  %v1141_v63 = vadd.f32 %v1139_v42, %v1135_v27  ;;  %s4381_s21 = sld [smem:[#allocation2 + $0x35]]  ;;  %v550_v42 = vpop.permute.xlu0 %549 }
 0x19f   :  { %v1236_v61 = vmul.f32 %v5911_v45, %v3621_v3  ;;  %v1142_v57 = vadd.f32 %v1140_v49, %v1136_v41  ;;  %v795_v16 = vmul.f32 %v5912_v44, %v527_v35  ;;  %v5913_v46 = vmov %v5912_v44 }
 0x1a0   :  { %v796_v59 = vmul.f32 %v5913_v46, %v528_v14  ;;  %v5914_v0 = vstv %s3949_s10  ;;  %v5916_v3 = vrot.slane %v4061_v30, %v3667_v23  ;;  %v5917_v13 = vrot.slane %v4067_v15, %v3667_v23  ;;  %s4394_s10 = sld [smem:[#allocation2 + $0x37]] }
 0x1a1   :  { %v1145_v18 = vmul.f32 %v5914_v0, %v527_v35  ;;  %v5915_v2 = vmov %v5914_v0  ;;  %v1214_v25 = vrot.slane %v4249_v29, %v3633_v9  ;;  %v1218_v27 = vrot.slane %v4249_v29, %v3631_v8 }
 0x1a2   :  { %v1146_v21 = vmul.f32 %v5915_v2, %v528_v14  ;;  %v4371_v20 = vsel %vm286_vm0, %v5917_v13, %v5916_v3  ;;  %v1222_v41 = vrot.slane %v4317_v26, %v3633_v9  ;;  %v797_v11 = vadd.f32 %v795_v16, %v791_v10  ;;  %v552_v9 = vpop.permute.xlu1 %551 }
 0x1a3   :  { %v798_v47 = vadd.f32 %v796_v59, %v792_v31  ;;  %v1147_v38 = vadd.f32 %v1145_v18, %v1141_v63  ;;  %v1226_v62 = vrot.slane %v4317_v26, %v3631_v8  ;;  %v1242_v19 = vrot.slane %v1235_v48, %v3667_v23  ;;  %v558_v31 = vpop.permute.xlu0 %557 }
 0x1a4   :  { %v1148_v51 = vadd.f32 %v1146_v21, %v1142_v57  ;;  %v1246_v29 = vrot.slane %v1235_v48, %v3665_v22  ;;  %v1250_v50 = vrot.slane %v1236_v61, %v3667_v23  ;;  %v825_v40 = vadd.f32 %v4016_v7, %v797_v11 }
 0x1a5   :  { %v826_v49 = vadd.f32 %v4019_v34, %v798_v47  ;;  %v1254_v14 = vrot.slane %v1236_v61, %v3665_v22  ;;  %v1175_v8 = vadd.f32 %v4032_v32, %v1147_v38  ;;  %v5918_v23 = vrot.slane %v4061_v30, %v3665_v22 }
 0x1a6   :  { %v1176_v35 = vadd.f32 %v4035_v36, %v1148_v51  ;;  %v5919_v26 = vrot.slane %v4067_v15, %v3665_v22  ;;  %v918_v39 = vstv %s4287_s5  ;;  %v1268_v34 = vstv %s4297_s22  ;;  %v263_v36 = vld [vmem:[%s5836_s18 + $0xc] sm:$0x3]  ;;  %v560_v61 = vpop.permute.xlu1 %559  ;;  %s4531_s5 = sld [smem:[#allocation2 + $0x45]] }
 0x1a7   :  { %v853_v32 = vadd.f32 %v4022_v53, %v825_v40  ;;  %v854_v48 = vadd.f32 %v4026_v28, %v826_v49  ;;  %v924_v45 = vstv %s4303_s24  ;;  %v1227_v22 = vsel %vm286_vm0, %v1222_v41, %v1214_v25  ;;  %v566_v3 = vpop.permute.xlu0 %565  ;;  %s4667_s22 = sld [smem:[#allocation2 + $0x46]] }
 0x1a8   :  { %v906_v7 = vsel %vm286_vm0, %v5919_v26, %v5918_v23  ;;  %v1204_v30 = vadd.f32 %v4080_v58, %v1176_v35  ;;  %v1228_v15 = vsel %vm286_vm0, %v1226_v62, %v1218_v27  ;;  %v1274_v10 = vstv %s4319_s29  ;;  %v5920_v27 = vld [vmem:[#allocation55_spill] sm:$0xff]  ;;  %s4669_s24 = sld [smem:[#allocation2 + $0x47]] }
 0x1a9   :  { %v930_v63 = vstv %s4323_s30  ;;  %v1255_v53 = vsel %vm286_vm0, %v1250_v50, %v1242_v19  ;;  %v1256_v28 = vsel %vm286_vm0, %v1254_v14, %v1246_v29  ;;  %v1280_v58 = vstv %s4329_s4  ;;  %s4701_s29 = sld [smem:[#allocation5 + $0x1]] }
 0x1aa   :  { %v4427_v57 = vrot.slane %v263_v36, %v3625_v5  ;;  %v1203_v44 = vadd.f32 %v4064_v6, %v1175_v8  ;;  %v534_v16 = vsel %vm533_vm5, %v530_v12, %v532_v56  ;;  %v535_v46 = vsel %vm533_vm5, %v532_v56, %v530_v12  ;;  %v568_v6 = vpop.permute.xlu1 %567  ;;  %s4707_s30 = sld [smem:[#allocation5]] }
 0x1ab   :  { %v936_v59 = vstv %s4339_s16  ;;  %v881_v0 = vadd.f32 %v4244_v43, %v853_v32  ;;  %v882_v18 = vadd.f32 %v4312_v52, %v854_v48  ;;  %v1286_v2 = vstv %s4350_s17  ;;  %v264_v43 = vld [vmem:[%s5836_s18 + $0xe] sm:$0x3]  ;;  %v574_v14 = vpop.permute.xlu0 %573  ;;  %s1042_s4 = sld [smem:[#allocation7]] }
 0x1ac   :  { %v942_v21 = vstv %s4352_s15  ;;  %v4446_v13 = vrot.slane %v263_v36, %v3623_v4  ;;  %v1292_v25 = vstv %s4362_s9  ;;  %v948_v56 = vstv %s4379_s23  ;;  %s1049_s16 = sld [smem:[#allocation8]]  ;;  %s5925_s9 = smov 17  }
 0x1ad   :  { %v1298_v12 = vstv %s4381_s21  ;;  %v547_v52 = vmul.f32 %v4007_v60, %v534_v16  ;;  %v548_v41 = vmul.f32 %v5920_v27, %v535_v46  ;;  %v553_v11 = vsel %vm533_vm5, %v550_v42, %v552_v9  ;;  %s2991_s17 = sld [smem:[#allocation7 + $0x1]]  ;;  %s5926_s23 = smov 16  }
 0x1ae   :  { %v554_v47 = vsel %vm533_vm5, %v552_v9, %v550_v42  ;;  %v1231_v38 = vadd.f32 %v1227_v22, %v1203_v44  ;;  %v1232_v51 = vadd.f32 %v1228_v15, %v1204_v30  ;;  %v954_v62 = vstv %s4388_s3  ;;  %v576_v35 = vpop.permute.xlu1 %575  ;;  %s2992_s15 = sld [smem:[#allocation8 + $0x1]]  ;;  %s5927_s21 = smov 15  }
 0x1af   :  { %v1304_v19 = vstv %s4394_s10  ;;  %v909_v29 = vadd.f32 %v4371_v20, %v881_v0  ;;  %v910_v50 = vadd.f32 %v906_v7, %v882_v18  ;;  %v4469_v9 = vrot.slane %v264_v43, %v3625_v5  ;;  %s5928_s3 = smov 1   ;;  %s5929_s10 = smov 127  }
 0x1b0   :  { %v4472_v42 = vrot.slane %v264_v43, %v3623_v4  ;;  %v555_v40 = vmul.f32 %v553_v11, %v4007_v60  ;;  %v556_v49 = vmul.f32 %v554_v47, %v5920_v27  ;;  %v960_v8 = vstv %s4409_s13  ;;  %s5930_s13 = smov 113  }
 0x1b1   :  { %v1310_v20 = vstv %s4415_s8  ;;  %v5921_v23 = vstv %s3973_s20  ;;  %v966_v32 = vstv %s4421_s6  ;;  %v1316_v48 = vstv %s4429_s2  ;;  %s5931_s8 = smov 112   ;;  %s4813_s6 = sld [smem:[#allocation10 + $0x10]] }
 0x1b2   :  { %v913_v26 = vmul.f32 %v5921_v23, %v547_v52  ;;  %v5922_v7 = vmov %v5921_v23  ;;  %v1259_v30 = vadd.f32 %v1255_v53, %v1231_v38  ;;  %v1260_v22 = vadd.f32 %v1256_v28, %v1232_v51  ;;  %v596_v28 = vpop.permute.xlu1 %595  ;;  %v594_v38 = vpop.permute.xlu0 %593  ;;  %s4815_s2 = sld [smem:[#allocation10 + $0x11]] }
 0x1b3   :  { %v914_v36 = vmul.f32 %v5922_v7, %v548_v41  ;;  %v561_v15 = vsel %vm533_vm5, %v558_v31, %v560_v61  ;;  %v562_v44 = vsel %vm533_vm5, %v560_v61, %v558_v31  ;;  %v972_v0 = vstv %s4437_s11  ;;  %v265_v61 = vld [vmem:[%s5836_s18 + $0x10] sm:$0x3]  ;;  %s4523_s18 = sld [smem:[#allocation2 + $0x44]] }
 0x1b4   :  { %v915_v16 = vadd.f32 %v913_v26, %v909_v29  ;;  %v1322_v18 = vstv %s4443_s12  ;;  %v5923_v43 = vstv %s4039_s26  ;;  %v919_v7 = vmul.f32 %v918_v39, %v555_v40  ;;  %s4513_s26 = sld [smem:[#allocation2 + $0x43]] }
 0x1b5   :  { %v916_v46 = vadd.f32 %v914_v36, %v910_v50  ;;  %v1263_v11 = vmul.f32 %v5923_v43, %v547_v52  ;;  %v5924_v47 = vmov %v5923_v43  ;;  %v920_v53 = vmul.f32 %v918_v39, %v556_v49  ;;  %s4817_s11 = sld [smem:[#allocation10 + $0x12]] }
 0x1b6   :  { %v1264_v23 = vmul.f32 %v5924_v47, %v548_v41  ;;  %v563_v31 = vmul.f32 %v561_v15, %v4007_v60  ;;  %v564_v52 = vmul.f32 %v562_v44, %v5920_v27  ;;  %v569_v41 = vsel %vm533_vm5, %v566_v3, %v568_v6  ;;  %s4819_s12 = sld [smem:[#allocation10 + $0x13]] }
 0x1b7   :  { %v570_v39 = vsel %vm533_vm5, %v568_v6, %v566_v3  ;;  %v1265_v51 = vadd.f32 %v1263_v11, %v1259_v30  ;;  %v978_v50 = vstv %s4460_s1  ;;  %v1328_v26 = vstv %s4464_s25  ;;  %s4823_s1 = sld [smem:[#allocation10 + $0x1]] }
 0x1b8   :  { %v1266_v29 = vadd.f32 %v1264_v23, %v1260_v22  ;;  %v921_v36 = vadd.f32 %v919_v7, %v915_v16  ;;  %v922_v15 = vadd.f32 %v920_v53, %v916_v46  ;;  %v4518_v44 = vrot.slane %v265_v61, %v3625_v5  ;;  %v604_v16 = vpop.permute.xlu1 %603  ;;  %v602_v46 = vpop.permute.xlu0 %601  ;;  %s4825_s25 = sld [smem:[#allocation10 + $0x2]] }
 0x1b9   :  { %v4521_v43 = vrot.slane %v265_v61, %v3623_v4  ;;  %v1269_v6 = vmul.f32 %v1268_v34, %v555_v40  ;;  %v1270_v3 = vmul.f32 %v1268_v34, %v556_v49  ;;  %v571_v30 = vmul.f32 %v569_v41, %v4007_v60  ;;  %s4831_s20 = sld [smem:[#allocation10 + $0x5]] }
 0x1ba   :  { %v572_v22 = vmul.f32 %v570_v39, %v5920_v27  ;;  %v925_v4 = vmul.f32 %v924_v45, %v563_v31  ;;  %v926_v5 = vmul.f32 %v924_v45, %v564_v52  ;;  %v984_v40 = vstv %s4478_s28  ;;  %s4827_s28 = sld [smem:[#allocation10 + $0x3]] }
 0x1bb   :  { %v1334_v34 = vstv %s4486_s0  ;;  %v1271_v49 = vadd.f32 %v1269_v6, %v1265_v51  ;;  %v1272_v11 = vadd.f32 %v1270_v3, %v1266_v29  ;;  %v578_v47 = vsel %vm577_vm6, %v574_v14, %v576_v35  ;;  %s4829_s0 = sld [smem:[#allocation10 + $0x4]] }
 0x1bc   :  { %v579_v23 = vsel %vm577_vm6, %v576_v35, %v574_v14  ;;  %v927_v7 = vadd.f32 %v925_v4, %v921_v36  ;;  %v928_v53 = vadd.f32 %v926_v5, %v922_v15  ;;  %v1275_v45 = vmul.f32 %v1274_v10, %v563_v31  ;;  %v612_v6 = vpop.permute.xlu1 %611  ;;  %v610_v35 = vpop.permute.xlu0 %609 }
 0x1bd   :  { %v1276_v61 = vmul.f32 %v1274_v10, %v564_v52  ;;  %v931_v41 = vmul.f32 %v930_v63, %v571_v30  ;;  %v932_v39 = vmul.f32 %v930_v63, %v572_v22  ;;  %v597_v51 = vsel %vm577_vm6, %v594_v38, %v596_v28 }
 0x1be   :  { %v598_v29 = vsel %vm577_vm6, %v596_v28, %v594_v38  ;;  %v591_v14 = vmul.f32 %v4427_v57, %v578_v47  ;;  %v592_v36 = vmul.f32 %v4446_v13, %v579_v23  ;;  %v990_v31 = vstv %s4505_s14  ;;  %s4835_s14 = sld [smem:[#allocation10 + $0x7]] }
 0x1bf   :  { %v1340_v10 = vstv %s4513_s26  ;;  %v1277_v52 = vadd.f32 %v1275_v45, %v1271_v49  ;;  %v1278_v63 = vadd.f32 %v1276_v61, %v1272_v11  ;;  %v1281_v15 = vmul.f32 %v1280_v58, %v571_v30  ;;  %s4837_s26 = sld [smem:[#allocation10 + $0x8]] }
 0x1c0   :  { %v1282_v28 = vmul.f32 %v1280_v58, %v572_v22  ;;  %v599_v38 = vmul.f32 %v597_v51, %v4427_v57  ;;  %v600_v3 = vmul.f32 %v598_v29, %v4446_v13  ;;  %v605_v4 = vsel %vm577_vm6, %v602_v46, %v604_v16  ;;  %v620_v11 = vpop.permute.xlu1 %619  ;;  %v618_v23 = vpop.permute.xlu0 %617 }
 0x1c1   :  { %v606_v5 = vsel %vm577_vm6, %v604_v16, %v602_v46  ;;  %v933_v47 = vadd.f32 %v931_v41, %v927_v7  ;;  %v934_v49 = vadd.f32 %v932_v39, %v928_v53  ;;  %v996_v30 = vstv %s4523_s18  ;;  %s4839_s18 = sld [smem:[#allocation10 + $0x9]] }
 0x1c2   :  { %v1346_v58 = vstv %s4531_s5  ;;  %v937_v22 = vmul.f32 %v936_v59, %v591_v14  ;;  %v938_v45 = vmul.f32 %v936_v59, %v592_v36  ;;  %v1287_v61 = vmul.f32 %v1286_v2, %v591_v14  ;;  %s4841_s5 = sld [smem:[#allocation10 + $0xa]] }
 0x1c3   :  { %v1288_v51 = vmul.f32 %v1286_v2, %v592_v36  ;;  %v607_v16 = vmul.f32 %v605_v4, %v4427_v57  ;;  %v608_v46 = vmul.f32 %v606_v5, %v4446_v13  ;;  %v613_v7 = vsel %vm577_vm6, %v610_v35, %v612_v6 }
 0x1c4   :  { %v614_v53 = vsel %vm577_vm6, %v612_v6, %v610_v35  ;;  %v1283_v41 = vadd.f32 %v1281_v15, %v1277_v52  ;;  %v1284_v39 = vadd.f32 %v1282_v28, %v1278_v63  ;;  %v943_v59 = vmul.f32 %v942_v21, %v599_v38  ;;  %v640_v35 = vpop.permute.xlu1 %639  ;;  %v638_v52 = vpop.permute.xlu0 %637 }
 0x1c5   :  { %v944_v29 = vmul.f32 %v942_v21, %v600_v3  ;;  %v1293_v2 = vmul.f32 %v1292_v25, %v599_v38  ;;  %v1294_v14 = vmul.f32 %v1292_v25, %v600_v3  ;;  %v622_v36 = vsel %vm621_vm7, %v618_v23, %v620_v11 }
 0x1c6   :  { %v623_v6 = vsel %vm621_vm7, %v620_v11, %v618_v23  ;;  %v939_v63 = vadd.f32 %v937_v22, %v933_v47  ;;  %v940_v15 = vadd.f32 %v938_v45, %v934_v49  ;;  %v615_v28 = vmul.f32 %v613_v7, %v4427_v57 }
 0x1c7   :  { %v616_v21 = vmul.f32 %v614_v53, %v4446_v13  ;;  %v1289_v4 = vadd.f32 %v1287_v61, %v1283_v41  ;;  %v1290_v38 = vadd.f32 %v1288_v51, %v1284_v39  ;;  %v949_v25 = vmul.f32 %v948_v56, %v607_v16 }
 0x1c8   :  { %v950_v3 = vmul.f32 %v948_v56, %v608_v46  ;;  %v1299_v5 = vmul.f32 %v1298_v12, %v607_v16  ;;  %v1300_v47 = vmul.f32 %v1298_v12, %v608_v46  ;;  %v635_v49 = vmul.f32 %v4469_v9, %v622_v36  ;;  %v648_v51 = vpop.permute.xlu1 %647  ;;  %v646_v56 = vpop.permute.xlu0 %645 }
 0x1c9   :  { %v636_v11 = vmul.f32 %v4472_v42, %v623_v6  ;;  %v945_v23 = vadd.f32 %v943_v59, %v939_v63  ;;  %v946_v22 = vadd.f32 %v944_v29, %v940_v15  ;;  %v1295_v45 = vadd.f32 %v1293_v2, %v1289_v4 }
 0x1ca   :  { %v1296_v61 = vadd.f32 %v1294_v14, %v1290_v38  ;;  %v955_v7 = vmul.f32 %v954_v62, %v615_v28  ;;  %v956_v16 = vmul.f32 %v954_v62, %v616_v21  ;;  %v641_v12 = vsel %vm621_vm7, %v638_v52, %v640_v35 }
 0x1cb   :  { %v642_v46 = vsel %vm621_vm7, %v640_v35, %v638_v52  ;;  %v951_v53 = vadd.f32 %v949_v25, %v945_v23  ;;  %v952_v41 = vadd.f32 %v950_v3, %v946_v22  ;;  %v1305_v39 = vmul.f32 %v1304_v19, %v615_v28 }
 0x1cc   :  { %v1306_v59 = vmul.f32 %v1304_v19, %v616_v21  ;;  %v961_v29 = vmul.f32 %v960_v8, %v635_v49  ;;  %v962_v2 = vmul.f32 %v960_v8, %v636_v11  ;;  %v649_v62 = vsel %vm621_vm7, %v646_v56, %v648_v51  ;;  %v656_v63 = vpop.permute.xlu1 %655  ;;  %v654_v19 = vpop.permute.xlu0 %653 }
 0x1cd   :  { %v650_v14 = vsel %vm621_vm7, %v648_v51, %v646_v56  ;;  %v1301_v36 = vadd.f32 %v1299_v5, %v1295_v45  ;;  %v1302_v6 = vadd.f32 %v1300_v47, %v1296_v61  ;;  %v643_v35 = vmul.f32 %v641_v12, %v4469_v9 }
 0x1ce   :  { %v644_v52 = vmul.f32 %v642_v46, %v4472_v42  ;;  %v957_v15 = vadd.f32 %v955_v7, %v951_v53  ;;  %v958_v8 = vadd.f32 %v956_v16, %v952_v41  ;;  %v1311_v28 = vmul.f32 %v1310_v20, %v635_v49 }
 0x1cf   :  { %v1312_v21 = vmul.f32 %v1310_v20, %v636_v11  ;;  %v651_v4 = vmul.f32 %v649_v62, %v4469_v9  ;;  %v652_v38 = vmul.f32 %v650_v14, %v4472_v42  ;;  %v657_v25 = vsel %vm621_vm7, %v654_v19, %v656_v63 }
 0x1d0   :  { %v658_v3 = vsel %vm621_vm7, %v656_v63, %v654_v19  ;;  %v1307_v5 = vadd.f32 %v1305_v39, %v1301_v36  ;;  %v1308_v47 = vadd.f32 %v1306_v59, %v1302_v6  ;;  %v963_v23 = vadd.f32 %v961_v29, %v957_v15  ;;  %v664_v61 = vpop.permute.xlu1 %663  ;;  %v662_v51 = vpop.permute.xlu0 %661 }
 0x1d1   :  { %v964_v22 = vadd.f32 %v962_v2, %v958_v8  ;;  %v967_v20 = vmul.f32 %v966_v32, %v643_v35  ;;  %v968_v49 = vmul.f32 %v966_v32, %v644_v52  ;;  %v1317_v11 = vmul.f32 %v1316_v48, %v643_v35 }
 0x1d2   :  { %v1318_v45 = vmul.f32 %v1316_v48, %v644_v52  ;;  %v659_v56 = vmul.f32 %v657_v25, %v4469_v9  ;;  %v660_v7 = vmul.f32 %v658_v3, %v4472_v42  ;;  %v666_v16 = vsel %vm665_vm8, %v662_v51, %v664_v61 }
 0x1d3   :  { %v667_v12 = vsel %vm665_vm8, %v664_v61, %v662_v51  ;;  %v1313_v46 = vadd.f32 %v1311_v28, %v1307_v5  ;;  %v1314_v53 = vadd.f32 %v1312_v21, %v1308_v47  ;;  %v973_v32 = vmul.f32 %v972_v0, %v651_v4 }
 0x1d4   :  { %v974_v48 = vmul.f32 %v972_v0, %v652_v38  ;;  %v1323_v41 = vmul.f32 %v1322_v18, %v651_v4  ;;  %v1324_v39 = vmul.f32 %v1322_v18, %v652_v38  ;;  %v679_v59 = vmul.f32 %v4518_v44, %v666_v16  ;;  %v684_v6 = vpop.permute.xlu1 %683  ;;  %v682_v0 = vpop.permute.xlu0 %681 }
 0x1d5   :  { %v680_v29 = vmul.f32 %v4521_v43, %v667_v12  ;;  %v969_v2 = vadd.f32 %v967_v20, %v963_v23  ;;  %v970_v62 = vadd.f32 %v968_v49, %v964_v22  ;;  %v1319_v14 = vadd.f32 %v1317_v11, %v1313_v46 }
 0x1d6   :  { %v1320_v36 = vadd.f32 %v1318_v45, %v1314_v53  ;;  %v979_v18 = vmul.f32 %v978_v50, %v659_v56  ;;  %v980_v35 = vmul.f32 %v978_v50, %v660_v7  ;;  %v1329_v52 = vmul.f32 %v1328_v26, %v659_v56 }
 0x1d7   :  { %v1330_v63 = vmul.f32 %v1328_v26, %v660_v7  ;;  %v975_v19 = vadd.f32 %v973_v32, %v969_v2  ;;  %v976_v15 = vadd.f32 %v974_v48, %v970_v62  ;;  %v685_v8 = vsel %vm665_vm8, %v682_v0, %v684_v6 }
 0x1d8   :  { %v686_v28 = vsel %vm665_vm8, %v684_v6, %v682_v0  ;;  %v1325_v21 = vadd.f32 %v1323_v41, %v1319_v14  ;;  %v1326_v4 = vadd.f32 %v1324_v39, %v1320_v36  ;;  %v985_v50 = vmul.f32 %v984_v40, %v679_v59  ;;  %v692_v47 = vpop.permute.xlu1 %691  ;;  %v690_v11 = vpop.permute.xlu0 %689 }
 0x1d9   :  { %v986_v38 = vmul.f32 %v984_v40, %v680_v29  ;;  %v1335_v26 = vmul.f32 %v1334_v34, %v679_v59  ;;  %v1336_v25 = vmul.f32 %v1334_v34, %v680_v29  ;;  %v687_v3 = vmul.f32 %v685_v8, %v4518_v44 }
 0x1da   :  { %v688_v5 = vmul.f32 %v686_v28, %v4521_v43  ;;  %v981_v23 = vadd.f32 %v979_v18, %v975_v19  ;;  %v982_v22 = vadd.f32 %v980_v35, %v976_v15  ;;  %v1331_v20 = vadd.f32 %v1329_v52, %v1325_v21 }
 0x1db   :  { %v1332_v49 = vadd.f32 %v1330_v63, %v1326_v4  ;;  %v991_v45 = vmul.f32 %v990_v31, %v687_v3  ;;  %v1341_v61 = vmul.f32 %v1340_v10, %v687_v3  ;;  %v693_v7 = vsel %vm665_vm8, %v690_v11, %v692_v47 }
 0x1dc   :  { %v992_v40 = vmul.f32 %v990_v31, %v688_v5  ;;  %v1342_v34 = vmul.f32 %v1340_v10, %v688_v5  ;;  %v987_v51 = vadd.f32 %v985_v50, %v981_v23  ;;  %v988_v56 = vadd.f32 %v986_v38, %v982_v22  ;;  %v700_v46 = vpop.permute.xlu1 %699  ;;  %v698_v59 = vpop.permute.xlu0 %697 }
 0x1dd   :  { %v694_v16 = vsel %vm665_vm8, %v692_v47, %v690_v11  ;;  %v1337_v12 = vadd.f32 %v1335_v26, %v1331_v20  ;;  %v1338_v31 = vadd.f32 %v1336_v25, %v1332_v49  ;;  %v1002_v10 = vstv %s4667_s22  ;;  %s4847_s22 = sld [smem:[#allocation10 + $0xb]] }
 0x1de   :  { %v1352_v53 = vstv %s4669_s24  ;;  %v993_v32 = vadd.f32 %v991_v45, %v987_v51  ;;  %v994_v48 = vadd.f32 %v992_v40, %v988_v56  ;;  %v695_v41 = vmul.f32 %v693_v7, %v4518_v44  ;;  %s4869_s24 = sld [smem:[#allocation10 + $0xc]] }
 0x1df   :  { %v696_v39 = vmul.f32 %v694_v16, %v4521_v43  ;;  %v1343_v29 = vadd.f32 %v1341_v61, %v1337_v12  ;;  %v1344_v2 = vadd.f32 %v1342_v34, %v1338_v31  ;;  %v701_v62 = vsel %vm665_vm8, %v698_v59, %v700_v46 }
 0x1e0   :  { %v702_v14 = vsel %vm665_vm8, %v700_v46, %v698_v59  ;;  %v997_v36 = vmul.f32 %v996_v30, %v695_v41  ;;  %v1347_v0 = vmul.f32 %v1346_v58, %v695_v41  ;;  %v703_v35 = vmul.f32 %v701_v62, %v4518_v44 }
 0x1e1   :  { %v998_v6 = vmul.f32 %v996_v30, %v696_v39  ;;  %v1348_v18 = vmul.f32 %v1346_v58, %v696_v39  ;;  %v704_v52 = vmul.f32 %v702_v14, %v4521_v43  ;;  %v1358_v38 = vstv %s4701_s29  ;;  %s4875_s29 = sld [smem:[#allocation10 + $0xd]] }
 0x1e2   :  { %v1349_v63 = vadd.f32 %v1347_v0, %v1343_v29  ;;  %v999_v15 = vadd.f32 %v997_v36, %v993_v32  ;;  %v1003_v28 = vmul.f32 %v1002_v10, %v703_v35  ;;  %v1353_v4 = vmul.f32 %v1352_v53, %v703_v35 }
 0x1e3   :  { %v1350_v19 = vadd.f32 %v1348_v18, %v1344_v2  ;;  %v1000_v8 = vadd.f32 %v998_v6, %v994_v48  ;;  %v1004_v21 = vmul.f32 %v1002_v10, %v704_v52  ;;  %v1354_v50 = vmul.f32 %v1352_v53, %v704_v52 }
 0x1e4   :  { %v1008_v26 = vstv %s4707_s30  ;;  %v1355_v25 = vadd.f32 %v1353_v4, %v1349_v63  ;;  %v1005_v3 = vadd.f32 %v1003_v28, %v999_v15  ;;  %s4897_s30 = sld [smem:[#allocation10 + $0xe]] }
 0x1e5   :  { %v1356_v30 = vadd.f32 %v1354_v50, %v1350_v19  ;;  %v1006_v5 = vadd.f32 %v1004_v21, %v1000_v8 }
 0x1e6   :  { %v1359_v58 = vadd.f32 %v1358_v38, %v1355_v25  ;;  %v1009_v23 = vadd.f32 %v1008_v26, %v1005_v3 }
 0x1e7   :  { %v1360_v47 = vadd.f32 %v1358_v38, %v1356_v30  ;;  %v1010_v22 = vadd.f32 %v1008_v26, %v1006_v5 }
 0x1e8   :  { %v1361_v20 = vsel %vm1011_vm9, %v1359_v58, 0.0  ;;  %v1012_v11 = vsel %vm1011_vm9, %v1009_v23, 0.0 }
 0x1e9   :  { %v1362_v49 = vsel %vm1011_vm9, %v1360_v47, 0.0  ;;  %v1013_v45 = vsel %vm1011_vm9, %v1010_v22, 0.0 }
 0x1ea   :  { %v1363_v40 = vadd.f32 %v1362_v49, %v1361_v20  ;;  %v1014_v61 = vadd.f32 %v1013_v45, %v1012_v11 }
 0x1ec   :  { %1364 = vadd.xlane.f32.xlu1 %v1363_v40  ;;  %1015 = vadd.xlane.f32.xlu0 %v1014_v61 }
 0x275   :  { %v1365_v34 = vpop.xlane.xlu1 %1364  ;;  %v1016_v51 = vpop.xlane.xlu0 %1015 }
 0x276   :  { %v1366_v56 = vsel %vm1011_vm9, %v1365_v34, 0.0  ;;  %v1017_v7 = vsel %vm1011_vm9, %v1016_v51, 0.0 }
 0x277   :  { %v1367_v16 = vrot.slane %v1366_v56, 4  ;;  %v1018_v12 = vrot.slane %v1017_v7, 4 }
 0x279   :  { %v1368_v31 = vadd.f32 %v1367_v16, %v1366_v56  ;;  %v1019_v46 = vadd.f32 %v1018_v12, %v1017_v7  ;;  %v1045_v7 = vstv %s1042_s4  ;;  %s4903_s4 = sld [smem:[#allocation10 + $0xf]] }
 0x27b   :  { %v1369_v10 = vrot.slane %v1368_v31, 2  ;;  %v1020_v53 = vrot.slane %v1019_v46, 2 }
 0x27d   :  { %v1370_v32 = vadd.f32 %v1369_v10, %v1368_v31  ;;  %v1021_v48 = vadd.f32 %v1020_v53, %v1019_v46  ;;  %v1050_v31 = vstv %s1049_s16  ;;  %v1394_v46 = vstv %s2991_s17  ;;  %s4913_s16 = sld [smem:[#allocation10 + $0x14]] }
 0x27e   :  { %s4915_s17 = sld [smem:[#allocation10 + $0x15]] }
 0x27f   :  { %v1371_v41 = vrot.slane %v1370_v32, 1  ;;  %v1022_v39 = vrot.slane %v1021_v48, 1 }
 0x281   :  { %v1372_v59 = vadd.f32 %v1371_v41, %v1370_v32  ;;  %v1023_v29 = vadd.f32 %v1022_v39, %v1021_v48 }
 0x283   :  { %v1373_v2 = vmul.f32 0.001953125, %v1372_v59  ;;  %v1024_v62 = vmul.f32 0.001953125, %v1023_v29  ;;  %v1399_v59 = vstv %s2992_s15  ;;  %s4923_s15 = sld [smem:[#allocation10 + $0x16]] }
 0x285   :  { %v1025_v14 = vsub.f32 %v1009_v23, %v1024_v62  ;;  %v1026_v36 = vsub.f32 %v1010_v22, %v1024_v62  ;;  %v1374_v6 = vsub.f32 %v1359_v58, %v1373_v2  ;;  %v1375_v0 = vsub.f32 %v1360_v47, %v1373_v2 }
 0x287   :  { %v1027_v18 = vmul.f32 %v1025_v14, %v1025_v14  ;;  %v1028_v35 = vmul.f32 %v1026_v36, %v1026_v36  ;;  %v1376_v52 = vmul.f32 %v1374_v6, %v1374_v6  ;;  %v1377_v63 = vmul.f32 %v1375_v0, %v1375_v0 }
 0x289   :  { %v1029_v19 = vsel %vm1011_vm9, %v1027_v18, 0.0  ;;  %v1030_v15 = vsel %vm1011_vm9, %v1028_v35, 0.0  ;;  %v1378_v28 = vsel %vm1011_vm9, %v1376_v52, 0.0  ;;  %v1379_v21 = vsel %vm1011_vm9, %v1377_v63, 0.0 }
 0x28a   :  { %v1031_v8 = vadd.f32 %v1030_v15, %v1029_v19  ;;  %v1380_v4 = vadd.f32 %v1379_v21, %v1378_v28 }
 0x28c   :  { %1032 = vadd.xlane.f32.xlu0 %v1031_v8 }
 0x290   :  { %1381 = vadd.xlane.f32.xlu0 %v1380_v4 }
 0x315   :  { %v1033_v50 = vpop.xlane.xlu0 %1032 }
 0x316   :  { %v1034_v38 = vsel %vm1011_vm9, %v1033_v50, 0.0 }
 0x317   :  { %v1035_v26 = vrot.slane %v1034_v38, 4 }
 0x319   :  { %v1036_v25 = vadd.f32 %v1035_v26, %v1034_v38  ;;  %v1382_v30 = vpop.xlane.xlu0 %1381 }
 0x31a   :  { %v1383_v3 = vsel %vm1011_vm9, %v1382_v30, 0.0  ;;  %v1720_v30 = vstv %s4875_s29  ;;  %s3029_s29 = sld [smem:[#allocation13 + $0x1]] }
 0x31b   :  { %v1037_v5 = vrot.slane %v1036_v25, 2  ;;  %v1384_v58 = vrot.slane %v1383_v3, 4 }
 0x31d   :  { %v1038_v47 = vadd.f32 %v1037_v5, %v1036_v25  ;;  %v1385_v23 = vadd.f32 %v1384_v58, %v1383_v3  ;;  %v1567_v58 = vstv %s4869_s24  ;;  %s1679_s24 = sld [smem:[#allocation14]] }
 0x31f   :  { %v1039_v22 = vrot.slane %v1038_v47, 1  ;;  %v1386_v20 = vrot.slane %v1385_v23, 2 }
 0x321   :  { %v1040_v49 = vadd.f32 %v1039_v22, %v1038_v47  ;;  %v1387_v11 = vadd.f32 %v1386_v20, %v1385_v23  ;;  %v1533_v23 = vstv %s4821_s27  ;;  %v1686_v22 = vstv %s4823_s1  ;;  %v5932_v20 = vld [vmem:[#allocation48_spill] sm:$0xff]  ;;  %s4925_s27 = sld [smem:[#allocation10 + $0x17]] }
 0x322   :  { %s4935_s1 = sld [smem:[#allocation10 + $0x18]] }
 0x323   :  { %v1041_v45 = vmul.f32 0.001953125, %v1040_v49  ;;  %v1388_v40 = vrot.slane %v1387_v11, 1 }
 0x325   :  { %v1043_v61 = vadd.f32 1e-05, %v1041_v45  ;;  %v1389_v34 = vadd.f32 %v1388_v40, %v1387_v11  ;;  %v5933_v11 = vld [vmem:[#allocation51_spill] sm:$0xff] }
 0x327   :  { %3174 = vrsqrt.f32 %v1043_v61  ;;  %v1390_v51 = vmul.f32 0.001953125, %v1389_v34  ;;  %v1537_v34 = vstv %s4825_s25  ;;  %s4937_s25 = sld [smem:[#allocation10 + $0x19]] }
 0x329   :  { %v1392_v56 = vadd.f32 1e-05, %v1390_v51  ;;  %v1690_v51 = vstv %s4827_s28  ;;  %s4951_s28 = sld [smem:[#allocation10 + $0x1b]] }
 0x32b   :  { %3176 = vrsqrt.f32 %v1392_v56  ;;  %v1543_v56 = vstv %s4829_s0  ;;  %s4953_s0 = sld [smem:[#allocation10 + $0x1c]] }
 0x334   :  { %v3175_v16 = vpop.eup %3174 }
 0x335   :  { %v1046_v12 = vmul.f32 %v3175_v16, %v1045_v7  ;;  %v1696_v7 = vstv %s4831_s20  ;;  %s4993_s20 = sld [smem:[#allocation10 + $0x20]] }
 0x337   :  { %v1047_v10 = vmul.f32 %v1046_v12, %v1025_v14  ;;  %v1048_v53 = vmul.f32 %v1046_v12, %v1026_v36 }
 0x338   :  { %v3177_v32 = vpop.eup %3176 }
 0x339   :  { %v1051_v48 = vadd.f32 %v1050_v31, %v1047_v10  ;;  %v1052_v41 = vadd.f32 %v1050_v31, %v1048_v53  ;;  %v1395_v39 = vmul.f32 %v3177_v32, %v1394_v46  ;;  %v1549_v10 = vstv %s4833_s19  ;;  %s4997_s19 = sld [smem:[#allocation10 + $0x21]] }
 0x33a   :  { %v1702_v53 = vstv %s4835_s14  ;;  %v1555_v32 = vstv %s4837_s26  ;;  %s5017_s14 = sld [smem:[#allocation10 + $0x22]] }
 0x33b   :  { %v4741_v29 = vmax.f32 %v1051_v48, 0.0  ;;  %v4743_v2 = vmax.f32 %v1052_v41, 0.0  ;;  %v1396_v62 = vmul.f32 %v1395_v39, %v1374_v6  ;;  %v1397_v18 = vmul.f32 %v1395_v39, %v1375_v0  ;;  %s5023_s26 = sld [smem:[#allocation10 + $0x23]] }
 0x33c   :  { %v1708_v48 = vstv %s4839_s18  ;;  %s5031_s18 = sld [smem:[#allocation11 + $0x1]] }
 0x33d   :  { %v1400_v35 = vadd.f32 %v1399_v59, %v1396_v62  ;;  %1406 = vrot.lane.b32.xlu0 %v4743_v2, %s5925_s9  ;;  %1404 = vrot.lane.b32.xlu1 %v4741_v29, %s5925_s9  ;;  %v1401_v14 = vadd.f32 %v1399_v59, %v1397_v18 }
 0x33f   :  { %v4749_v36 = vmax.f32 %v1400_v35, 0.0  ;;  %v4755_v52 = vmax.f32 %v1401_v14, 0.0  ;;  %v1561_v14 = vstv %s4841_s5  ;;  %s5035_s5 = sld [smem:[#allocation11]] }
 0x341   :  { %1420 = vrot.lane.b32.xlu0 %v4741_v29, %s5926_s23  ;;  %1412 = vrot.lane.b32.xlu1 %v4749_v36, %s5925_s9 }
 0x345   :  { %1428 = vrot.lane.b32.xlu0 %v4749_v36, %s5926_s23  ;;  %1414 = vrot.lane.b32.xlu1 %v4755_v52, %s5925_s9 }
 0x349   :  { %1436 = vrot.lane.b32.xlu0 %v4741_v29, %s5927_s21  ;;  %1422 = vrot.lane.b32.xlu1 %v4743_v2, %s5926_s23 }
 0x34d   :  { %1444 = vrot.lane.b32.xlu0 %v4749_v36, %s5927_s21  ;;  %1430 = vrot.lane.b32.xlu1 %v4755_v52, %s5926_s23 }
 0x351   :  { %1452 = vrot.lane.b32.xlu0 %v4741_v29, %s5928_s3  ;;  %1438 = vrot.lane.b32.xlu1 %v4743_v2, %s5927_s21 }
 0x355   :  { %1460 = vrot.lane.b32.xlu0 %v4749_v36, %s5928_s3  ;;  %1446 = vrot.lane.b32.xlu1 %v4755_v52, %s5927_s21 }
 0x359   :  { %1468 = vrot.lane.b32.xlu0 %v4741_v29, %s5929_s10  ;;  %1454 = vrot.lane.b32.xlu1 %v4743_v2, %s5928_s3 }
 0x35d   :  { %1476 = vrot.lane.b32.xlu0 %v4749_v36, %s5929_s10  ;;  %1462 = vrot.lane.b32.xlu1 %v4755_v52, %s5928_s3 }
 0x361   :  { %1484 = vrot.lane.b32.xlu0 %v4741_v29, %s5930_s13  ;;  %1470 = vrot.lane.b32.xlu1 %v4743_v2, %s5929_s10 }
 0x365   :  { %1492 = vrot.lane.b32.xlu0 %v4749_v36, %s5930_s13  ;;  %1478 = vrot.lane.b32.xlu1 %v4755_v52, %s5929_s10 }
 0x369   :  { %1500 = vrot.lane.b32.xlu0 %v4741_v29, %s5931_s8  ;;  %1486 = vrot.lane.b32.xlu1 %v4743_v2, %s5930_s13 }
 0x36d   :  { %1508 = vrot.lane.b32.xlu0 %v4749_v36, %s5931_s8  ;;  %1494 = vrot.lane.b32.xlu1 %v4755_v52, %s5930_s13 }
 0x371   :  { %1516 = vrot.lane.b32.xlu0 %v4741_v29, %s5846_s7  ;;  %1502 = vrot.lane.b32.xlu1 %v4743_v2, %s5931_s8 }
 0x375   :  { %1524 = vrot.lane.b32.xlu0 %v4749_v36, %s5846_s7  ;;  %1510 = vrot.lane.b32.xlu1 %v4755_v52, %s5931_s8 }
 0x379   :  { %1518 = vrot.lane.b32.xlu1 %v4743_v2, %s5846_s7 }
 0x37d   :  { %1526 = vrot.lane.b32.xlu1 %v4755_v52, %s5846_s7 }
 0x3af   :  { %v1405_v6 = vpop.permute.xlu1 %1404  ;;  %v1407_v0 = vpop.permute.xlu0 %1406 }
 0x3b0   :  { %v1408_v4 = vsel %vm297_vm1, %v1405_v6, %v1407_v0  ;;  %v1409_v50 = vsel %vm297_vm1, %v1407_v0, %v1405_v6  ;;  %v1714_v6 = vstv %s4847_s22  ;;  %s1672_s22 = sld [smem:[#allocation13]] }
 0x3b1   :  { %v1410_v40 = vmul.f32 %v1409_v50, %v5932_v20  ;;  %v1411_v61 = vmul.f32 %v1408_v4, %v5933_v11 }
 0x3b3   :  { %v1413_v63 = vpop.permute.xlu1 %1412  ;;  %v1421_v19 = vpop.permute.xlu0 %1420  ;;  %v1534_v18 = vmul.f32 %v1533_v23, %v1410_v40  ;;  %v1535_v35 = vmul.f32 %v1533_v23, %v1411_v61 }
 0x3b7   :  { %v1415_v15 = vpop.permute.xlu1 %1414  ;;  %v1429_v8 = vpop.permute.xlu0 %1428 }
 0x3b8   :  { %v1416_v28 = vsel %vm297_vm1, %v1413_v63, %v1415_v15  ;;  %v1417_v21 = vsel %vm297_vm1, %v1415_v15, %v1413_v63 }
 0x3b9   :  { %v1418_v49 = vmul.f32 %v1417_v21, %v5932_v20  ;;  %v1419_v45 = vmul.f32 %v1416_v28, %v5933_v11 }
 0x3bb   :  { %v1423_v38 = vpop.permute.xlu1 %1422  ;;  %v1437_v26 = vpop.permute.xlu0 %1436  ;;  %v1538_v41 = vmul.f32 %v1537_v34, %v1418_v49  ;;  %v1539_v39 = vmul.f32 %v1537_v34, %v1419_v45  ;;  %v1691_v0 = vmul.f32 %v1690_v51, %v1418_v49  ;;  %v1692_v63 = vmul.f32 %v1690_v51, %v1419_v45 }
 0x3bc   :  { %v1424_v3 = vsel %vm401_vm2, %v1421_v19, %v1423_v38  ;;  %v1425_v5 = vsel %vm401_vm2, %v1423_v38, %v1421_v19 }
 0x3bd   :  { %v1426_v16 = vmul.f32 %v1425_v5, %v3908_v54  ;;  %v1427_v12 = vmul.f32 %v1424_v3, %v3911_v55  ;;  %v1687_v3 = vmul.f32 %v1686_v22, %v1410_v40  ;;  %v1688_v5 = vmul.f32 %v1686_v22, %v1411_v61 }
 0x3be   :  { %v1540_v23 = vadd.f32 %v1538_v41, %v1534_v18  ;;  %v1541_v49 = vadd.f32 %v1539_v39, %v1535_v35 }
 0x3bf   :  { %v1431_v31 = vpop.permute.xlu1 %1430  ;;  %v1445_v46 = vpop.permute.xlu0 %1444  ;;  %v1544_v19 = vmul.f32 %v1543_v56, %v1426_v16  ;;  %v1545_v15 = vmul.f32 %v1543_v56, %v1427_v12  ;;  %v1697_v45 = vmul.f32 %v1696_v7, %v1426_v16  ;;  %v1698_v34 = vmul.f32 %v1696_v7, %v1427_v12 }
 0x3c0   :  { %v1432_v59 = vsel %vm401_vm2, %v1429_v8, %v1431_v31  ;;  %v1433_v62 = vsel %vm401_vm2, %v1431_v31, %v1429_v8  ;;  %v1693_v31 = vadd.f32 %v1691_v0, %v1687_v3 }
 0x3c1   :  { %v1434_v4 = vmul.f32 %v1433_v62, %v3908_v54  ;;  %v1435_v50 = vmul.f32 %v1432_v59, %v3911_v55  ;;  %v1694_v62 = vadd.f32 %v1692_v63, %v1688_v5  ;;  %v1546_v25 = vadd.f32 %v1544_v19, %v1540_v23 }
 0x3c2   :  { %v1547_v55 = vadd.f32 %v1545_v15, %v1541_v49  ;;  %v1699_v16 = vadd.f32 %v1697_v45, %v1693_v31 }
 0x3c3   :  { %v1439_v28 = vpop.permute.xlu1 %1438  ;;  %v1453_v21 = vpop.permute.xlu0 %1452  ;;  %v1550_v54 = vmul.f32 %v1549_v10, %v1434_v4  ;;  %v1703_v22 = vmul.f32 %v1702_v53, %v1434_v4  ;;  %v1704_v40 = vmul.f32 %v1702_v53, %v1435_v50  ;;  %v1700_v12 = vadd.f32 %v1698_v34, %v1694_v62 }
 0x3c4   :  { %v1440_v38 = vsel %vm445_vm3, %v1437_v26, %v1439_v28  ;;  %v1441_v8 = vsel %vm445_vm3, %v1439_v28, %v1437_v26  ;;  %v1551_v26 = vmul.f32 %v1549_v10, %v1435_v50 }
 0x3c5   :  { %v1442_v51 = vmul.f32 %v1441_v8, %v3927_v1  ;;  %v1443_v56 = vmul.f32 %v1440_v38, %v3945_v17  ;;  %v1552_v19 = vadd.f32 %v1550_v54, %v1546_v25  ;;  %v1705_v4 = vadd.f32 %v1703_v22, %v1699_v16 }
 0x3c6   :  { %v1553_v15 = vadd.f32 %v1551_v26, %v1547_v55  ;;  %v1706_v50 = vadd.f32 %v1704_v40, %v1700_v12 }
 0x3c7   :  { %v1447_v59 = vpop.permute.xlu1 %1446  ;;  %v1461_v47 = vpop.permute.xlu0 %1460  ;;  %v1556_v41 = vmul.f32 %v1555_v32, %v1442_v51  ;;  %v1557_v39 = vmul.f32 %v1555_v32, %v1443_v56  ;;  %v1709_v18 = vmul.f32 %v1708_v48, %v1442_v51  ;;  %v1710_v35 = vmul.f32 %v1708_v48, %v1443_v56 }
 0x3c8   :  { %v1448_v61 = vsel %vm445_vm3, %v1445_v46, %v1447_v59  ;;  %v1449_v7 = vsel %vm445_vm3, %v1447_v59, %v1445_v46  ;;  %v1726_v56 = vstv %s4903_s4  ;;  %s5131_s4 = sld [smem:[#allocation16 + $0x10]] }
 0x3c9   :  { %v1450_v10 = vmul.f32 %v1449_v7, %v3927_v1  ;;  %v1451_v0 = vmul.f32 %v1448_v61, %v3945_v17  ;;  %v1558_v54 = vadd.f32 %v1556_v41, %v1552_v19  ;;  %v1559_v55 = vadd.f32 %v1557_v39, %v1553_v15 }
 0x3ca   :  { %v1711_v25 = vadd.f32 %v1709_v18, %v1705_v4  ;;  %v1712_v23 = vadd.f32 %v1710_v35, %v1706_v50 }
 0x3cb   :  { %v1455_v63 = vpop.permute.xlu1 %1454  ;;  %v1469_v53 = vpop.permute.xlu0 %1468  ;;  %v1562_v38 = vmul.f32 %v1561_v14, %v1450_v10  ;;  %v1563_v32 = vmul.f32 %v1561_v14, %v1451_v0  ;;  %v1715_v8 = vmul.f32 %v1714_v6, %v1450_v10  ;;  %v1716_v48 = vmul.f32 %v1714_v6, %v1451_v0 }
 0x3cc   :  { %v1456_v28 = vsel %vm489_vm4, %v1453_v21, %v1455_v63  ;;  %v1457_v46 = vsel %vm489_vm4, %v1455_v63, %v1453_v21  ;;  %v1573_v6 = vstv %s4897_s30  ;;  %s3030_s30 = sld [smem:[#allocation14 + $0x1]] }
 0x3cd   :  { %v1458_v3 = vmul.f32 %v1457_v46, %v3954_v24  ;;  %v1459_v5 = vmul.f32 %v1456_v28, %v3964_v33  ;;  %v1564_v59 = vadd.f32 %v1562_v38, %v1558_v54  ;;  %v1565_v26 = vadd.f32 %v1563_v32, %v1559_v55 }
 0x3ce   :  { %v1717_v22 = vadd.f32 %v1715_v8, %v1711_v25  ;;  %v1718_v40 = vadd.f32 %v1716_v48, %v1712_v23  ;;  %v5936_v28 = vstv %s4815_s2  ;;  %s4967_s2 = sld [smem:[#allocation10 + $0x1d]] }
 0x3cf   :  { %v1463_v49 = vpop.permute.xlu1 %1462  ;;  %v1477_v45 = vpop.permute.xlu0 %1476  ;;  %v1568_v21 = vmul.f32 %v1567_v58, %v1458_v3  ;;  %v1569_v14 = vmul.f32 %v1567_v58, %v1459_v5  ;;  %v1721_v34 = vmul.f32 %v1720_v30, %v1458_v3  ;;  %v1722_v51 = vmul.f32 %v1720_v30, %v1459_v5 }
 0x3d0   :  { %v1464_v31 = vsel %vm489_vm4, %v1461_v47, %v1463_v49  ;;  %v1465_v62 = vsel %vm489_vm4, %v1463_v49, %v1461_v47  ;;  %v5934_v30 = vstv %s4813_s6  ;;  %s4939_s6 = sld [smem:[#allocation10 + $0x1a]]  ;;  %v1733_v46 = vmul.f32 %v5936_v28, %v4741_v29 }
 0x3d1   :  { %v1580_v58 = vmul.f32 %v5934_v30, %v4741_v29  ;;  %v5935_v61 = vmov %v5934_v30  ;;  %v1466_v16 = vmul.f32 %v1465_v62, %v3954_v24  ;;  %v1467_v47 = vmul.f32 %v1464_v31, %v3964_v33 }
 0x3d2   :  { %v1581_v7 = vmul.f32 %v5935_v61, %v4743_v2  ;;  %v1570_v39 = vadd.f32 %v1568_v21, %v1564_v59  ;;  %v1571_v18 = vadd.f32 %v1569_v14, %v1565_v26  ;;  %v1723_v35 = vadd.f32 %v1721_v34, %v1717_v22 }
 0x3d3   :  { %v1471_v12 = vpop.permute.xlu1 %1470  ;;  %v1485_v41 = vpop.permute.xlu0 %1484  ;;  %v1724_v10 = vadd.f32 %v1722_v51, %v1718_v40  ;;  %v1574_v0 = vmul.f32 %v1573_v6, %v1466_v16  ;;  %v1575_v63 = vmul.f32 %v1573_v6, %v1467_v47  ;;  %v1727_v19 = vmul.f32 %v1726_v56, %v1466_v16 }
 0x3d4   :  { %v1728_v15 = vmul.f32 %v1726_v56, %v1467_v47  ;;  %v5937_v4 = vmov %v5936_v28  ;;  %v1472_v38 = vsel %vm533_vm5, %v1469_v53, %v1471_v12  ;;  %v1473_v32 = vsel %vm533_vm5, %v1471_v12, %v1469_v53 }
 0x3d5   :  { %v1734_v50 = vmul.f32 %v5937_v4, %v4743_v2  ;;  %v1576_v8 = vadd.f32 %v1574_v0, %v1570_v39  ;;  %v1577_v48 = vadd.f32 %v1575_v63, %v1571_v18  ;;  %v1729_v3 = vadd.f32 %v1727_v19, %v1723_v35 }
 0x3d6   :  { %v1730_v5 = vadd.f32 %v1728_v15, %v1724_v10  ;;  %v5938_v29 = vstv %s4817_s11  ;;  %v5939_v2 = vstv %s4819_s12  ;;  %v1474_v31 = vmul.f32 %v1472_v38, %v4007_v60  ;;  %s4981_s11 = sld [smem:[#allocation10 + $0x1e]] }
 0x3d7   :  { %v1479_v54 = vpop.permute.xlu1 %1478  ;;  %v1587_v55 = vmul.f32 %v5938_v29, %v4755_v52  ;;  %v1740_v25 = vmul.f32 %v5939_v2, %v4755_v52  ;;  %v5940_v23 = vmov %v5938_v29  ;;  %v5941_v53 = vmov %v5939_v2  ;;  %v1493_v14 = vpop.permute.xlu0 %1492  ;;  %s4987_s12 = sld [smem:[#allocation10 + $0x1f]] }
 0x3d8   :  { %v1586_v49 = vmul.f32 %v5940_v23, %v4749_v36  ;;  %v1739_v21 = vmul.f32 %v5941_v53, %v4749_v36  ;;  %v1582_v34 = vadd.f32 %v1580_v58, %v1576_v8  ;;  %v1583_v51 = vadd.f32 %v1581_v7, %v1577_v48 }
 0x3d9   :  { %v1735_v6 = vadd.f32 %v1733_v46, %v1729_v3  ;;  %v1736_v56 = vadd.f32 %v1734_v50, %v1730_v5  ;;  %v1475_v52 = vmul.f32 %v1473_v32, %v5920_v27  ;;  %v1480_v62 = vsel %vm533_vm5, %v1477_v45, %v1479_v54 }
 0x3da   :  { %v1481_v36 = vsel %vm533_vm5, %v1479_v54, %v1477_v45  ;;  %v1588_v59 = vadd.f32 %v1586_v49, %v1582_v34  ;;  %v1589_v26 = vadd.f32 %v1587_v55, %v1583_v51  ;;  %v1591_v58 = vstv %s4913_s16  ;;  %s5133_s16 = sld [smem:[#allocation16 + $0x11]] }
 0x3db   :  { %v1741_v22 = vadd.f32 %v1739_v21, %v1735_v6  ;;  %v1742_v40 = vadd.f32 %v1740_v25, %v1736_v56  ;;  %v1487_v30 = vpop.permute.xlu1 %1486  ;;  %v1744_v61 = vstv %s4915_s17  ;;  %v1597_v45 = vstv %s4923_s15  ;;  %v1501_v10 = vpop.permute.xlu0 %1500  ;;  %s5135_s17 = sld [smem:[#allocation16 + $0x12]] }
 0x3dc   :  { %v1488_v7 = vsel %vm577_vm6, %v1485_v41, %v1487_v30  ;;  %v1489_v16 = vsel %vm577_vm6, %v1487_v30, %v1485_v41  ;;  %v1750_v47 = vstv %s4925_s27  ;;  %v1482_v12 = vmul.f32 %v1480_v62, %v4007_v60  ;;  %s5137_s15 = sld [smem:[#allocation16 + $0x13]] }
 0x3dd   :  { %v1483_v39 = vmul.f32 %v1481_v36, %v5920_v27  ;;  %v1603_v18 = vstv %s4935_s1  ;;  %v1756_v35 = vstv %s4937_s25  ;;  %v1609_v0 = vstv %s4939_s6  ;;  %s5139_s27 = sld [smem:[#allocation16]] }
 0x3de   :  { %v1762_v63 = vstv %s4951_s28  ;;  %v1592_v41 = vmul.f32 %v1591_v58, %v1474_v31  ;;  %v1593_v19 = vmul.f32 %v1591_v58, %v1475_v52  ;;  %v1490_v15 = vmul.f32 %v1488_v7, %v4427_v57  ;;  %s5141_s1 = sld [smem:[#allocation16 + $0x1]] }
 0x3df   :  { %v1491_v28 = vmul.f32 %v1489_v16, %v4446_v13  ;;  %v1495_v46 = vpop.permute.xlu1 %1494  ;;  %v1745_v4 = vmul.f32 %v1744_v61, %v1474_v31  ;;  %v1746_v50 = vmul.f32 %v1744_v61, %v1475_v52  ;;  %v1615_v38 = vstv %s4953_s0  ;;  %v1509_v6 = vpop.permute.xlu0 %1508  ;;  %s5143_s25 = sld [smem:[#allocation16 + $0x2]] }
 0x3e0   :  { %v1768_v32 = vstv %s4967_s2  ;;  %v1594_v8 = vadd.f32 %v1592_v41, %v1588_v59  ;;  %v1595_v48 = vadd.f32 %v1593_v19, %v1589_v26  ;;  %v1598_v3 = vmul.f32 %v1597_v45, %v1482_v12  ;;  %s5145_s6 = sld [smem:[#allocation16 + $0x3]] }
 0x3e1   :  { %v1599_v5 = vmul.f32 %v1597_v45, %v1483_v39  ;;  %v1747_v54 = vadd.f32 %v1745_v4, %v1741_v22  ;;  %v1748_v29 = vadd.f32 %v1746_v50, %v1742_v40  ;;  %v1496_v55 = vsel %vm577_vm6, %v1493_v14, %v1495_v46  ;;  %s5147_s28 = sld [smem:[#allocation16 + $0x4]] }
 0x3e2   :  { %v1497_v2 = vsel %vm577_vm6, %v1495_v46, %v1493_v14  ;;  %v1751_v25 = vmul.f32 %v1750_v47, %v1482_v12  ;;  %v1752_v23 = vmul.f32 %v1750_v47, %v1483_v39  ;;  %v1604_v49 = vmul.f32 %v1603_v18, %v1490_v15  ;;  %s5149_s0 = sld [smem:[#allocation16 + $0x5]] }
 0x3e3   :  { %v1605_v53 = vmul.f32 %v1603_v18, %v1491_v28  ;;  %v1503_v21 = vpop.permute.xlu1 %1502  ;;  %v1498_v34 = vmul.f32 %v1496_v55, %v4427_v57  ;;  %v1499_v51 = vmul.f32 %v1497_v2, %v4446_v13  ;;  %v1600_v52 = vadd.f32 %v1598_v3, %v1594_v8  ;;  %v1517_v4 = vpop.permute.xlu0 %1516  ;;  %s5151_s2 = sld [smem:[#allocation16 + $0x6]] }
 0x3e4   :  { %v1504_v56 = vsel %vm621_vm7, %v1501_v10, %v1503_v21  ;;  %v1505_v31 = vsel %vm621_vm7, %v1503_v21, %v1501_v10  ;;  %v1601_v14 = vadd.f32 %v1599_v5, %v1595_v48  ;;  %v1621_v62 = vstv %s4981_s11  ;;  %s5153_s11 = sld [smem:[#allocation16 + $0x7]] }
 0x3e5   :  { %v1774_v36 = vstv %s4987_s12  ;;  %v1757_v59 = vmul.f32 %v1756_v35, %v1490_v15  ;;  %v1758_v26 = vmul.f32 %v1756_v35, %v1491_v28  ;;  %v1506_v22 = vmul.f32 %v1504_v56, %v4469_v9  ;;  %s5155_s12 = sld [smem:[#allocation16 + $0x8]] }
 0x3e6   :  { %v1507_v40 = vmul.f32 %v1505_v31, %v4472_v42  ;;  %v1753_v30 = vadd.f32 %v1751_v25, %v1747_v54  ;;  %v1754_v58 = vadd.f32 %v1752_v23, %v1748_v29  ;;  %v1627_v7 = vstv %s4993_s20  ;;  %s5157_s20 = sld [smem:[#allocation16 + $0x9]] }
 0x3e7   :  { %v1511_v61 = vpop.permute.xlu1 %1510  ;;  %v1780_v16 = vstv %s4997_s19  ;;  %v1606_v45 = vadd.f32 %v1604_v49, %v1600_v52  ;;  %v1607_v47 = vadd.f32 %v1605_v53, %v1601_v14  ;;  %v1610_v12 = vmul.f32 %v1609_v0, %v1498_v34  ;;  %v1525_v31 = vpop.permute.xlu0 %1524  ;;  %s5159_s19 = sld [smem:[#allocation16 + $0xa]] }
 0x3e8   :  { %v1611_v39 = vmul.f32 %v1609_v0, %v1499_v51  ;;  %v1763_v18 = vmul.f32 %v1762_v63, %v1498_v34  ;;  %v1764_v10 = vmul.f32 %v1762_v63, %v1499_v51  ;;  %v1512_v35 = vsel %vm621_vm7, %v1509_v6, %v1511_v61 }
 0x3e9   :  { %v1513_v41 = vsel %vm621_vm7, %v1511_v61, %v1509_v6  ;;  %v1759_v19 = vadd.f32 %v1757_v59, %v1753_v30  ;;  %v1760_v15 = vadd.f32 %v1758_v26, %v1754_v58  ;;  %v1616_v28 = vmul.f32 %v1615_v38, %v1506_v22 }
 0x3ea   :  { %v1617_v46 = vmul.f32 %v1615_v38, %v1507_v40  ;;  %v1769_v50 = vmul.f32 %v1768_v32, %v1506_v22  ;;  %v1770_v8 = vmul.f32 %v1768_v32, %v1507_v40  ;;  %v1514_v0 = vmul.f32 %v1512_v35, %v4469_v9 }
 0x3eb   :  { %v1515_v48 = vmul.f32 %v1513_v41, %v4472_v42  ;;  %v1519_v63 = vpop.permute.xlu1 %1518  ;;  %v1612_v3 = vadd.f32 %v1610_v12, %v1606_v45  ;;  %v1613_v5 = vadd.f32 %v1611_v39, %v1607_v47  ;;  %v1765_v55 = vadd.f32 %v1763_v18, %v1759_v19 }
 0x3ec   :  { %v1520_v54 = vsel %vm665_vm8, %v1517_v4, %v1519_v63  ;;  %v1521_v29 = vsel %vm665_vm8, %v1519_v63, %v1517_v4  ;;  %v1766_v2 = vadd.f32 %v1764_v10, %v1760_v15  ;;  %v1622_v25 = vmul.f32 %v1621_v62, %v1514_v0 }
 0x3ed   :  { %v1623_v38 = vmul.f32 %v1621_v62, %v1515_v48  ;;  %v1775_v32 = vmul.f32 %v1774_v36, %v1514_v0  ;;  %v1776_v23 = vmul.f32 %v1774_v36, %v1515_v48  ;;  %v1522_v49 = vmul.f32 %v1520_v54, %v4518_v44 }
 0x3ee   :  { %v1523_v53 = vmul.f32 %v1521_v29, %v4521_v43  ;;  %v1618_v21 = vadd.f32 %v1616_v28, %v1612_v3  ;;  %v1619_v34 = vadd.f32 %v1617_v46, %v1613_v5  ;;  %v1771_v51 = vadd.f32 %v1769_v50, %v1765_v55 }
 0x3ef   :  { %v1772_v6 = vadd.f32 %v1770_v8, %v1766_v2  ;;  %v1527_v56 = vpop.permute.xlu1 %1526  ;;  %v1628_v52 = vmul.f32 %v1627_v7, %v1522_v49  ;;  %v1781_v62 = vmul.f32 %v1780_v16, %v1522_v49  ;;  %v1633_v26 = vstv %s5017_s14  ;;  %s5165_s14 = sld [smem:[#allocation16 + $0xb]] }
 0x3f0   :  { %v1629_v14 = vmul.f32 %v1627_v7, %v1523_v53  ;;  %v1782_v59 = vmul.f32 %v1780_v16, %v1523_v53  ;;  %v1786_v22 = vstv %s5023_s26  ;;  %v1528_v36 = vsel %vm665_vm8, %v1525_v31, %v1527_v56  ;;  %s5187_s26 = sld [smem:[#allocation16 + $0xc]] }
 0x3f1   :  { %v1529_v40 = vsel %vm665_vm8, %v1527_v56, %v1525_v31  ;;  %v1624_v30 = vadd.f32 %v1622_v25, %v1618_v21  ;;  %v1625_v58 = vadd.f32 %v1623_v38, %v1619_v34  ;;  %v1777_v61 = vadd.f32 %v1775_v32, %v1771_v51 }
 0x3f2   :  { %v1778_v45 = vadd.f32 %v1776_v23, %v1772_v6  ;;  %v1530_v47 = vmul.f32 %v1528_v36, %v4518_v44  ;;  %v1531_v7 = vmul.f32 %v1529_v40, %v4521_v43  ;;  %v1792_v15 = vstv %s5031_s18  ;;  %s5193_s18 = sld [smem:[#allocation16 + $0xd]] }
 0x3f3   :  { %v1630_v12 = vadd.f32 %v1628_v52, %v1624_v30  ;;  %v1631_v16 = vadd.f32 %v1629_v14, %v1625_v58  ;;  %v1783_v39 = vadd.f32 %v1781_v62, %v1777_v61  ;;  %v1639_v28 = vstv %s5035_s5  ;;  %s5215_s5 = sld [smem:[#allocation16 + $0xe]] }
 0x3f4   :  { %v1784_v18 = vadd.f32 %v1782_v59, %v1778_v45  ;;  %v1634_v10 = vmul.f32 %v1633_v26, %v1530_v47  ;;  %v1635_v35 = vmul.f32 %v1633_v26, %v1531_v7  ;;  %v1787_v41 = vmul.f32 %v1786_v22, %v1530_v47 }
 0x3f5   :  { %v1788_v19 = vmul.f32 %v1786_v22, %v1531_v7 }
 0x3f6   :  { %v1636_v46 = vadd.f32 %v1634_v10, %v1630_v12  ;;  %v1637_v4 = vadd.f32 %v1635_v35, %v1631_v16  ;;  %v1789_v50 = vadd.f32 %v1787_v41, %v1783_v39 }
 0x3f7   :  { %v1790_v8 = vadd.f32 %v1788_v19, %v1784_v18 }
 0x3f8   :  { %v1793_v0 = vadd.f32 %v1792_v15, %v1789_v50  ;;  %v1640_v63 = vadd.f32 %v1639_v28, %v1636_v46  ;;  %v1641_v3 = vadd.f32 %v1639_v28, %v1637_v4 }
 0x3f9   :  { %v1794_v48 = vadd.f32 %v1792_v15, %v1790_v8 }
 0x3fa   :  { %v1795_v5 = vsel %vm1011_vm9, %v1793_v0, 0.0  ;;  %v1642_v29 = vsel %vm1011_vm9, %v1640_v63, 0.0  ;;  %v1643_v55 = vsel %vm1011_vm9, %v1641_v3, 0.0 }
 0x3fb   :  { %v1796_v54 = vsel %vm1011_vm9, %v1794_v48, 0.0  ;;  %v1644_v25 = vadd.f32 %v1643_v55, %v1642_v29 }
 0x3fc   :  { %v1797_v2 = vadd.f32 %v1796_v54, %v1795_v5 }
 0x3fd   :  { %1645 = vadd.xlane.f32.xlu0 %v1644_v25 }
 0x3fe   :  { %1798 = vadd.xlane.f32.xlu1 %v1797_v2 }
 0x486   :  { %v1646_v32 = vpop.xlane.xlu0 %1645 }
 0x487   :  { %v1799_v38 = vpop.xlane.xlu1 %1798  ;;  %v1647_v49 = vsel %vm1011_vm9, %v1646_v32, 0.0 }
 0x488   :  { %v1800_v23 = vsel %vm1011_vm9, %v1799_v38, 0.0  ;;  %v1648_v21 = vrot.slane %v1647_v49, 4 }
 0x489   :  { %v1801_v53 = vrot.slane %v1800_v23, 4 }
 0x48a   :  { %v1649_v51 = vadd.f32 %v1648_v21, %v1647_v49  ;;  %v1675_v49 = vstv %s1672_s22  ;;  %s5221_s22 = sld [smem:[#allocation16 + $0xf]] }
 0x48b   :  { %v1802_v34 = vadd.f32 %v1801_v53, %v1800_v23 }
 0x48c   :  { %v1650_v56 = vrot.slane %v1649_v51, 2 }
 0x48d   :  { %v1803_v6 = vrot.slane %v1802_v34, 2 }
 0x48e   :  { %v1651_v52 = vadd.f32 %v1650_v56, %v1649_v51  ;;  %v1828_v51 = vstv %s3029_s29  ;;  %s5233_s29 = sld [smem:[#allocation16 + $0x15]] }
 0x48f   :  { %v1804_v31 = vadd.f32 %v1803_v6, %v1802_v34  ;;  %v1680_v34 = vstv %s1679_s24  ;;  %s5231_s24 = sld [smem:[#allocation16 + $0x14]] }
 0x490   :  { %v1652_v62 = vrot.slane %v1651_v52, 1 }
 0x491   :  { %v1805_v14 = vrot.slane %v1804_v31, 1 }
 0x492   :  { %v1653_v26 = vadd.f32 %v1652_v62, %v1651_v52 }
 0x493   :  { %v1806_v59 = vadd.f32 %v1805_v14, %v1804_v31 }
 0x494   :  { %v1654_v36 = vmul.f32 0.001953125, %v1653_v26 }
 0x495   :  { %v1807_v22 = vmul.f32 0.001953125, %v1806_v59  ;;  %v1833_v59 = vstv %s3030_s30  ;;  %s5241_s30 = sld [smem:[#allocation16 + $0x16]] }
 0x496   :  { %v1655_v58 = vsub.f32 %v1640_v63, %v1654_v36  ;;  %v1656_v61 = vsub.f32 %v1641_v3, %v1654_v36 }
 0x497   :  { %v1808_v40 = vsub.f32 %v1793_v0, %v1807_v22  ;;  %v1809_v30 = vsub.f32 %v1794_v48, %v1807_v22 }
 0x498   :  { %v1657_v45 = vmul.f32 %v1655_v58, %v1655_v58  ;;  %v1658_v47 = vmul.f32 %v1656_v61, %v1656_v61 }
 0x499   :  { %v1810_v7 = vmul.f32 %v1808_v40, %v1808_v40  ;;  %v1811_v12 = vmul.f32 %v1809_v30, %v1809_v30 }
 0x49a   :  { %v1659_v16 = vsel %vm1011_vm9, %v1657_v45, 0.0  ;;  %v1660_v39 = vsel %vm1011_vm9, %v1658_v47, 0.0 }
 0x49b   :  { %v1661_v18 = vadd.f32 %v1660_v39, %v1659_v16  ;;  %v1812_v10 = vsel %vm1011_vm9, %v1810_v7, 0.0  ;;  %v1813_v35 = vsel %vm1011_vm9, %v1811_v12, 0.0 }
 0x49c   :  { %v1814_v41 = vadd.f32 %v1813_v35, %v1812_v10 }
 0x49d   :  { %1662 = vadd.xlane.f32.xlu0 %v1661_v18 }
 0x4a1   :  { %1815 = vadd.xlane.f32.xlu0 %v1814_v41 }
 0x526   :  { %v1663_v19 = vpop.xlane.xlu0 %1662 }
 0x527   :  { %v1664_v15 = vsel %vm1011_vm9, %v1663_v19, 0.0 }
 0x528   :  { %v1665_v28 = vrot.slane %v1664_v15, 4 }
 0x52a   :  { %v1666_v46 = vadd.f32 %v1665_v28, %v1664_v15  ;;  %v1816_v4 = vpop.xlane.xlu0 %1815 }
 0x52b   :  { %v1817_v50 = vsel %vm1011_vm9, %v1816_v4, 0.0  ;;  %v2154_v4 = vstv %s5193_s18  ;;  %s3067_s18 = sld [smem:[#allocation19 + $0x1]] }
 0x52c   :  { %v1667_v8 = vrot.slane %v1666_v46, 2  ;;  %v1818_v0 = vrot.slane %v1817_v50, 4 }
 0x52e   :  { %v1668_v48 = vadd.f32 %v1667_v8, %v1666_v46  ;;  %v1819_v63 = vadd.f32 %v1818_v0, %v1817_v50  ;;  %v2001_v0 = vstv %s5187_s26  ;;  %s2113_s26 = sld [smem:[#allocation20]] }
 0x530   :  { %v1669_v3 = vrot.slane %v1668_v48, 1  ;;  %v1820_v5 = vrot.slane %v1819_v63, 2 }
 0x532   :  { %v1670_v54 = vadd.f32 %v1669_v3, %v1668_v48  ;;  %v1821_v29 = vadd.f32 %v1820_v5, %v1819_v63  ;;  %v1967_v63 = vstv %s5139_s27  ;;  %v2120_v3 = vstv %s5141_s1  ;;  %s5243_s27 = sld [smem:[#allocation16 + $0x17]] }
 0x533   :  { %s5253_s1 = sld [smem:[#allocation16 + $0x18]] }
 0x534   :  { %v1671_v55 = vmul.f32 0.001953125, %v1670_v54  ;;  %v1822_v2 = vrot.slane %v1821_v29, 1 }
 0x536   :  { %v1673_v25 = vadd.f32 1e-05, %v1671_v55  ;;  %v1823_v38 = vadd.f32 %v1822_v2, %v1821_v29  ;;  %v1971_v2 = vstv %s5143_s25  ;;  %s5255_s25 = sld [smem:[#allocation16 + $0x19]] }
 0x538   :  { %3178 = vrsqrt.f32 %v1673_v25  ;;  %v1824_v32 = vmul.f32 0.001953125, %v1823_v38  ;;  %v2124_v25 = vstv %s5145_s6  ;;  %v1977_v38 = vstv %s5147_s28  ;;  %s5269_s6 = sld [smem:[#allocation16 + $0x1b]] }
 0x539   :  { %s5271_s28 = sld [smem:[#allocation16 + $0x1c]] }
 0x53a   :  { %v1826_v23 = vadd.f32 1e-05, %v1824_v32  ;;  %v2130_v32 = vstv %s5149_s0  ;;  %s5311_s0 = sld [smem:[#allocation16 + $0x20]] }
 0x53c   :  { %3180 = vrsqrt.f32 %v1826_v23  ;;  %v5942_v23 = vld [vmem:[#allocation52_spill] sm:$0xff] }
 0x545   :  { %v3179_v53 = vpop.eup %3178 }
 0x546   :  { %v1676_v21 = vmul.f32 %v3179_v53, %v1675_v49  ;;  %v5943_v53 = vld [vmem:[#allocation53_spill] sm:$0xff] }
 0x548   :  { %v1677_v6 = vmul.f32 %v1676_v21, %v1655_v58  ;;  %v1678_v56 = vmul.f32 %v1676_v21, %v1656_v61 }
 0x549   :  { %v3181_v31 = vpop.eup %3180 }
 0x54a   :  { %v1681_v52 = vadd.f32 %v1680_v34, %v1677_v6  ;;  %v1682_v14 = vadd.f32 %v1680_v34, %v1678_v56  ;;  %v1829_v62 = vmul.f32 %v3181_v31, %v1828_v51  ;;  %v1983_v6 = vstv %s5151_s2  ;;  %s5315_s2 = sld [smem:[#allocation16 + $0x21]] }
 0x54b   :  { %v2136_v56 = vstv %s5153_s11  ;;  %v1989_v31 = vstv %s5155_s12  ;;  %s5335_s11 = sld [smem:[#allocation16 + $0x22]] }
 0x54c   :  { %v5059_v26 = vmax.f32 %v1681_v52, 0.0  ;;  %v5061_v22 = vmax.f32 %v1682_v14, 0.0  ;;  %v1830_v36 = vmul.f32 %v1829_v62, %v1808_v40  ;;  %v1831_v45 = vmul.f32 %v1829_v62, %v1809_v30  ;;  %s5341_s12 = sld [smem:[#allocation16 + $0x23]] }
 0x54d   :  { %v2142_v52 = vstv %s5157_s20  ;;  %s5349_s20 = sld [smem:[#allocation17 + $0x1]] }
 0x54e   :  { %v1834_v47 = vadd.f32 %v1833_v59, %v1830_v36  ;;  %1840 = vrot.lane.b32.xlu0 %v5061_v22, %s5925_s9  ;;  %1838 = vrot.lane.b32.xlu1 %v5059_v26, %s5925_s9  ;;  %v1835_v58 = vadd.f32 %v1833_v59, %v1831_v45 }
 0x550   :  { %v5067_v61 = vmax.f32 %v1834_v47, 0.0  ;;  %v5073_v7 = vmax.f32 %v1835_v58, 0.0  ;;  %v1995_v58 = vstv %s5159_s19  ;;  %s5353_s19 = sld [smem:[#allocation17]] }
 0x552   :  { %1854 = vrot.lane.b32.xlu0 %v5059_v26, %s5926_s23  ;;  %1846 = vrot.lane.b32.xlu1 %v5067_v61, %s5925_s9 }
 0x556   :  { %1862 = vrot.lane.b32.xlu0 %v5067_v61, %s5926_s23  ;;  %1848 = vrot.lane.b32.xlu1 %v5073_v7, %s5925_s9 }
 0x55a   :  { %1870 = vrot.lane.b32.xlu0 %v5059_v26, %s5927_s21  ;;  %1856 = vrot.lane.b32.xlu1 %v5061_v22, %s5926_s23 }
 0x55e   :  { %1878 = vrot.lane.b32.xlu0 %v5067_v61, %s5927_s21  ;;  %1864 = vrot.lane.b32.xlu1 %v5073_v7, %s5926_s23 }
 0x562   :  { %1886 = vrot.lane.b32.xlu0 %v5059_v26, %s5928_s3  ;;  %1872 = vrot.lane.b32.xlu1 %v5061_v22, %s5927_s21 }
 0x566   :  { %1894 = vrot.lane.b32.xlu0 %v5067_v61, %s5928_s3  ;;  %1880 = vrot.lane.b32.xlu1 %v5073_v7, %s5927_s21 }
 0x56a   :  { %1902 = vrot.lane.b32.xlu0 %v5059_v26, %s5929_s10  ;;  %1888 = vrot.lane.b32.xlu1 %v5061_v22, %s5928_s3 }
 0x56e   :  { %1910 = vrot.lane.b32.xlu0 %v5067_v61, %s5929_s10  ;;  %1896 = vrot.lane.b32.xlu1 %v5073_v7, %s5928_s3 }
 0x572   :  { %1918 = vrot.lane.b32.xlu0 %v5059_v26, %s5930_s13  ;;  %1904 = vrot.lane.b32.xlu1 %v5061_v22, %s5929_s10 }
 0x576   :  { %1926 = vrot.lane.b32.xlu0 %v5067_v61, %s5930_s13  ;;  %1912 = vrot.lane.b32.xlu1 %v5073_v7, %s5929_s10 }
 0x57a   :  { %1934 = vrot.lane.b32.xlu0 %v5059_v26, %s5931_s8  ;;  %1920 = vrot.lane.b32.xlu1 %v5061_v22, %s5930_s13 }
 0x57e   :  { %1942 = vrot.lane.b32.xlu0 %v5067_v61, %s5931_s8  ;;  %1928 = vrot.lane.b32.xlu1 %v5073_v7, %s5930_s13 }
 0x582   :  { %1950 = vrot.lane.b32.xlu0 %v5059_v26, %s5846_s7  ;;  %1936 = vrot.lane.b32.xlu1 %v5061_v22, %s5931_s8 }
 0x586   :  { %1958 = vrot.lane.b32.xlu0 %v5067_v61, %s5846_s7  ;;  %1944 = vrot.lane.b32.xlu1 %v5073_v7, %s5931_s8 }
 0x58a   :  { %1952 = vrot.lane.b32.xlu1 %v5061_v22, %s5846_s7 }
 0x58e   :  { %1960 = vrot.lane.b32.xlu1 %v5073_v7, %s5846_s7 }
 0x5c0   :  { %v1839_v40 = vpop.permute.xlu1 %1838  ;;  %v1841_v30 = vpop.permute.xlu0 %1840 }
 0x5c1   :  { %v1842_v41 = vsel %vm297_vm1, %v1839_v40, %v1841_v30  ;;  %v1843_v19 = vsel %vm297_vm1, %v1841_v30, %v1839_v40  ;;  %v2148_v40 = vstv %s5165_s14  ;;  %s2106_s14 = sld [smem:[#allocation19]] }
 0x5c2   :  { %v1844_v29 = vmul.f32 %v1843_v19, %v5932_v20  ;;  %v1845_v55 = vmul.f32 %v1842_v41, %v5933_v11 }
 0x5c4   :  { %v1847_v12 = vpop.permute.xlu1 %1846  ;;  %v1855_v16 = vpop.permute.xlu0 %1854  ;;  %v1968_v45 = vmul.f32 %v1967_v63, %v1844_v29  ;;  %v1969_v47 = vmul.f32 %v1967_v63, %v1845_v55 }
 0x5c8   :  { %v1849_v39 = vpop.permute.xlu1 %1848  ;;  %v1863_v18 = vpop.permute.xlu0 %1862 }
 0x5c9   :  { %v1850_v10 = vsel %vm297_vm1, %v1847_v12, %v1849_v39  ;;  %v1851_v35 = vsel %vm297_vm1, %v1849_v39, %v1847_v12 }
 0x5ca   :  { %v1852_v5 = vmul.f32 %v1851_v35, %v5932_v20  ;;  %v1853_v54 = vmul.f32 %v1850_v10, %v5933_v11 }
 0x5cc   :  { %v1857_v15 = vpop.permute.xlu1 %1856  ;;  %v1871_v28 = vpop.permute.xlu0 %1870  ;;  %v1972_v14 = vmul.f32 %v1971_v2, %v1852_v5  ;;  %v1973_v62 = vmul.f32 %v1971_v2, %v1853_v54  ;;  %v2125_v30 = vmul.f32 %v2124_v25, %v1852_v5  ;;  %v2126_v12 = vmul.f32 %v2124_v25, %v1853_v54 }
 0x5cd   :  { %v1858_v50 = vsel %vm401_vm2, %v1855_v16, %v1857_v15  ;;  %v1859_v8 = vsel %vm401_vm2, %v1857_v15, %v1855_v16 }
 0x5ce   :  { %v1860_v49 = vmul.f32 %v1859_v8, %v5942_v23  ;;  %v1861_v21 = vmul.f32 %v1858_v50, %v5943_v53  ;;  %v2121_v50 = vmul.f32 %v2120_v3, %v1844_v29  ;;  %v2122_v8 = vmul.f32 %v2120_v3, %v1845_v55 }
 0x5cf   :  { %v1974_v63 = vadd.f32 %v1972_v14, %v1968_v45  ;;  %v1975_v5 = vadd.f32 %v1973_v62, %v1969_v47 }
 0x5d0   :  { %v1865_v34 = vpop.permute.xlu1 %1864  ;;  %v1879_v51 = vpop.permute.xlu0 %1878  ;;  %v1978_v16 = vmul.f32 %v1977_v38, %v1860_v49  ;;  %v1979_v39 = vmul.f32 %v1977_v38, %v1861_v21  ;;  %v2131_v54 = vmul.f32 %v2130_v32, %v1860_v49  ;;  %v2132_v2 = vmul.f32 %v2130_v32, %v1861_v21 }
 0x5d1   :  { %v1866_v59 = vsel %vm401_vm2, %v1863_v18, %v1865_v34  ;;  %v1867_v36 = vsel %vm401_vm2, %v1865_v34, %v1863_v18  ;;  %v2127_v34 = vadd.f32 %v2125_v30, %v2121_v50 }
 0x5d2   :  { %v1868_v41 = vmul.f32 %v1867_v36, %v5942_v23  ;;  %v1869_v19 = vmul.f32 %v1866_v59, %v5943_v53  ;;  %v2128_v36 = vadd.f32 %v2126_v12, %v2122_v8  ;;  %v1980_v46 = vadd.f32 %v1978_v16, %v1974_v63 }
 0x5d3   :  { %v1981_v53 = vadd.f32 %v1979_v39, %v1975_v5  ;;  %v2133_v49 = vadd.f32 %v2131_v54, %v2127_v34 }
 0x5d4   :  { %v1873_v10 = vpop.permute.xlu1 %1872  ;;  %v1887_v35 = vpop.permute.xlu0 %1886  ;;  %v1984_v23 = vmul.f32 %v1983_v6, %v1868_v41  ;;  %v2137_v3 = vmul.f32 %v2136_v56, %v1868_v41  ;;  %v2138_v29 = vmul.f32 %v2136_v56, %v1869_v19  ;;  %v2134_v21 = vadd.f32 %v2132_v2, %v2128_v36 }
 0x5d5   :  { %v1874_v15 = vsel %vm445_vm3, %v1871_v28, %v1873_v10  ;;  %v1875_v18 = vsel %vm445_vm3, %v1873_v10, %v1871_v28  ;;  %v1985_v28 = vmul.f32 %v1983_v6, %v1869_v19 }
 0x5d6   :  { %v1876_v25 = vmul.f32 %v1875_v18, %v3927_v1  ;;  %v1877_v38 = vmul.f32 %v1874_v15, %v3945_v17  ;;  %v1986_v16 = vadd.f32 %v1984_v23, %v1980_v46  ;;  %v2139_v41 = vadd.f32 %v2137_v3, %v2133_v49 }
 0x5d7   :  { %v1987_v39 = vadd.f32 %v1985_v28, %v1981_v53  ;;  %v2140_v19 = vadd.f32 %v2138_v29, %v2134_v21 }
 0x5d8   :  { %v1881_v59 = vpop.permute.xlu1 %1880  ;;  %v1895_v48 = vpop.permute.xlu0 %1894  ;;  %v1990_v14 = vmul.f32 %v1989_v31, %v1876_v25  ;;  %v1991_v62 = vmul.f32 %v1989_v31, %v1877_v38  ;;  %v2143_v45 = vmul.f32 %v2142_v52, %v1876_v25  ;;  %v2144_v47 = vmul.f32 %v2142_v52, %v1877_v38 }
 0x5d9   :  { %v1882_v55 = vsel %vm445_vm3, %v1879_v51, %v1881_v59  ;;  %v1883_v32 = vsel %vm445_vm3, %v1881_v59, %v1879_v51  ;;  %v2160_v38 = vstv %s5221_s22  ;;  %s5463_s22 = sld [smem:[#allocation22 + $0x3]] }
 0x5da   :  { %v1884_v6 = vmul.f32 %v1883_v32, %v3927_v1  ;;  %v1885_v30 = vmul.f32 %v1882_v55, %v3945_v17  ;;  %v1992_v46 = vadd.f32 %v1990_v14, %v1986_v16  ;;  %v1993_v23 = vadd.f32 %v1991_v62, %v1987_v39 }
 0x5db   :  { %v2145_v53 = vadd.f32 %v2143_v45, %v2139_v41  ;;  %v2146_v63 = vadd.f32 %v2144_v47, %v2140_v19 }
 0x5dc   :  { %v1889_v12 = vpop.permute.xlu1 %1888  ;;  %v1903_v56 = vpop.permute.xlu0 %1902  ;;  %v1996_v15 = vmul.f32 %v1995_v58, %v1884_v6  ;;  %v1997_v31 = vmul.f32 %v1995_v58, %v1885_v30  ;;  %v2149_v18 = vmul.f32 %v2148_v40, %v1884_v6  ;;  %v2150_v52 = vmul.f32 %v2148_v40, %v1885_v30 }
 0x5dd   :  { %v1890_v10 = vsel %vm489_vm4, %v1887_v35, %v1889_v12  ;;  %v1891_v51 = vsel %vm489_vm4, %v1889_v12, %v1887_v35  ;;  %v2007_v40 = vstv %s5215_s5  ;;  %s3068_s5 = sld [smem:[#allocation20 + $0x1]] }
 0x5de   :  { %v1892_v50 = vmul.f32 %v1891_v51, %v3954_v24  ;;  %v1893_v8 = vmul.f32 %v1890_v10, %v3964_v33  ;;  %v1998_v59 = vadd.f32 %v1996_v15, %v1992_v46  ;;  %v1999_v28 = vadd.f32 %v1997_v31, %v1993_v23 }
 0x5df   :  { %v2151_v3 = vadd.f32 %v2149_v18, %v2145_v53  ;;  %v2152_v29 = vadd.f32 %v2150_v52, %v2146_v63  ;;  %v5946_v10 = vstv %s5133_s16  ;;  %s5285_s16 = sld [smem:[#allocation16 + $0x1d]] }
 0x5e0   :  { %v1897_v5 = vpop.permute.xlu1 %1896  ;;  %v1911_v54 = vpop.permute.xlu0 %1910  ;;  %v2002_v35 = vmul.f32 %v2001_v0, %v1892_v50  ;;  %v2003_v58 = vmul.f32 %v2001_v0, %v1893_v8  ;;  %v2155_v2 = vmul.f32 %v2154_v4, %v1892_v50  ;;  %v2156_v25 = vmul.f32 %v2154_v4, %v1893_v8 }
 0x5e1   :  { %v1898_v34 = vsel %vm489_vm4, %v1895_v48, %v1897_v5  ;;  %v1899_v36 = vsel %vm489_vm4, %v1897_v5, %v1895_v48  ;;  %v5944_v4 = vstv %s5131_s4  ;;  %s5257_s4 = sld [smem:[#allocation16 + $0x1a]]  ;;  %v2167_v51 = vmul.f32 %v5946_v10, %v5059_v26 }
 0x5e2   :  { %v2014_v0 = vmul.f32 %v5944_v4, %v5059_v26  ;;  %v5945_v55 = vmov %v5944_v4  ;;  %v1900_v49 = vmul.f32 %v1899_v36, %v3954_v24  ;;  %v1901_v48 = vmul.f32 %v1898_v34, %v3964_v33 }
 0x5e3   :  { %v2015_v32 = vmul.f32 %v5945_v55, %v5061_v22  ;;  %v2004_v62 = vadd.f32 %v2002_v35, %v1998_v59  ;;  %v2005_v45 = vadd.f32 %v2003_v58, %v1999_v28  ;;  %v2157_v47 = vadd.f32 %v2155_v2, %v2151_v3 }
 0x5e4   :  { %v1905_v21 = vpop.permute.xlu1 %1904  ;;  %v1919_v14 = vpop.permute.xlu0 %1918  ;;  %v2158_v6 = vadd.f32 %v2156_v25, %v2152_v29  ;;  %v2008_v30 = vmul.f32 %v2007_v40, %v1900_v49  ;;  %v2009_v12 = vmul.f32 %v2007_v40, %v1901_v48  ;;  %v2161_v16 = vmul.f32 %v2160_v38, %v1900_v49 }
 0x5e5   :  { %v2162_v39 = vmul.f32 %v2160_v38, %v1901_v48  ;;  %v5947_v41 = vmov %v5946_v10  ;;  %v1906_v15 = vsel %vm533_vm5, %v1903_v56, %v1905_v21  ;;  %v1907_v31 = vsel %vm533_vm5, %v1905_v21, %v1903_v56 }
 0x5e6   :  { %v2168_v19 = vmul.f32 %v5947_v41, %v5061_v22  ;;  %v2010_v18 = vadd.f32 %v2008_v30, %v2004_v62  ;;  %v2011_v52 = vadd.f32 %v2009_v12, %v2005_v45  ;;  %v2163_v50 = vadd.f32 %v2161_v16, %v2157_v47 }
 0x5e7   :  { %v2164_v8 = vadd.f32 %v2162_v39, %v2158_v6  ;;  %v5948_v26 = vstv %s5135_s17  ;;  %v5949_v22 = vstv %s5137_s15  ;;  %v1908_v34 = vmul.f32 %v1906_v15, %v4007_v60  ;;  %s5299_s17 = sld [smem:[#allocation16 + $0x1e]] }
 0x5e8   :  { %v1913_v46 = vpop.permute.xlu1 %1912  ;;  %v2021_v23 = vmul.f32 %v5948_v26, %v5073_v7  ;;  %v2174_v53 = vmul.f32 %v5949_v22, %v5073_v7  ;;  %v5950_v63 = vmov %v5948_v26  ;;  %v5951_v56 = vmov %v5949_v22  ;;  %v1927_v58 = vpop.permute.xlu0 %1926  ;;  %s5305_s15 = sld [smem:[#allocation16 + $0x1f]] }
 0x5e9   :  { %v2020_v5 = vmul.f32 %v5950_v63, %v5067_v61  ;;  %v2173_v35 = vmul.f32 %v5951_v56, %v5067_v61  ;;  %v2016_v2 = vadd.f32 %v2014_v0, %v2010_v18  ;;  %v2017_v25 = vadd.f32 %v2015_v32, %v2011_v52 }
 0x5ea   :  { %v2169_v40 = vadd.f32 %v2167_v51, %v2163_v50  ;;  %v2170_v38 = vadd.f32 %v2168_v19, %v2164_v8  ;;  %v1909_v7 = vmul.f32 %v1907_v31, %v5920_v27  ;;  %v1914_v36 = vsel %vm533_vm5, %v1911_v54, %v1913_v46 }
 0x5eb   :  { %v1915_v61 = vsel %vm533_vm5, %v1913_v46, %v1911_v54  ;;  %v2022_v59 = vadd.f32 %v2020_v5, %v2016_v2  ;;  %v2023_v28 = vadd.f32 %v2021_v23, %v2017_v25  ;;  %v2025_v0 = vstv %s5231_s24  ;;  %s5467_s24 = sld [smem:[#allocation22 + $0x5]] }
 0x5ec   :  { %v2175_v3 = vadd.f32 %v2173_v35, %v2169_v40  ;;  %v2176_v29 = vadd.f32 %v2174_v53, %v2170_v38  ;;  %v1921_v4 = vpop.permute.xlu1 %1920  ;;  %v2178_v55 = vstv %s5233_s29  ;;  %v2031_v54 = vstv %s5241_s30  ;;  %v1935_v6 = vpop.permute.xlu0 %1934  ;;  %s5469_s29 = sld [smem:[#allocation22 + $0x6]] }
 0x5ed   :  { %v1922_v32 = vsel %vm577_vm6, %v1919_v14, %v1921_v4  ;;  %v1923_v49 = vsel %vm577_vm6, %v1921_v4, %v1919_v14  ;;  %v2184_v48 = vstv %s5243_s27  ;;  %v1916_v21 = vmul.f32 %v1914_v36, %v4007_v60  ;;  %s5471_s30 = sld [smem:[#allocation22 + $0x7]] }
 0x5ee   :  { %v1917_v62 = vmul.f32 %v1915_v61, %v5920_v27  ;;  %v2037_v45 = vstv %s5253_s1  ;;  %v2190_v47 = vstv %s5255_s25  ;;  %v2043_v30 = vstv %s5257_s4  ;;  %s5473_s27 = sld [smem:[#allocation22 + $0x8]] }
 0x5ef   :  { %v2196_v12 = vstv %s5269_s6  ;;  %v2026_v14 = vmul.f32 %v2025_v0, %v1908_v34  ;;  %v2027_v16 = vmul.f32 %v2025_v0, %v1909_v7  ;;  %v1924_v39 = vmul.f32 %v1922_v32, %v4427_v57  ;;  %s5475_s1 = sld [smem:[#allocation22 + $0x9]] }
 0x5f0   :  { %v1925_v10 = vmul.f32 %v1923_v49, %v4446_v13  ;;  %v1929_v51 = vpop.permute.xlu1 %1928  ;;  %v2179_v41 = vmul.f32 %v2178_v55, %v1908_v34  ;;  %v2180_v19 = vmul.f32 %v2178_v55, %v1909_v7  ;;  %v2049_v15 = vstv %s5271_s28  ;;  %v1943_v40 = vpop.permute.xlu0 %1942  ;;  %s5477_s25 = sld [smem:[#allocation22 + $0xa]] }
 0x5f1   :  { %v2202_v31 = vstv %s5285_s16  ;;  %v2028_v18 = vadd.f32 %v2026_v14, %v2022_v59  ;;  %v2029_v52 = vadd.f32 %v2027_v16, %v2023_v28  ;;  %v2032_v50 = vmul.f32 %v2031_v54, %v1916_v21  ;;  %s5483_s4 = sld [smem:[#allocation22 + $0xb]] }
 0x5f2   :  { %v2033_v8 = vmul.f32 %v2031_v54, %v1917_v62  ;;  %v2181_v46 = vadd.f32 %v2179_v41, %v2175_v3  ;;  %v2182_v26 = vadd.f32 %v2180_v19, %v2176_v29  ;;  %v1930_v23 = vsel %vm577_vm6, %v1927_v58, %v1929_v51  ;;  %s5505_s6 = sld [smem:[#allocation22 + $0xc]] }
 0x5f3   :  { %v1931_v22 = vsel %vm577_vm6, %v1929_v51, %v1927_v58  ;;  %v2185_v53 = vmul.f32 %v2184_v48, %v1916_v21  ;;  %v2186_v63 = vmul.f32 %v2184_v48, %v1917_v62  ;;  %v2038_v5 = vmul.f32 %v2037_v45, %v1924_v39  ;;  %s5511_s28 = sld [smem:[#allocation22 + $0xd]] }
 0x5f4   :  { %v2039_v56 = vmul.f32 %v2037_v45, %v1925_v10  ;;  %v1937_v35 = vpop.permute.xlu1 %1936  ;;  %v1932_v2 = vmul.f32 %v1930_v23, %v4427_v57  ;;  %v1933_v25 = vmul.f32 %v1931_v22, %v4446_v13  ;;  %v2034_v7 = vadd.f32 %v2032_v50, %v2028_v18  ;;  %v1951_v41 = vpop.permute.xlu0 %1950  ;;  %s5533_s16 = sld [smem:[#allocation22 + $0xe]] }
 0x5f5   :  { %v1938_v38 = vsel %vm621_vm7, %v1935_v6, %v1937_v35  ;;  %v1939_v34 = vsel %vm621_vm7, %v1937_v35, %v1935_v6  ;;  %v2035_v58 = vadd.f32 %v2033_v8, %v2029_v52  ;;  %v2055_v36 = vstv %s5299_s17  ;;  %s5539_s17 = sld [smem:[#allocation22 + $0xf]] }
 0x5f6   :  { %v2208_v61 = vstv %s5305_s15  ;;  %v2191_v59 = vmul.f32 %v2190_v47, %v1924_v39  ;;  %v2192_v28 = vmul.f32 %v2190_v47, %v1925_v10  ;;  %v1940_v3 = vmul.f32 %v1938_v38, %v4469_v9  ;;  %s5549_s15 = sld [smem:[#allocation22 + $0x14]] }
 0x5f7   :  { %v1941_v29 = vmul.f32 %v1939_v34, %v4472_v42  ;;  %v2187_v4 = vadd.f32 %v2185_v53, %v2181_v46  ;;  %v2188_v0 = vadd.f32 %v2186_v63, %v2182_v26  ;;  %v2061_v32 = vstv %s5311_s0  ;;  %s5551_s0 = sld [smem:[#allocation22 + $0x15]] }
 0x5f8   :  { %v1945_v55 = vpop.permute.xlu1 %1944  ;;  %v2214_v49 = vstv %s5315_s2  ;;  %v2040_v54 = vadd.f32 %v2038_v5, %v2034_v7  ;;  %v2041_v48 = vadd.f32 %v2039_v56, %v2035_v58  ;;  %v2044_v21 = vmul.f32 %v2043_v30, %v1932_v2  ;;  %v1959_v34 = vpop.permute.xlu0 %1958  ;;  %s5559_s2 = sld [smem:[#allocation22 + $0x16]] }
 0x5f9   :  { %v2045_v62 = vmul.f32 %v2043_v30, %v1933_v25  ;;  %v2197_v45 = vmul.f32 %v2196_v12, %v1932_v2  ;;  %v2198_v6 = vmul.f32 %v2196_v12, %v1933_v25  ;;  %v1946_v47 = vsel %vm621_vm7, %v1943_v40, %v1945_v55 }
 0x5fa   :  { %v1947_v14 = vsel %vm621_vm7, %v1945_v55, %v1943_v40  ;;  %v2193_v16 = vadd.f32 %v2191_v59, %v2187_v4  ;;  %v2194_v39 = vadd.f32 %v2192_v28, %v2188_v0  ;;  %v2050_v10 = vmul.f32 %v2049_v15, %v1940_v3 }
 0x5fb   :  { %v2051_v51 = vmul.f32 %v2049_v15, %v1941_v29  ;;  %v2203_v19 = vmul.f32 %v2202_v31, %v1940_v3  ;;  %v2204_v18 = vmul.f32 %v2202_v31, %v1941_v29  ;;  %v1948_v30 = vmul.f32 %v1946_v47, %v4469_v9 }
 0x5fc   :  { %v1949_v52 = vmul.f32 %v1947_v14, %v4472_v42  ;;  %v1953_v12 = vpop.permute.xlu1 %1952  ;;  %v2046_v50 = vadd.f32 %v2044_v21, %v2040_v54  ;;  %v2047_v8 = vadd.f32 %v2045_v62, %v2041_v48  ;;  %v2199_v23 = vadd.f32 %v2197_v45, %v2193_v16 }
 0x5fd   :  { %v1954_v46 = vsel %vm665_vm8, %v1951_v41, %v1953_v12  ;;  %v1955_v26 = vsel %vm665_vm8, %v1953_v12, %v1951_v41  ;;  %v2200_v22 = vadd.f32 %v2198_v6, %v2194_v39  ;;  %v2056_v53 = vmul.f32 %v2055_v36, %v1948_v30 }
 0x5fe   :  { %v2057_v15 = vmul.f32 %v2055_v36, %v1949_v52  ;;  %v2209_v31 = vmul.f32 %v2208_v61, %v1948_v30  ;;  %v2210_v63 = vmul.f32 %v2208_v61, %v1949_v52  ;;  %v1956_v5 = vmul.f32 %v1954_v46, %v4518_v44 }
 0x5ff   :  { %v1957_v56 = vmul.f32 %v1955_v26, %v4521_v43  ;;  %v2052_v35 = vadd.f32 %v2050_v10, %v2046_v50  ;;  %v2053_v2 = vadd.f32 %v2051_v51, %v2047_v8  ;;  %v2205_v25 = vadd.f32 %v2203_v19, %v2199_v23 }
 0x600   :  { %v2206_v40 = vadd.f32 %v2204_v18, %v2200_v22  ;;  %v1961_v38 = vpop.permute.xlu1 %1960  ;;  %v2062_v7 = vmul.f32 %v2061_v32, %v1956_v5  ;;  %v2215_v36 = vmul.f32 %v2214_v49, %v1956_v5  ;;  %v2067_v28 = vstv %s5335_s11  ;;  %s5561_s11 = sld [smem:[#allocation22 + $0x17]] }
 0x601   :  { %v2063_v58 = vmul.f32 %v2061_v32, %v1957_v56  ;;  %v2216_v59 = vmul.f32 %v2214_v49, %v1957_v56  ;;  %v2220_v3 = vstv %s5341_s12  ;;  %v1962_v61 = vsel %vm665_vm8, %v1959_v34, %v1961_v38  ;;  %s5571_s12 = sld [smem:[#allocation22 + $0x18]] }
 0x602   :  { %v1963_v29 = vsel %vm665_vm8, %v1961_v38, %v1959_v34  ;;  %v2058_v4 = vadd.f32 %v2056_v53, %v2052_v35  ;;  %v2059_v0 = vadd.f32 %v2057_v15, %v2053_v2  ;;  %v2211_v55 = vadd.f32 %v2209_v31, %v2205_v25 }
 0x603   :  { %v2212_v54 = vadd.f32 %v2210_v63, %v2206_v40  ;;  %v1964_v48 = vmul.f32 %v1962_v61, %v4518_v44  ;;  %v1965_v32 = vmul.f32 %v1963_v29, %v4521_v43  ;;  %v2226_v39 = vstv %s5349_s20  ;;  %s5573_s20 = sld [smem:[#allocation22 + $0x19]] }
 0x604   :  { %v2064_v21 = vadd.f32 %v2062_v7, %v2058_v4  ;;  %v2065_v49 = vadd.f32 %v2063_v58, %v2059_v0  ;;  %v2217_v62 = vadd.f32 %v2215_v36, %v2211_v55  ;;  %v2073_v10 = vstv %s5353_s19  ;;  %s5575_s19 = sld [smem:[#allocation22 + $0x1a]] }
 0x605   :  { %v2218_v45 = vadd.f32 %v2216_v59, %v2212_v54  ;;  %v2068_v6 = vmul.f32 %v2067_v28, %v1964_v48  ;;  %v2069_v47 = vmul.f32 %v2067_v28, %v1965_v32  ;;  %v2221_v14 = vmul.f32 %v2220_v3, %v1964_v48 }
 0x606   :  { %v2222_v16 = vmul.f32 %v2220_v3, %v1965_v32 }
 0x607   :  { %v2070_v51 = vadd.f32 %v2068_v6, %v2064_v21  ;;  %v2071_v41 = vadd.f32 %v2069_v47, %v2065_v49  ;;  %v2223_v19 = vadd.f32 %v2221_v14, %v2217_v62 }
 0x608   :  { %v2224_v18 = vadd.f32 %v2222_v16, %v2218_v45 }
 0x609   :  { %v2227_v30 = vadd.f32 %v2226_v39, %v2223_v19  ;;  %v2074_v12 = vadd.f32 %v2073_v10, %v2070_v51  ;;  %v2075_v50 = vadd.f32 %v2073_v10, %v2071_v41 }
 0x60a   :  { %v2228_v52 = vadd.f32 %v2226_v39, %v2224_v18 }
 0x60b   :  { %v2229_v8 = vsel %vm1011_vm9, %v2227_v30, 0.0  ;;  %v2076_v26 = vsel %vm1011_vm9, %v2074_v12, 0.0  ;;  %v2077_v23 = vsel %vm1011_vm9, %v2075_v50, 0.0 }
 0x60c   :  { %v2230_v46 = vsel %vm1011_vm9, %v2228_v52, 0.0  ;;  %v2078_v53 = vadd.f32 %v2077_v23, %v2076_v26 }
 0x60d   :  { %v2231_v22 = vadd.f32 %v2230_v46, %v2229_v8 }
 0x60e   :  { %2079 = vadd.xlane.f32.xlu0 %v2078_v53 }
 0x60f   :  { %2232 = vadd.xlane.f32.xlu1 %v2231_v22 }
 0x697   :  { %v2080_v31 = vpop.xlane.xlu0 %2079 }
 0x698   :  { %v2233_v15 = vpop.xlane.xlu1 %2232  ;;  %v2081_v5 = vsel %vm1011_vm9, %v2080_v31, 0.0 }
 0x699   :  { %v2234_v63 = vsel %vm1011_vm9, %v2233_v15, 0.0  ;;  %v2082_v35 = vrot.slane %v2081_v5, 4 }
 0x69a   :  { %v2235_v56 = vrot.slane %v2234_v63, 4 }
 0x69b   :  { %v2083_v25 = vadd.f32 %v2082_v35, %v2081_v5  ;;  %v2109_v5 = vstv %s2106_s14  ;;  %s5587_s14 = sld [smem:[#allocation22 + $0x1b]] }
 0x69c   :  { %v2236_v2 = vadd.f32 %v2235_v56, %v2234_v63 }
 0x69d   :  { %v2084_v38 = vrot.slane %v2083_v25, 2 }
 0x69e   :  { %v2237_v40 = vrot.slane %v2236_v2, 2 }
 0x69f   :  { %v2085_v7 = vadd.f32 %v2084_v38, %v2083_v25  ;;  %v2262_v25 = vstv %s3067_s18  ;;  %s5603_s18 = sld [smem:[#allocation22 + $0x1d]] }
 0x6a0   :  { %v2238_v34 = vadd.f32 %v2237_v40, %v2236_v2  ;;  %v2114_v2 = vstv %s2113_s26  ;;  %s5589_s26 = sld [smem:[#allocation22 + $0x1c]] }
 0x6a1   :  { %v2086_v36 = vrot.slane %v2085_v7, 1 }
 0x6a2   :  { %v2239_v58 = vrot.slane %v2238_v34, 1 }
 0x6a3   :  { %v2087_v28 = vadd.f32 %v2086_v36, %v2085_v7 }
 0x6a4   :  { %v2240_v59 = vadd.f32 %v2239_v58, %v2238_v34 }
 0x6a5   :  { %v2088_v61 = vmul.f32 0.001953125, %v2087_v28 }
 0x6a6   :  { %v2241_v3 = vmul.f32 0.001953125, %v2240_v59  ;;  %v2267_v59 = vstv %s3068_s5  ;;  %s5617_s5 = sld [smem:[#allocation22 + $0x1e]] }
 0x6a7   :  { %v2089_v0 = vsub.f32 %v2074_v12, %v2088_v61  ;;  %v2090_v55 = vsub.f32 %v2075_v50, %v2088_v61 }
 0x6a8   :  { %v2242_v29 = vsub.f32 %v2227_v30, %v2241_v3  ;;  %v2243_v4 = vsub.f32 %v2228_v52, %v2241_v3 }
 0x6a9   :  { %v2091_v54 = vmul.f32 %v2089_v0, %v2089_v0  ;;  %v2092_v48 = vmul.f32 %v2090_v55, %v2090_v55 }
 0x6aa   :  { %v2244_v32 = vmul.f32 %v2242_v29, %v2242_v29  ;;  %v2245_v21 = vmul.f32 %v2243_v4, %v2243_v4 }
 0x6ab   :  { %v2093_v49 = vsel %vm1011_vm9, %v2091_v54, 0.0  ;;  %v2094_v62 = vsel %vm1011_vm9, %v2092_v48, 0.0 }
 0x6ac   :  { %v2095_v45 = vadd.f32 %v2094_v62, %v2093_v49  ;;  %v2246_v6 = vsel %vm1011_vm9, %v2244_v32, 0.0  ;;  %v2247_v47 = vsel %vm1011_vm9, %v2245_v21, 0.0 }
 0x6ad   :  { %v2248_v14 = vadd.f32 %v2247_v47, %v2246_v6 }
 0x6ae   :  { %2096 = vadd.xlane.f32.xlu0 %v2095_v45 }
 0x6b2   :  { %2249 = vadd.xlane.f32.xlu0 %v2248_v14 }
 0x737   :  { %v2097_v16 = vpop.xlane.xlu0 %2096 }
 0x738   :  { %v2098_v39 = vsel %vm1011_vm9, %v2097_v16, 0.0 }
 0x739   :  { %v2099_v10 = vrot.slane %v2098_v39, 4 }
 0x73b   :  { %v2100_v51 = vadd.f32 %v2099_v10, %v2098_v39  ;;  %v2250_v41 = vpop.xlane.xlu0 %2249 }
 0x73c   :  { %v2251_v19 = vsel %vm1011_vm9, %v2250_v41, 0.0 }
 0x73d   :  { %v2101_v18 = vrot.slane %v2100_v51, 2  ;;  %v2252_v30 = vrot.slane %v2251_v19, 4 }
 0x73f   :  { %v2102_v52 = vadd.f32 %v2101_v18, %v2100_v51  ;;  %v2253_v12 = vadd.f32 %v2252_v30, %v2251_v19 }
 0x741   :  { %v2103_v50 = vrot.slane %v2102_v52, 1  ;;  %v2254_v8 = vrot.slane %v2253_v12, 2 }
 0x743   :  { %v2104_v46 = vadd.f32 %v2103_v50, %v2102_v52  ;;  %v2255_v26 = vadd.f32 %v2254_v8, %v2253_v12 }
 0x745   :  { %v2105_v23 = vmul.f32 0.001953125, %v2104_v46  ;;  %v2256_v22 = vrot.slane %v2255_v26, 1 }
 0x747   :  { %v2107_v53 = vadd.f32 1e-05, %v2105_v23  ;;  %v2257_v15 = vadd.f32 %v2256_v22, %v2255_v26 }
 0x749   :  { %3182 = vrsqrt.f32 %v2107_v53  ;;  %v2258_v31 = vmul.f32 0.001953125, %v2257_v15  ;;  %v2558_v53 = vstv %s5463_s22  ;;  %s2540_s22 = sld [smem:[#allocation25]] }
 0x74b   :  { %v2260_v63 = vadd.f32 1e-05, %v2258_v31  ;;  %v2564_v31 = vstv %s5467_s24  ;;  %s3105_s24 = sld [smem:[#allocation25 + $0x1]] }
 0x74d   :  { %3184 = vrsqrt.f32 %v2260_v63  ;;  %v5952_v63 = vld [vmem:[#allocation52_spill] sm:$0xff] }
 0x756   :  { %v3183_v56 = vpop.eup %3182 }
 0x757   :  { %v2110_v35 = vmul.f32 %v3183_v56, %v2109_v5  ;;  %v5953_v56 = vld [vmem:[#allocation53_spill] sm:$0xff] }
 0x759   :  { %v2111_v40 = vmul.f32 %v2110_v35, %v2089_v0  ;;  %v2112_v38 = vmul.f32 %v2110_v35, %v2090_v55 }
 0x75a   :  { %v3185_v34 = vpop.eup %3184 }
 0x75b   :  { %v2115_v7 = vadd.f32 %v2114_v2, %v2111_v40  ;;  %v2116_v58 = vadd.f32 %v2114_v2, %v2112_v38  ;;  %v2263_v36 = vmul.f32 %v3185_v34, %v2262_v25  ;;  %v2417_v40 = vstv %s5469_s29  ;;  %s3106_s29 = sld [smem:[#allocation26 + $0x1]] }
 0x75c   :  { %v2423_v38 = vstv %s5473_s27 }
 0x75d   :  { %v5377_v28 = vmax.f32 %v2115_v7, 0.0  ;;  %v5379_v3 = vmax.f32 %v2116_v58, 0.0  ;;  %v2264_v61 = vmul.f32 %v2263_v36, %v2242_v29  ;;  %v2265_v54 = vmul.f32 %v2263_v36, %v2243_v4 }
 0x75f   :  { %v2268_v48 = vadd.f32 %v2267_v59, %v2264_v61  ;;  %2274 = vrot.lane.b32.xlu0 %v5379_v3, %s5925_s9  ;;  %2272 = vrot.lane.b32.xlu1 %v5377_v28, %s5925_s9  ;;  %v2269_v0 = vadd.f32 %v2267_v59, %v2265_v54  ;;  %v2429_v54 = vstv %s5477_s25 }
 0x761   :  { %v5385_v55 = vmax.f32 %v2268_v48, 0.0  ;;  %v5391_v32 = vmax.f32 %v2269_v0, 0.0  ;;  %v2582_v48 = vstv %s5483_s4 }
 0x763   :  { %2288 = vrot.lane.b32.xlu0 %v5377_v28, %s5926_s23  ;;  %2280 = vrot.lane.b32.xlu1 %v5385_v55, %s5925_s9 }
 0x767   :  { %2296 = vrot.lane.b32.xlu0 %v5385_v55, %s5926_s23  ;;  %2282 = vrot.lane.b32.xlu1 %v5391_v32, %s5925_s9  ;;  %s5449_s9 = sld [smem:[#allocation22 + $0x10]] }
 0x76b   :  { %2304 = vrot.lane.b32.xlu0 %v5377_v28, %s5927_s21  ;;  %2290 = vrot.lane.b32.xlu1 %v5379_v3, %s5926_s23 }
 0x76d   :  { %v2447_v51 = vstv %s5449_s9  ;;  %s5623_s9 = sld [smem:[#allocation22 + $0x1f]] }
 0x76f   :  { %2312 = vrot.lane.b32.xlu0 %v5385_v55, %s5927_s21  ;;  %2298 = vrot.lane.b32.xlu1 %v5391_v32, %s5926_s23  ;;  %s5451_s23 = sld [smem:[#allocation22 + $0x11]] }
 0x773   :  { %2320 = vrot.lane.b32.xlu0 %v5377_v28, %s5928_s3  ;;  %2306 = vrot.lane.b32.xlu1 %v5379_v3, %s5927_s21 }
 0x775   :  { %v2600_v41 = vstv %s5451_s23  ;;  %s5629_s23 = sld [smem:[#allocation22 + $0x20]] }
 0x777   :  { %2328 = vrot.lane.b32.xlu0 %v5385_v55, %s5928_s3  ;;  %2314 = vrot.lane.b32.xlu1 %v5391_v32, %s5927_s21  ;;  %s5453_s21 = sld [smem:[#allocation22 + $0x12]] }
 0x77b   :  { %2336 = vrot.lane.b32.xlu0 %v5377_v28, %s5929_s10  ;;  %2322 = vrot.lane.b32.xlu1 %v5379_v3, %s5928_s3 }
 0x77f   :  { %2344 = vrot.lane.b32.xlu0 %v5385_v55, %s5929_s10  ;;  %2330 = vrot.lane.b32.xlu1 %v5391_v32, %s5928_s3  ;;  %s5455_s3 = sld [smem:[#allocation22 + $0x13]] }
 0x783   :  { %2352 = vrot.lane.b32.xlu0 %v5377_v28, %s5930_s13  ;;  %2338 = vrot.lane.b32.xlu1 %v5379_v3, %s5929_s10 }
 0x787   :  { %2360 = vrot.lane.b32.xlu0 %v5385_v55, %s5930_s13  ;;  %2346 = vrot.lane.b32.xlu1 %v5391_v32, %s5929_s10  ;;  %s5457_s10 = sld [smem:[#allocation22]] }
 0x78b   :  { %2368 = vrot.lane.b32.xlu0 %v5377_v28, %s5931_s8  ;;  %2354 = vrot.lane.b32.xlu1 %v5379_v3, %s5930_s13 }
 0x78d   :  { %v2401_v12 = vstv %s5457_s10  ;;  %s5659_s10 = sld [smem:[#allocation22 + $0x23]] }
 0x78f   :  { %2376 = vrot.lane.b32.xlu0 %v5385_v55, %s5931_s8  ;;  %2362 = vrot.lane.b32.xlu1 %v5391_v32, %s5930_s13  ;;  %s5459_s13 = sld [smem:[#allocation22 + $0x1]] }
 0x793   :  { %2384 = vrot.lane.b32.xlu0 %v5377_v28, %s5846_s7  ;;  %2370 = vrot.lane.b32.xlu1 %v5379_v3, %s5931_s8 }
 0x795   :  { %v2554_v50 = vstv %s5459_s13  ;;  %s5667_s13 = sld [smem:[#allocation23 + $0x1]] }
 0x797   :  { %2392 = vrot.lane.b32.xlu0 %v5385_v55, %s5846_s7  ;;  %2378 = vrot.lane.b32.xlu1 %v5391_v32, %s5931_s8  ;;  %s5461_s8 = sld [smem:[#allocation22 + $0x2]] }
 0x79b   :  { %2386 = vrot.lane.b32.xlu1 %v5379_v3, %s5846_s7  ;;  %v2660_v37 = vstv %s5667_s13  ;;  %s5961_s13 = sld [smem:[#allocation66_spill]] }
 0x79d   :  { %v2405_v22 = vstv %s5461_s8  ;;  %s5671_s8 = sld [smem:[#allocation23]] }
 0x79f   :  { %2394 = vrot.lane.b32.xlu1 %v5391_v32, %s5846_s7  ;;  %s5465_s7 = sld [smem:[#allocation22 + $0x4]] }
 0x7a5   :  { %v2411_v15 = vstv %s5465_s7  ;;  %s2547_s7 = sld [smem:[#allocation26]] }
 0x7d1   :  { %v2273_v29 = vpop.permute.xlu1 %2272  ;;  %v2275_v4 = vpop.permute.xlu0 %2274 }
 0x7d2   :  { %v2276_v14 = vsel %vm297_vm1, %v2273_v29, %v2275_v4  ;;  %v2277_v16 = vsel %vm297_vm1, %v2275_v4, %v2273_v29 }
 0x7d3   :  { %v2278_v26 = vmul.f32 %v2277_v16, %v5932_v20  ;;  %v2279_v23 = vmul.f32 %v2276_v14, %v5933_v11 }
 0x7d5   :  { %v2281_v21 = vpop.permute.xlu1 %2280  ;;  %v2289_v49 = vpop.permute.xlu0 %2288  ;;  %v2402_v59 = vmul.f32 %v2401_v12, %v2278_v26  ;;  %v2403_v61 = vmul.f32 %v2401_v12, %v2279_v23  ;;  %v2555_v16 = vmul.f32 %v2554_v50, %v2278_v26 }
 0x7d9   :  { %v2283_v62 = vpop.permute.xlu1 %2282  ;;  %v2297_v45 = vpop.permute.xlu0 %2296 }
 0x7da   :  { %v2284_v6 = vsel %vm297_vm1, %v2281_v21, %v2283_v62  ;;  %v2285_v47 = vsel %vm297_vm1, %v2283_v62, %v2281_v21 }
 0x7db   :  { %v2286_v8 = vmul.f32 %v2285_v47, %v5932_v20  ;;  %v2287_v46 = vmul.f32 %v2284_v6, %v5933_v11  ;;  %v2570_v20 = vstv %s5471_s30  ;;  %v2576_v11 = vstv %s5475_s1  ;;  %s5958_s1 = sld [smem:[#allocation63_spill]] }
 0x7dd   :  { %v2291_v39 = vpop.permute.xlu1 %2290  ;;  %v2305_v10 = vpop.permute.xlu0 %2304  ;;  %v2406_v34 = vmul.f32 %v2405_v22, %v2286_v8  ;;  %v2407_v7 = vmul.f32 %v2405_v22, %v2287_v46  ;;  %v2559_v0 = vmul.f32 %v2558_v53, %v2286_v8  ;;  %v2560_v29 = vmul.f32 %v2558_v53, %v2287_v46 }
 0x7de   :  { %v2292_v19 = vsel %vm401_vm2, %v2289_v49, %v2291_v39  ;;  %v2293_v18 = vsel %vm401_vm2, %v2291_v39, %v2289_v49  ;;  %v2556_v39 = vmul.f32 %v2554_v50, %v2279_v23 }
 0x7df   :  { %v2294_v5 = vmul.f32 %v2293_v18, %v5952_v63  ;;  %v2295_v35 = vmul.f32 %v2292_v19, %v5953_v56  ;;  %v2408_v19 = vadd.f32 %v2406_v34, %v2402_v59  ;;  %v2409_v18 = vadd.f32 %v2407_v7, %v2403_v61 }
 0x7e0   :  { %v2561_v53 = vadd.f32 %v2559_v0, %v2555_v16 }
 0x7e1   :  { %v2299_v2 = vpop.permute.xlu1 %2298  ;;  %v2313_v25 = vpop.permute.xlu0 %2312  ;;  %v2412_v4 = vmul.f32 %v2411_v15, %v2294_v5  ;;  %v2413_v21 = vmul.f32 %v2411_v15, %v2295_v35  ;;  %v2565_v12 = vmul.f32 %v2564_v31, %v2294_v5  ;;  %v2566_v8 = vmul.f32 %v2564_v31, %v2295_v35 }
 0x7e2   :  { %v2300_v58 = vsel %vm401_vm2, %v2297_v45, %v2299_v2  ;;  %v2301_v36 = vsel %vm401_vm2, %v2299_v2, %v2297_v45  ;;  %v2562_v15 = vadd.f32 %v2560_v29, %v2556_v39  ;;  %v2435_v2 = vstv %s5505_s6  ;;  %s5959_s6 = sld [smem:[#allocation65_spill]] }
 0x7e3   :  { %v2302_v6 = vmul.f32 %v2301_v36, %v5952_v63  ;;  %v2303_v47 = vmul.f32 %v2300_v58, %v5953_v56  ;;  %v2588_v58 = vstv %s5511_s28  ;;  %v2414_v36 = vadd.f32 %v2412_v4, %v2408_v19 }
 0x7e4   :  { %v2415_v52 = vadd.f32 %v2413_v21, %v2409_v18  ;;  %v2567_v5 = vadd.f32 %v2565_v12, %v2561_v53  ;;  %v2568_v35 = vadd.f32 %v2566_v8, %v2562_v15 }
 0x7e5   :  { %v2307_v49 = vpop.permute.xlu1 %2306  ;;  %v2321_v62 = vpop.permute.xlu0 %2320  ;;  %v2418_v30 = vmul.f32 %v2417_v40, %v2302_v6  ;;  %v2571_v50 = vmul.f32 %v2570_v20, %v2302_v6  ;;  %v2572_v26 = vmul.f32 %v2570_v20, %v2303_v47 }
 0x7e6   :  { %v2308_v14 = vsel %vm445_vm3, %v2305_v10, %v2307_v49  ;;  %v2309_v45 = vsel %vm445_vm3, %v2307_v49, %v2305_v10  ;;  %v2419_v10 = vmul.f32 %v2417_v40, %v2303_v47 }
 0x7e7   :  { %v2310_v46 = vmul.f32 %v2309_v45, %v3927_v1  ;;  %v2311_v22 = vmul.f32 %v2308_v14, %v3945_v17  ;;  %v2420_v4 = vadd.f32 %v2418_v30, %v2414_v36  ;;  %v2573_v6 = vadd.f32 %v2571_v50, %v2567_v5 }
 0x7e8   :  { %v2421_v21 = vadd.f32 %v2419_v10, %v2415_v52  ;;  %v2574_v47 = vadd.f32 %v2572_v26, %v2568_v35 }
 0x7e9   :  { %v2315_v63 = vpop.permute.xlu1 %2314  ;;  %v2329_v56 = vpop.permute.xlu0 %2328  ;;  %v2424_v34 = vmul.f32 %v2423_v38, %v2310_v46  ;;  %v2425_v7 = vmul.f32 %v2423_v38, %v2311_v22  ;;  %v2577_v59 = vmul.f32 %v2576_v11, %v2310_v46  ;;  %v2578_v61 = vmul.f32 %v2576_v11, %v2311_v22 }
 0x7ea   :  { %v2316_v23 = vsel %vm445_vm3, %v2313_v25, %v2315_v63  ;;  %v2317_v31 = vsel %vm445_vm3, %v2315_v63, %v2313_v25  ;;  %v2594_v46 = vstv %s5539_s17 }
 0x7eb   :  { %v2318_v40 = vmul.f32 %v2317_v31, %v3927_v1  ;;  %v2319_v0 = vmul.f32 %v2316_v23, %v3945_v17  ;;  %v2426_v30 = vadd.f32 %v2424_v34, %v2420_v4  ;;  %v2427_v52 = vadd.f32 %v2425_v7, %v2421_v21 }
 0x7ec   :  { %v2579_v16 = vadd.f32 %v2577_v59, %v2573_v6  ;;  %v2580_v39 = vadd.f32 %v2578_v61, %v2574_v47  ;;  %v2602_v61 = vmul.f32 %v2600_v41, %v5379_v3 }
 0x7ed   :  { %v2323_v29 = vpop.permute.xlu1 %2322  ;;  %v2337_v20 = vpop.permute.xlu0 %2336  ;;  %v2430_v14 = vmul.f32 %v2429_v54, %v2318_v40  ;;  %v2431_v38 = vmul.f32 %v2429_v54, %v2319_v0  ;;  %v2583_v45 = vmul.f32 %v2582_v48, %v2318_v40  ;;  %v2584_v11 = vmul.f32 %v2582_v48, %v2319_v0 }
 0x7ee   :  { %v2324_v49 = vsel %vm489_vm4, %v2321_v62, %v2323_v29  ;;  %v2325_v25 = vsel %vm489_vm4, %v2323_v29, %v2321_v62  ;;  %v2441_v48 = vstv %s5533_s16 }
 0x7ef   :  { %v2326_v1 = vmul.f32 %v2325_v25, %v3954_v24  ;;  %v2327_v17 = vmul.f32 %v2324_v49, %v3964_v33  ;;  %v2432_v15 = vadd.f32 %v2430_v14, %v2426_v30  ;;  %v2433_v63 = vadd.f32 %v2431_v38, %v2427_v52 }
 0x7f0   :  { %v2585_v36 = vadd.f32 %v2583_v45, %v2579_v16  ;;  %v2586_v10 = vadd.f32 %v2584_v11, %v2580_v39 }
 0x7f1   :  { %v2331_v19 = vpop.permute.xlu1 %2330  ;;  %v2345_v18 = vpop.permute.xlu0 %2344  ;;  %v2436_v62 = vmul.f32 %v2435_v2, %v2326_v1  ;;  %v2437_v54 = vmul.f32 %v2435_v2, %v2327_v17  ;;  %v2589_v12 = vmul.f32 %v2588_v58, %v2326_v1  ;;  %v2590_v8 = vmul.f32 %v2588_v58, %v2327_v17 }
 0x7f2   :  { %v2332_v22 = vsel %vm489_vm4, %v2329_v56, %v2331_v19  ;;  %v2333_v53 = vsel %vm489_vm4, %v2331_v19, %v2329_v56  ;;  %v2448_v2 = vmul.f32 %v2447_v51, %v5377_v28  ;;  %v2449_v58 = vmul.f32 %v2447_v51, %v5379_v3 }
 0x7f3   :  { %v2334_v50 = vmul.f32 %v2333_v53, %v3954_v24  ;;  %v2335_v56 = vmul.f32 %v2332_v22, %v3964_v33  ;;  %v2438_v31 = vadd.f32 %v2436_v62, %v2432_v15  ;;  %v2439_v5 = vadd.f32 %v2437_v54, %v2433_v63 }
 0x7f4   :  { %v2591_v35 = vadd.f32 %v2589_v12, %v2585_v36  ;;  %v2592_v34 = vadd.f32 %v2590_v8, %v2586_v10  ;;  %v2601_v33 = vmul.f32 %v2600_v41, %v5377_v28  ;;  %v5954_v28 = vstv %s5453_s21  ;;  %s5633_s21 = sld [smem:[#allocation22 + $0x21]] }
 0x7f5   :  { %v2339_v26 = vpop.permute.xlu1 %2338  ;;  %v2353_v23 = vpop.permute.xlu0 %2352  ;;  %v2442_v7 = vmul.f32 %v2441_v48, %v2334_v50  ;;  %v2443_v59 = vmul.f32 %v2441_v48, %v2335_v56  ;;  %v2595_v51 = vmul.f32 %v2594_v46, %v2334_v50  ;;  %v2596_v24 = vmul.f32 %v2594_v46, %v2335_v56 }
 0x7f6   :  { %v2340_v40 = vsel %vm533_vm5, %v2337_v20, %v2339_v26  ;;  %v2341_v0 = vsel %vm533_vm5, %v2339_v26, %v2337_v20  ;;  %v2455_v6 = vmul.f32 %v5954_v28, %v5391_v32  ;;  %v5955_v3 = vstv %s5455_s3  ;;  %s5653_s3 = sld [smem:[#allocation22 + $0x22]] }
 0x7f7   :  { %v2444_v29 = vadd.f32 %v2442_v7, %v2438_v31  ;;  %v2445_v4 = vadd.f32 %v2443_v59, %v2439_v5  ;;  %v2597_v21 = vadd.f32 %v2595_v51, %v2591_v35  ;;  %v2598_v49 = vadd.f32 %v2596_v24, %v2592_v34 }
 0x7f8   :  { %v2608_v41 = vmul.f32 %v5955_v3, %v5391_v32  ;;  %v5956_v47 = vmov %v5954_v28  ;;  %v5957_v20 = vmov %v5955_v3  ;;  %v2342_v52 = vmul.f32 %v2340_v40, %v4007_v60 }
 0x7f9   :  { %v2347_v25 = vpop.permute.xlu1 %2346  ;;  %v2454_v14 = vmul.f32 %v5956_v47, %v5385_v55  ;;  %v2607_v38 = vmul.f32 %v5957_v20, %v5385_v55  ;;  %v2361_v45 = vpop.permute.xlu0 %2360  ;;  %v2450_v11 = vadd.f32 %v2448_v2, %v2444_v29  ;;  %v2451_v1 = vadd.f32 %v2449_v58, %v2445_v4 }
 0x7fa   :  { %v2603_v17 = vadd.f32 %v2601_v33, %v2597_v21  ;;  %v2604_v30 = vadd.f32 %v2602_v61, %v2598_v49  ;;  %v2343_v32 = vmul.f32 %v2341_v0, %v5920_v27  ;;  %v2348_v16 = vsel %vm533_vm5, %v2345_v18, %v2347_v25 }
 0x7fb   :  { %v2349_v55 = vsel %vm533_vm5, %v2347_v25, %v2345_v18  ;;  %v2456_v39 = vadd.f32 %v2454_v14, %v2450_v11  ;;  %v2457_v19 = vadd.f32 %v2455_v6, %v2451_v1  ;;  %v2459_v8 = vstv %s5549_s15 }
 0x7fc   :  { %v2609_v62 = vadd.f32 %v2607_v38, %v2603_v17  ;;  %v2610_v54 = vadd.f32 %v2608_v41, %v2604_v30  ;;  %v2612_v48 = vstv %s5551_s0  ;;  %v2465_v18 = vstv %s5559_s2 }
 0x7fd   :  { %v2355_v12 = vpop.permute.xlu1 %2354  ;;  %v2618_v53 = vstv %s5561_s11  ;;  %v2350_v15 = vmul.f32 %v2348_v16, %v4007_v60  ;;  %v2351_v63 = vmul.f32 %v2349_v55, %v5920_v27  ;;  %v2471_v36 = vstv %s5571_s12  ;;  %v2369_v2 = vpop.permute.xlu0 %2368 }
 0x7fe   :  { %v2356_v46 = vsel %vm577_vm6, %v2353_v23, %v2355_v12  ;;  %v2357_v22 = vsel %vm577_vm6, %v2355_v12, %v2353_v23  ;;  %v2624_v10 = vstv %s5573_s20  ;;  %v2477_v58 = vstv %s5575_s19 }
 0x7ff   :  { %v2630_v50 = vstv %s5587_s14  ;;  %v2460_v56 = vmul.f32 %v2459_v8, %v2342_v52  ;;  %v2461_v26 = vmul.f32 %v2459_v8, %v2343_v32  ;;  %v2358_v23 = vmul.f32 %v2356_v46, %v4427_v57 }
 0x800   :  { %v2359_v31 = vmul.f32 %v2357_v22, %v4446_v13  ;;  %v2613_v27 = vmul.f32 %v2612_v48, %v2342_v52  ;;  %v2614_v5 = vmul.f32 %v2612_v48, %v2343_v32  ;;  %v2483_v35 = vstv %s5589_s26 }
 0x801   :  { %v2363_v60 = vpop.permute.xlu1 %2362  ;;  %v2636_v34 = vstv %s5603_s18  ;;  %v2462_v7 = vadd.f32 %v2460_v56, %v2456_v39  ;;  %v2463_v59 = vadd.f32 %v2461_v26, %v2457_v19  ;;  %v2466_v51 = vmul.f32 %v2465_v18, %v2350_v15  ;;  %v2377_v3 = vpop.permute.xlu0 %2376 }
 0x802   :  { %v2467_v24 = vmul.f32 %v2465_v18, %v2351_v63  ;;  %v2615_v33 = vadd.f32 %v2613_v27, %v2609_v62  ;;  %v2616_v61 = vadd.f32 %v2614_v5, %v2610_v54  ;;  %v2364_v40 = vsel %vm577_vm6, %v2361_v45, %v2363_v60 }
 0x803   :  { %v2365_v0 = vsel %vm577_vm6, %v2363_v60, %v2361_v45  ;;  %v2619_v29 = vmul.f32 %v2618_v53, %v2350_v15  ;;  %v2620_v4 = vmul.f32 %v2618_v53, %v2351_v63  ;;  %v2472_v21 = vmul.f32 %v2471_v36, %v2358_v23 }
 0x804   :  { %v2473_v49 = vmul.f32 %v2471_v36, %v2359_v31  ;;  %v2366_v28 = vmul.f32 %v2364_v40, %v4427_v57  ;;  %v2367_v6 = vmul.f32 %v2365_v0, %v4446_v13  ;;  %v2468_v14 = vadd.f32 %v2466_v51, %v2462_v7 }
 0x805   :  { %v2371_v25 = vpop.permute.xlu1 %2370  ;;  %v2469_v20 = vadd.f32 %v2467_v24, %v2463_v59  ;;  %v2489_v38 = vstv %s5617_s5  ;;  %v2642_v45 = vstv %s5623_s9  ;;  %v2625_v11 = vmul.f32 %v2624_v10, %v2358_v23  ;;  %v2385_v15 = vpop.permute.xlu0 %2384 }
 0x806   :  { %v2372_v41 = vsel %vm621_vm7, %v2369_v2, %v2371_v25  ;;  %v2373_v47 = vsel %vm621_vm7, %v2371_v25, %v2369_v2  ;;  %v2626_v1 = vmul.f32 %v2624_v10, %v2359_v31  ;;  %v2621_v30 = vadd.f32 %v2619_v29, %v2615_v33 }
 0x807   :  { %v2374_v17 = vmul.f32 %v2372_v41, %v4469_v9  ;;  %v2375_v57 = vmul.f32 %v2373_v47, %v4472_v42  ;;  %v2622_v13 = vadd.f32 %v2620_v4, %v2616_v61  ;;  %v2495_v32 = vstv %s5629_s23 }
 0x808   :  { %v2648_v16 = vstv %s5633_s21  ;;  %v2474_v55 = vadd.f32 %v2472_v21, %v2468_v14  ;;  %v2475_v39 = vadd.f32 %v2473_v49, %v2469_v20  ;;  %v2478_v19 = vmul.f32 %v2477_v58, %v2366_v28  ;;  %s5960_s21 = sld [smem:[#allocation64_spill]] }
 0x809   :  { %v2379_v52 = vpop.permute.xlu1 %2378  ;;  %v2479_v62 = vmul.f32 %v2477_v58, %v2367_v6  ;;  %v2631_v54 = vmul.f32 %v2630_v50, %v2366_v28  ;;  %v2632_v12 = vmul.f32 %v2630_v50, %v2367_v6  ;;  %v2627_v46 = vadd.f32 %v2625_v11, %v2621_v30  ;;  %v2393_v61 = vpop.permute.xlu0 %2392 }
 0x80a   :  { %v2380_v8 = vsel %vm621_vm7, %v2377_v3, %v2379_v52  ;;  %v2381_v48 = vsel %vm621_vm7, %v2379_v52, %v2377_v3  ;;  %v2628_v22 = vadd.f32 %v2626_v1, %v2622_v13  ;;  %v2484_v18 = vmul.f32 %v2483_v35, %v2374_v17 }
 0x80b   :  { %v2485_v53 = vmul.f32 %v2483_v35, %v2375_v57  ;;  %v2637_v63 = vmul.f32 %v2636_v34, %v2374_v17  ;;  %v2638_v36 = vmul.f32 %v2636_v34, %v2375_v57  ;;  %v2382_v10 = vmul.f32 %v2380_v8, %v4469_v9 }
 0x80c   :  { %v2383_v2 = vmul.f32 %v2381_v48, %v4472_v42  ;;  %v2480_v50 = vadd.f32 %v2478_v19, %v2474_v55  ;;  %v2481_v56 = vadd.f32 %v2479_v62, %v2475_v39  ;;  %v2633_v31 = vadd.f32 %v2631_v54, %v2627_v46 }
 0x80d   :  { %v2387_v58 = vpop.permute.xlu1 %2386  ;;  %v2634_v60 = vadd.f32 %v2632_v12, %v2628_v22  ;;  %v2490_v27 = vmul.f32 %v2489_v38, %v2382_v10  ;;  %v2643_v35 = vmul.f32 %v2642_v45, %v2382_v10  ;;  %v2501_v21 = vstv %s5653_s3 }
 0x80e   :  { %v2388_v26 = vsel %vm665_vm8, %v2385_v15, %v2387_v58  ;;  %v2389_v23 = vsel %vm665_vm8, %v2387_v58, %v2385_v15  ;;  %v2491_v5 = vmul.f32 %v2489_v38, %v2383_v2  ;;  %v2644_v9 = vmul.f32 %v2642_v45, %v2383_v2 }
 0x80f   :  { %v2390_v42 = vmul.f32 %v2388_v26, %v4518_v44  ;;  %v2391_v34 = vmul.f32 %v2389_v23, %v4521_v43  ;;  %v2486_v7 = vadd.f32 %v2484_v18, %v2480_v50  ;;  %v2487_v59 = vadd.f32 %v2485_v53, %v2481_v56 }
 0x810   :  { %v2639_v51 = vadd.f32 %v2637_v63, %v2633_v31  ;;  %v2640_v24 = vadd.f32 %v2638_v36, %v2634_v60  ;;  %v2654_v49 = vstv %s5659_s10  ;;  %v2507_v52 = vstv %s5671_s8  ;;  %s3448_s8 = smov [#allocation28]  }
 0x811   :  { %v2395_v33 = vpop.permute.xlu1 %2394  ;;  %v2496_v40 = vmul.f32 %v2495_v32, %v2390_v42  ;;  %v2497_v0 = vmul.f32 %v2495_v32, %v2391_v34  ;;  %v2649_v29 = vmul.f32 %v2648_v16, %v2390_v42  ;;  %v2650_v4 = vmul.f32 %v2648_v16, %v2391_v34 }
 0x812   :  { %v2396_v25 = vsel %vm665_vm8, %v2393_v61, %v2395_v33  ;;  %v2397_v28 = vsel %vm665_vm8, %v2395_v33, %v2393_v61  ;;  %v2492_v6 = vadd.f32 %v2490_v27, %v2486_v7  ;;  %v2493_v3 = vadd.f32 %v2491_v5, %v2487_v59 }
 0x813   :  { %v2645_v41 = vadd.f32 %v2643_v35, %v2639_v51  ;;  %v2646_v47 = vadd.f32 %v2644_v9, %v2640_v24  ;;  %v2398_v14 = vmul.f32 %v2396_v25, %v4518_v44  ;;  %v2399_v20 = vmul.f32 %v2397_v28, %v4521_v43 }
 0x814   :  { %v2498_v38 = vadd.f32 %v2496_v40, %v2492_v6  ;;  %v2499_v45 = vadd.f32 %v2497_v0, %v2493_v3 }
 0x815   :  { %v2651_v11 = vadd.f32 %v2649_v29, %v2645_v41  ;;  %v2652_v1 = vadd.f32 %v2650_v4, %v2646_v47  ;;  %v2502_v17 = vmul.f32 %v2501_v21, %v2398_v14  ;;  %v2503_v57 = vmul.f32 %v2501_v21, %v2399_v20 }
 0x816   :  { %v2655_v30 = vmul.f32 %v2654_v49, %v2398_v14  ;;  %v2656_v13 = vmul.f32 %v2654_v49, %v2399_v20 }
 0x817   :  { %v2504_v32 = vadd.f32 %v2502_v17, %v2498_v38  ;;  %v2505_v16 = vadd.f32 %v2503_v57, %v2499_v45 }
 0x818   :  { %v2657_v55 = vadd.f32 %v2655_v30, %v2651_v11  ;;  %v2658_v39 = vadd.f32 %v2656_v13, %v2652_v1 }
 0x819   :  { %v2508_v54 = vadd.f32 %v2507_v52, %v2504_v32  ;;  %v2509_v44 = vadd.f32 %v2507_v52, %v2505_v16 }
 0x81a   :  { %v2661_v19 = vadd.f32 %v2660_v37, %v2657_v55  ;;  %v2662_v62 = vadd.f32 %v2660_v37, %v2658_v39  ;;  %v2543_v55 = vstv %s2540_s22  ;;  %s2902_s22 = sshll.u32 %s3448_s8, 4  ;;  %s2903_s22 = int_to_ptr.vmem [resolvable:$true] %s2902_s22 }
 0x81b   :  { %v2510_v8 = vsel %vm1011_vm9, %v2508_v54, 0.0  ;;  %v2511_v48 = vsel %vm1011_vm9, %v2509_v44, 0.0  ;;  %p3387_p11 = scmp.lt.s32.totalorder %s2903_s22, %s2903_s22 }
 0x81c   :  { %v2663_v43 = vsel %vm1011_vm9, %v2661_v19, 0.0  ;;  %v2664_v12 = vsel %vm1011_vm9, %v2662_v62, 0.0  ;;  %v2512_v22 = vadd.f32 %v2511_v48, %v2510_v8 }
 0x81d   :  { %v2665_v46 = vadd.f32 %v2664_v12, %v2663_v43 }
 0x81e   :  { %2513 = vadd.xlane.f32.xlu0 %v2512_v22  ;;  %v2701_v22 = vstv %s3106_s29 }
 0x81f   :  { %2666 = vadd.xlane.f32.xlu1 %v2665_v46 }
 0x8a7   :  { %v2514_v53 = vpop.xlane.xlu0 %2513 }
 0x8a8   :  { %v2667_v18 = vpop.xlane.xlu1 %2666  ;;  %v2515_v63 = vsel %vm1011_vm9, %v2514_v53, 0.0 }
 0x8a9   :  { %v2668_v15 = vsel %vm1011_vm9, %v2667_v18, 0.0  ;;  %v2516_v10 = vrot.slane %v2515_v63, 4 }
 0x8aa   :  { %v2669_v36 = vrot.slane %v2668_v15, 4 }
 0x8ab   :  { %v2517_v58 = vadd.f32 %v2516_v10, %v2515_v63 }
 0x8ac   :  { %v2670_v2 = vadd.f32 %v2669_v36, %v2668_v15 }
 0x8ad   :  { %v2518_v56 = vrot.slane %v2517_v58, 2 }
 0x8ae   :  { %v2671_v50 = vrot.slane %v2670_v2, 2 }
 0x8af   :  { %v2519_v23 = vadd.f32 %v2518_v56, %v2517_v58 }
 0x8b0   :  { %v2672_v26 = vadd.f32 %v2671_v50, %v2670_v2 }
 0x8b1   :  { %v2520_v60 = vrot.slane %v2519_v23, 1 }
 0x8b2   :  { %v2673_v31 = vrot.slane %v2672_v26, 1 }
 0x8b3   :  { %v2521_v5 = vadd.f32 %v2520_v60, %v2519_v23 }
 0x8b4   :  { %v2674_v27 = vadd.f32 %v2673_v31, %v2672_v26 }
 0x8b5   :  { %v2522_v9 = vmul.f32 0.001953125, %v2521_v5  ;;  %v3446_v5 = vmov 0.0  }
 0x8b6   :  { %v2675_v35 = vmul.f32 0.001953125, %v2674_v27  ;;  %v2720_v27 = vld [vmem:[%s5958_s1] sm:$0x3]  ;;  %3123 = vmatprep.subr.mxu0 %v3446_v5  ;;  %3125 = vmatprep.mubr.msk.f32.mxu0 %vm3447_vm10, %v3446_v5 }
 0x8b7   :  { %v2523_v7 = vsub.f32 %v2508_v54, %v2522_v9  ;;  %v2524_v59 = vsub.f32 %v2509_v44, %v2522_v9  ;;  %v2696_v54 = vstv %s3105_s24  ;;  %3124 = vmatpush3.msk.msra.mxu0 %vm1011_vm9, %v2720_v27  ;;  %3128 = vmatprep.subr.mxu1 %v3446_v5  ;;  %v2811_v9 = vld [vmem:[%s5959_s6 + $0x30] sm:$0xff] }
 0x8b8   :  { %v2676_v42 = vsub.f32 %v2661_v19, %v2675_v35  ;;  %v2677_v34 = vsub.f32 %v2662_v62, %v2675_v35  ;;  %v2548_v62 = vstv %s2547_s7  ;;  %v2812_v35 = vld [vmem:[%s5959_s6 + $0x38] sm:$0xff]  ;;  %3144 = vmatprep.mubr.msk.f32.mxu1 %vm3447_vm10, %v3446_v5  ;;  %s3382_s7 = scalar_lea.vmem %s2903_s22, 32 }
 0x8b9   :  { %v2525_v51 = vmul.f32 %v2523_v7, %v2523_v7  ;;  %v2526_v24 = vmul.f32 %v2524_v59, %v2524_v59  ;;  %3129 = vmatpush3.msra.mxu1 %v2812_v35  ;;  %p3383_p10 = scmp.ne.s32.totalorder %s2903_s22, %s3382_s7  ;;  %p3388_p12 = scmp.lt.s32.totalorder %s3382_s7, %s3382_s7 }
 0x8ba   :  { %v2678_v33 = vmul.f32 %v2676_v42, %v2676_v42  ;;  %v2679_v61 = vmul.f32 %v2677_v34, %v2677_v34  ;;  %3130 = vmatprep.subr.mxu1 %v3446_v5 }
 0x8bb   :  { %v2527_v40 = vsel %vm1011_vm9, %v2525_v51, 0.0  ;;  %v2528_v0 = vsel %vm1011_vm9, %v2526_v24, 0.0  ;;  %3131 = vmatpush3.msra.mxu1 %v2811_v9  ;;  %p3389_p13 = por %p3388_p12, %p3387_p11 }
 0x8bc   :  { %v2529_v29 = vadd.f32 %v2528_v0, %v2527_v40  ;;  %v2680_v4 = vsel %vm1011_vm9, %v2678_v33, 0.0  ;;  %v2681_v21 = vsel %vm1011_vm9, %v2679_v61, 0.0  ;;  %3132 = vmatprep.subr.mxu1 %v3446_v5  ;;  %v2806_v0 = vld [vmem:[%s5959_s6 + $0x8] sm:$0xff] }
 0x8bd   :  { %v2682_v49 = vadd.f32 %v2681_v21, %v2680_v4  ;;  %v3107_v4 = vld [vmem:[%s5960_s21] ss:$0 sm:$0xff]  ;;  %p3390_p0 = pnand %p3389_p13, %p3383_p10 }
 0x8be   :  { %2530 = vadd.xlane.f32.xlu0 %v2529_v29  ;;  %v2805_v29 = vld [vmem:[%s5959_s6] sm:$0xff] }
 0x8c2   :  { %2683 = vadd.xlane.f32.xlu0 %v2682_v49 }
 0x947   :  { %v2531_v25 = vpop.xlane.xlu0 %2530 }
 0x948   :  { %v2532_v28 = vsel %vm1011_vm9, %v2531_v25, 0.0 }
 0x949   :  { %v2533_v6 = vrot.slane %v2532_v28, 4 }
 0x94b   :  { %v2534_v3 = vadd.f32 %v2533_v6, %v2532_v28  ;;  %v2684_v41 = vpop.xlane.xlu0 %2683  ;;  %v3110_v28 = vld [vmem:[%s5961_s13] ss:$0 sm:$0xff] }
 0x94c   :  { %v2685_v47 = vsel %vm1011_vm9, %v2684_v41, 0.0 }
 0x94d   :  { %v2535_v14 = vrot.slane %v2534_v3, 2  ;;  %v2686_v20 = vrot.slane %v2685_v47, 4 }
 0x94f   :  { %v2536_v38 = vadd.f32 %v2535_v14, %v2534_v3  ;;  %v2687_v45 = vadd.f32 %v2686_v20, %v2685_v47 }
 0x951   :  { %v2537_v11 = vrot.slane %v2536_v38, 1  ;;  %v2688_v1 = vrot.slane %v2687_v45, 2 }
 0x953   :  { %v2538_v17 = vadd.f32 %v2537_v11, %v2536_v38  ;;  %v2689_v57 = vadd.f32 %v2688_v1, %v2687_v45 }
 0x955   :  { %v2539_v30 = vmul.f32 0.001953125, %v2538_v17  ;;  %v2690_v13 = vrot.slane %v2689_v57, 1 }
 0x957   :  { %v2541_v37 = vadd.f32 1e-05, %v2539_v30  ;;  %v2691_v52 = vadd.f32 %v2690_v13, %v2689_v57 }
 0x959   :  { %3186 = vrsqrt.f32 %v2541_v37  ;;  %v2692_v32 = vmul.f32 0.001953125, %v2691_v52 }
 0x95b   :  { %v2694_v16 = vadd.f32 1e-05, %v2692_v32 }
 0x95d   :  { %3188 = vrsqrt.f32 %v2694_v16 }
 0x966   :  { %v3187_v39 = vpop.eup %3186 }
 0x967   :  { %v2544_v19 = vmul.f32 %v3187_v39, %v2543_v55 }
 0x969   :  { %v2545_v44 = vmul.f32 %v2544_v19, %v2523_v7  ;;  %v2546_v43 = vmul.f32 %v2544_v19, %v2524_v59  ;;  %v2808_v7 = vld [vmem:[%s5959_s6 + $0x18] sm:$0xff]  ;;  %v2807_v59 = vld [vmem:[%s5959_s6 + $0x10] sm:$0xff] }
 0x96a   :  { %v3189_v12 = vpop.eup %3188 }
 0x96b   :  { %v2549_v8 = vadd.f32 %v2548_v62, %v2545_v44  ;;  %v2550_v48 = vadd.f32 %v2548_v62, %v2546_v43  ;;  %v2697_v46 = vmul.f32 %v3189_v12, %v2696_v54 }
 0x96d   :  { %v2551_v18 = vmax.f32 %v2549_v8, 0.0  ;;  %v2552_v53 = vmax.f32 %v2550_v48, 0.0  ;;  %v2698_v15 = vmul.f32 %v2697_v46, %v2676_v42  ;;  %v2699_v63 = vmul.f32 %v2697_v46, %v2677_v34  ;;  %v2810_v42 = vld [vmem:[%s5959_s6 + $0x28] sm:$0xff]  ;;  %v2809_v34 = vld [vmem:[%s5959_s6 + $0x20] sm:$0xff] }
 0x96e   :  { %3133 = vmatpush3.msra.mxu1 %v2810_v42 }
 0x96f   :  { %v2706_v36 = vsel %vm1011_vm9, %v2551_v18, 0.0  ;;  %v2707_v10 = vsel %vm1011_vm9, %v2552_v53, 0.0  ;;  %v2702_v2 = vadd.f32 %v2701_v22, %v2698_v15  ;;  %v2703_v58 = vadd.f32 %v2701_v22, %v2699_v63  ;;  %3134 = vmatprep.subr.mxu1 %v3446_v5 }
 0x970   :  { %v2708_v50 = vadd.f32 %v2707_v10, %v2706_v36  ;;  %3135 = vmatpush3.msra.mxu1 %v2809_v34 }
 0x971   :  { %v2704_v56 = vmax.f32 %v2702_v2, 0.0  ;;  %v2705_v26 = vmax.f32 %v2703_v58, 0.0  ;;  %3136 = vmatprep.subr.mxu1 %v3446_v5 }
 0x972   :  { %2709 = vadd.xlane.f32.xlu1 %v2708_v50  ;;  %3137 = vmatpush3.msra.mxu1 %v2808_v7 }
 0x973   :  { %v2712_v23 = vsel %vm1011_vm9, %v2704_v56, 0.0  ;;  %v2713_v31 = vsel %vm1011_vm9, %v2705_v26, 0.0  ;;  %3138 = vmatprep.subr.mxu1 %v3446_v5 }
 0x974   :  { %v2714_v60 = vadd.f32 %v2713_v31, %v2712_v23  ;;  %3139 = vmatpush3.msra.mxu1 %v2807_v59 }
 0x975   :  { %3140 = vmatprep.subr.mxu1 %v3446_v5 }
 0x976   :  { %2715 = vadd.xlane.f32.xlu0 %v2714_v60  ;;  %3141 = vmatpush3.msra.mxu1 %v2806_v0 }
 0x977   :  { %3142 = vmatprep.subr.mxu1 %v3446_v5 }
 0x978   :  { %3143 = vmatpush3.msra.mxu1 %v2805_v29 }
 0x9fb   :  { %v2710_v51 = vpop.xlane.xlu1 %2709 }
 0x9fc   :  { %v2711_v33 = vmul.f32 0.00390625, %v2710_v51 }
 0x9ff   :  { %v2716_v24 = vpop.xlane.xlu0 %2715 }
 0xa00   :  { %v2717_v61 = vmul.f32 0.00390625, %v2716_v24 }
 0xa02   :  { %v2719_v40 = vsel %vm2718_vm11, %v2711_v33, %v2717_v61 }
 0xa03   :  { %3126 = vmatmul.mubr.msk.f32.vlgmr.msra.gmra.mxu0 %vm2728_vm12, %v2719_v40 }
 0xac3   :  { %v2801_v21 = vpop.f32.mrf.mxu0 }
 0xac4   :  { %v2802_v49 = vadd.f32 %v3107_v4, %v2801_v21 }
 0xac5   :  { %v3127_v25 = vpop.f32.mrf.mxu0 }
 0xac6   :  { %3145 = vmatmul.mubr.msk.f32.vlgmr.msra.gmra.mxu1 %vm2820_vm13, %v2802_v49 }
 0xb86   :  { %v2890_v6 = vpop.f32.mrf.mxu1 }
 0xb87   :  { %v2891_v3 = vadd.f32 %v3110_v28, %v2890_v6 }
 0xb88   :  { %v3146_v41 = vpop.f32.mrf.mxu1 }
 0xb89   :  { %2895 = vst.msk [vmem:[#allocation28] sm:$0x3] %vm2894_vm14, %v2891_v3 }
 0xb8a   :  { %3393 = shalt.err (!%p3390_p0)
}
 0xb8b   :  { %s5962_s30 = sld [smem:[#allocation67_spill]] }
 0xb91   :  { %2905 = dma.vmem_to_hbm [thread:$0]  %s2903_s22, 32, %s5962_s30, [#allocation3]  }
 0xb92   :  { %3420 = dma.done.wait [#allocation3], 32  }
 0xb93   :  { %3421 = vsyncadd [#allocation3], 4294967264 }
 0xb94   :  { %2909 = vsyncpa [#allocation3], 1 }
 0xb95   :  { %2910 = vsyncpa [#allocation4], 1 }
 0xb96   :  { %2911 = vsyncpa [#allocation6], 1 }
 0xb97   :  { %2912 = vsyncpa [#allocation9], 1 }
 0xb98   :  { %2913 = vsyncpa [#allocation12], 1 }
 0xb99   :  { %2914 = vsyncpa [#allocation15], 1 }
 0xb9a   :  { %2915 = vsyncpa [#allocation18], 1 }
 0xb9b   :  { %2916 = vsyncpa [#allocation21], 1 }
 0xb9c   :  { %2917 = vsyncpa [#allocation24], 1 }
 0xb9d   :  { %2918 = vsyncpa [#allocation27], 1 }

</bundles_post_ra>
